<compile_context>
chip_gen: v5e
topology: v5e:2x2
jax: 0.10.0
libtpu: 0.0.40
codegen_flags: <defaults>
</compile_context>

<pallas_src>
import functools

import jax
import jax.numpy as jnp
from jax import lax
from jax.experimental import pallas as pl
from jax.experimental.pallas import tpu as pltpu


# --------------------------------------------------------------------------
# helpers
# --------------------------------------------------------------------------

def _largest_divisor(total, cap, multiple_of=1):
    """Largest d <= cap with d % multiple_of == 0 and total % d == 0 (or None)."""
    best = None
    d = multiple_of
    while d <= min(total, cap):
        if total % d == 0:
            best = d
        d += multiple_of
    return best


# --------------------------------------------------------------------------
# fused conv3x3 + bias + ReLU + 2x2 max-pool (one image per grid step)
# --------------------------------------------------------------------------

def _conv3x3_pool_kernel(x_ref, w_ref, b_ref, m_ref, o_ref, *, cin, wh, qw):
    """Fused 3x3 SAME conv + bias + ReLU + 2x2/stride-2 max-pool for one image.

    x_ref: (4*cin, Lr) bf16 -- four (row,col)-parity planes of the zero-padded
                               input, channel-major, flattened space in lanes.
    w_ref: (9, cout, cin) bf16 -- tap-major transposed weights (w[dh*3+dw]).
    b_ref: (cout, 1) f32
    m_ref: (1, qw) f32      -- 0 at the per-row garbage column, else 1.
    o_ref: (cout, qw) bf16  -- pooled output, channel-major, space in lanes.
    """
    pooled = None
    for oy in range(2):                       # row offset inside the 2x2 window
        for ox in range(2):                   # col offset inside the 2x2 window
            acc = None
            for dh in range(3):
                for dw in range(3):
                    s, t = oy + dh, ox + dw
                    par = 2 * (s % 2) + (t % 2)          # which parity plane
                    off = (s // 2) * wh + (t // 2)       # lane shift inside it
                    rhs = x_ref[pl.ds(par * cin, cin), pl.ds(off, qw)]
                    prod = jnp.dot(w_ref[dh * 3 + dw], rhs,
                                   preferred_element_type=jnp.float32)
                    acc = prod if acc is None else acc + prod
            # 2x2 max-pool == elementwise max over the four window offsets
            pooled = acc if pooled is None else jnp.maximum(pooled, acc)
    # bias + ReLU commute with the max; zero the garbage column with the mask.
    y = jnp.maximum(pooled + b_ref[...], 0.0) * m_ref[...]
    o_ref[...] = y.astype(o_ref.dtype)


def conv3x3_relu_pool(x_chw, w_t, b):
    """3x3 SAME conv + bias + ReLU + 2x2 max-pool, fused.

    x_chw: (n, cin, Hin, Win) bf16 (channel-major, like PyTorch).
    w_t  : (9, cout, cin) bf16.    b: (cout, 1) f32.
    Returns (n, cout, (Hin//2) * (Win//2 + 1)) bf16, channel-major; the extra
    column per spatial row (index Win//2) is stored as zero.
    """
    n, cin, hin, win = x_chw.shape
    cout = w_t.shape[1]
    assert hin % 2 == 0 and win % 2 == 0
    hout, wout = hin // 2, win // 2
    wh = wout + 1                    # pooled width + one (zeroed) extra column
    qw = hout * wh                   # flattened pooled spatial extent (lanes)
    lr = (hout + 2) * wh             # flattened parity-plane extent (lanes)

    cpad = (-cin) % 8                # keep the matmul K dim sublane-aligned
    cin_p = cin + cpad
    if cpad:
        w_t = jnp.pad(w_t, ((0, 0), (0, 0), (0, cpad)))

    # zero-pad (channels -> cin_p, 1 top / 3 bottom rows, 1 left / 1 right col)
    # and split into the four (row, col) parity planes of the padded image.
    xpad = jnp.pad(x_chw, ((0, 0), (0, cpad), (1, 3), (1, 1)))
    planes = [xpad[:, :, rp::2, cq::2] for rp in (0, 1) for cq in (0, 1)]
    x4 = jnp.concatenate(planes, axis=1).reshape(n, 4 * cin_p, lr)

    lane = jnp.arange(qw, dtype=jnp.int32) % wh
    mask = (lane != wh - 1).astype(jnp.float32).reshape(1, qw)

    kern = functools.partial(_conv3x3_pool_kernel, cin=cin_p, wh=wh, qw=qw)
    return pl.pallas_call(
        kern,
        out_shape=jax.ShapeDtypeStruct((n, cout, qw), jnp.bfloat16),
        grid=(n,),
        in_specs=[
            pl.BlockSpec((None, 4 * cin_p, lr), lambda i: (i, 0, 0)),
            pl.BlockSpec((9, cout, cin_p), lambda i: (0, 0, 0)),
            pl.BlockSpec((cout, 1), lambda i: (0, 0)),
            pl.BlockSpec((1, qw), lambda i: (0, 0)),
        ],
        out_specs=pl.BlockSpec((None, cout, qw), lambda i: (i, 0, 0)),
        compiler_params=pltpu.CompilerParams(
            dimension_semantics=("parallel",),
            vmem_limit_bytes=32 * 1024 * 1024),   # fits v7x (64 MiB) with headroom
    )(x4, w_t, b, mask)


# --------------------------------------------------------------------------
# classifier: K-tiled fc1 (accumulator) + fused bias/ReLU/fc2 epilogue
# --------------------------------------------------------------------------

def _classifier_kernel(x_ref, w1_ref, b1_ref, w2_ref, b2_ref, o_ref, acc_ref):
    k = pl.program_id(0)

    @pl.when(k == 0)
    def _init():
        acc_ref[...] = jnp.zeros_like(acc_ref)

    acc_ref[...] += jnp.dot(x_ref[...], w1_ref[...],
                            preferred_element_type=jnp.float32)

    @pl.when(k == pl.num_programs(0) - 1)
    def _epilogue():
        h = jnp.maximum(acc_ref[...] + b1_ref[...], 0.0)          # fc1 bias+ReLU
        out = jnp.dot(h.astype(w2_ref.dtype), w2_ref[...],
                      preferred_element_type=jnp.float32) + b2_ref[...]
        o_ref[...] = out.astype(o_ref.dtype)


def classifier(feat, w1, b1, w2, b2, *, tk_cap=8192):
    """feat: (M, F) bf16 -> logits (M, num_classes) f32."""
    M, F = feat.shape
    Hd = w1.shape[1]
    Cn = w2.shape[1]
    tk = _largest_divisor(F, tk_cap, multiple_of=128)
    if tk is None:
        tk = F                      # tiny / oddly-shaped feature dim: single tile
    if F // tk == 1 and F % 256 == 0:
        tk = F // 2                 # keep the K-accumulation path exercised
    nk = F // tk
    return pl.pallas_call(
        _classifier_kernel,
        out_shape=jax.ShapeDtypeStruct((M, Cn), jnp.float32),
        grid=(nk,),
        in_specs=[
            pl.BlockSpec((M, tk), lambda k: (0, k)),
            pl.BlockSpec((tk, Hd), lambda k: (k, 0)),
            pl.BlockSpec((1, Hd), lambda k: (0, 0)),
            pl.BlockSpec((Hd, Cn), lambda k: (0, 0)),
            pl.BlockSpec((1, Cn), lambda k: (0, 0)),
        ],
        out_specs=pl.BlockSpec((M, Cn), lambda k: (0, 0)),
        scratch_shapes=[pltpu.VMEM((M, Hd), jnp.float32)],
        compiler_params=pltpu.CompilerParams(
            dimension_semantics=("arbitrary",),
            vmem_limit_bytes=32 * 1024 * 1024),
    )(feat, w1, b1, w2, b2)


# --------------------------------------------------------------------------
# parameter prep + forward
# --------------------------------------------------------------------------

def prepare_params(params, H, W):
    """One-time conversion of PyTorch-layout params into kernel layout (bf16)."""
    Hq, Wq = H // 4, W // 4
    # fc1_w rows are channel-major (c, h, w); append one zero row per (c, h) for
    # the kernel's stored (zero) garbage column so the feature flatten is free.
    f1 = params["fc1_w"].reshape(64, Hq, Wq, -1)
    f1 = jnp.pad(f1, ((0, 0), (0, 0), (0, 1), (0, 0)))
    f1 = f1.reshape(64 * Hq * (Wq + 1), -1)

    def conv_w(w_hwio):             # (3,3,cin,cout) -> (9, cout, cin), tap-major
        kh, kw, ci, co = w_hwio.shape
        return w_hwio.transpose(0, 1, 3, 2).reshape(kh * kw, co, ci)

    return {
        "conv1_w": conv_w(params["conv1_w"]).astype(jnp.bfloat16),
        "conv1_b": params["conv1_b"].reshape(-1, 1).astype(jnp.float32),
        "conv2_w": conv_w(params["conv2_w"]).astype(jnp.bfloat16),
        "conv2_b": params["conv2_b"].reshape(-1, 1).astype(jnp.float32),
        "fc1_w": f1.astype(jnp.bfloat16),
        "fc1_b": params["fc1_b"].astype(jnp.float32),
        "fc2_w": params["fc2_w"].astype(jnp.bfloat16),
        "fc2_b": params["fc2_b"].astype(jnp.float32),
    }


def simple_cnn_forward(x, kp):
    """x: (B, T, C, H, W) float32 -> (B, T, num_classes) float32."""
    B, T, C, H, W = x.shape
    assert H % 4 == 0 and W % 4 == 0, "kernel assumes H % 4 == 0 and W % 4 == 0"
    n = B * T
    num_classes = kp["fc2_w"].shape[1]

    a1 = x.reshape(n, C, H, W).astype(jnp.bfloat16)                # channel-major
    y1 = conv3x3_relu_pool(a1, kp["conv1_w"], kp["conv1_b"])       # (n,32,(H/2)*(W/2+1))

    H1, W1 = H // 2, W // 2
    y1r = y1.reshape(n, 32, H1, W1 + 1)
    a2 = y1r[:, :, :, :W1]                                         # drop stored zero col
    y2 = conv3x3_relu_pool(a2, kp["conv2_w"], kp["conv2_b"])       # (n,64,(H/4)*(W/4+1))

    feat = y2.reshape(n, -1)                                       # channel-major flatten
    logits = classifier(feat, kp["fc1_w"], kp["fc1_b"], kp["fc2_w"], kp["fc2_b"])
    return logits.reshape(B, T, num_classes)


# --------------------------------------------------------------------------
# pure-JAX f32 reference + init
# --------------------------------------------------------------------------

def reference_forward(x, params):
    B, T, C, H, W = x.shape
    n = B * T
    xi = x.reshape(n, C, H, W).transpose(0, 2, 3, 1)
    dn = ("NHWC", "HWIO", "NHWC")
    y = lax.conv_general_dilated(xi, params["conv1_w"], (1, 1), "SAME",
                                 dimension_numbers=dn)
    y = jax.nn.relu(y + params["conv1_b"].reshape(1, 1, 1, -1))
    y = lax.reduce_window(y, -jnp.inf, lax.max, (1, 2, 2, 1), (1, 2, 2, 1), "VALID")
    y = lax.conv_general_dilated(y, params["conv2_w"], (1, 1), "SAME",
                                 dimension_numbers=dn)
    y = jax.nn.relu(y + params["conv2_b"].reshape(1, 1, 1, -1))
    y = lax.reduce_window(y, -jnp.inf, lax.max, (1, 2, 2, 1), (1, 2, 2, 1), "VALID")
    feat = y.transpose(0, 3, 1, 2).reshape(n, -1)          # PyTorch channel-major flatten
    h = jax.nn.relu(feat @ params["fc1_w"] + params["fc1_b"])
    out = h @ params["fc2_w"] + params["fc2_b"]
    return out.reshape(B, T, -1)


def init_params(key, H, W, num_classes=5):
    ks = jax.random.split(key, 8)
    feat_dim = 64 * (H // 4) * (W // 4)
    return {
        "conv1_w": jax.random.normal(ks[0], (3, 3, 3, 32), jnp.float32) * 0.10,   # HWIO
        "conv1_b": jax.random.normal(ks[1], (1, 32), jnp.float32) * 0.10,
        "conv2_w": jax.random.normal(ks[2], (3, 3, 32, 64), jnp.float32) * 0.05,
        "conv2_b": jax.random.normal(ks[3], (1, 64), jnp.float32) * 0.10,
        "fc1_w": jax.random.normal(ks[4], (feat_dim, 512), jnp.float32) * 0.02,
        "fc1_b": jax.random.normal(ks[5], (1, 512), jnp.float32) * 0.02,
        "fc2_w": jax.random.normal(ks[6], (512, num_classes), jnp.float32) * 0.02,
        "fc2_b": jax.random.normal(ks[7], (1, num_classes), jnp.float32) * 0.02,
    }


if __name__ == "__main__":
    key = jax.random.PRNGKey(0)
    kx, kp = jax.random.split(key)
    B, T, C, H, W = 2, 2, 3, 16, 16
    x = jax.random.normal(kx, (B, T, C, H, W), jnp.float32)
    params = init_params(kp, H, W, num_classes=5)
    kparams = prepare_params(params, H, W)     # one-time weight layout/bf16 prep

    fwd = jax.jit(simple_cnn_forward)
    out = jax.block_until_ready(fwd(x, kparams))
    assert out.shape == (B, T, 5), out.shape

    ref = jax.block_until_ready(reference_forward(x, params))
    # bf16 activations/weights vs. the f32 reference -> loosened tolerance.
    max_err = float(jnp.max(jnp.abs(out - ref)))
    assert jnp.allclose(out, ref, atol=2e-2, rtol=2e-2), max_err

    print("KERNEL_OK")
</pallas_src>

<mosaic_0001>
module attributes {stable_mosaic.version = 11 : i64} {
  func.func @_conv3x3_pool_kernel(%arg0: i32, %arg1: memref<1x32x90xbf16, #tpu.memory_space<vmem>>, %arg2: memref<9x32x8xbf16, #tpu.memory_space<vmem>>, %arg3: memref<32x1xf32, #tpu.memory_space<vmem>>, %arg4: memref<1x72xf32, #tpu.memory_space<vmem>>, %arg5: memref<1x32x72xbf16, #tpu.memory_space<vmem>>) attributes {dimension_semantics = [#tpu.dimension_semantics<parallel>], iteration_bounds = array<i64: 4>, scalar_prefetch = 0 : i64, scratch_operands = 0 : i64, tpu.core_type = #tpu.core_type<tc>, window_params = [{transform_indices = @transform_0, window_bounds = array<i64: 1, 32, 90>}, {pipeline_mode = #tpu.pipeline_mode<synchronous>, transform_indices = @transform_1, window_bounds = array<i64: 9, 32, 8>}, {pipeline_mode = #tpu.pipeline_mode<synchronous>, transform_indices = @transform_2, window_bounds = array<i64: 32, 1>}, {pipeline_mode = #tpu.pipeline_mode<synchronous>, transform_indices = @transform_3, window_bounds = array<i64: 1, 72>}, {transform_indices = @transform_4, window_bounds = array<i64: 1, 32, 72>}]} {
    %c0 = arith.constant 0 : index
    %c0_0 = arith.constant 0 : index
    %c0_1 = arith.constant 0 : index
    %0 = vector.load %arg1[%c0, %c0_0, %c0_1] : memref<1x32x90xbf16, #tpu.memory_space<vmem>>, vector<1x8x72xbf16>
    %1 = vector.shape_cast %0 : vector<1x8x72xbf16> to vector<8x72xbf16>
    %c0_2 = arith.constant 0 : index
    %c0_3 = arith.constant 0 : index
    %c0_4 = arith.constant 0 : index
    %2 = vector.load %arg2[%c0_2, %c0_3, %c0_4] : memref<9x32x8xbf16, #tpu.memory_space<vmem>>, vector<1x32x8xbf16>
    %3 = vector.shape_cast %2 : vector<1x32x8xbf16> to vector<32x8xbf16>
    %cst = arith.constant dense<0.000000e+00> : vector<32x72xf32>
    %4 = tpu.matmul %3, %1, %cst {dimension_numbers = #tpu.dot_dimension_numbers<[1], [0], [0], [1], [0, 0, 1, 1], [], []>} : vector<32x8xbf16>, vector<8x72xbf16>, vector<32x72xf32> -> vector<32x72xf32>
    %c0_5 = arith.constant 0 : index
    %c8 = arith.constant 8 : index
    %c0_6 = arith.constant 0 : index
    %5 = vector.load %arg1[%c0_5, %c8, %c0_6] : memref<1x32x90xbf16, #tpu.memory_space<vmem>>, vector<1x8x72xbf16>
    %6 = vector.shape_cast %5 : vector<1x8x72xbf16> to vector<8x72xbf16>
    %c1 = arith.constant 1 : index
    %c0_7 = arith.constant 0 : index
    %c0_8 = arith.constant 0 : index
    %7 = vector.load %arg2[%c1, %c0_7, %c0_8] : memref<9x32x8xbf16, #tpu.memory_space<vmem>>, vector<1x32x8xbf16>
    %8 = vector.shape_cast %7 : vector<1x32x8xbf16> to vector<32x8xbf16>
    %cst_9 = arith.constant dense<0.000000e+00> : vector<32x72xf32>
    %9 = tpu.matmul %8, %6, %cst_9 {dimension_numbers = #tpu.dot_dimension_numbers<[1], [0], [0], [1], [0, 0, 1, 1], [], []>} : vector<32x8xbf16>, vector<8x72xbf16>, vector<32x72xf32> -> vector<32x72xf32>
    %10 = arith.addf %4, %9 : vector<32x72xf32>
    %c0_10 = arith.constant 0 : index
    %c0_11 = arith.constant 0 : index
    %c1_12 = arith.constant 1 : index
    %11 = vector.load %arg1[%c0_10, %c0_11, %c1_12] : memref<1x32x90xbf16, #tpu.memory_space<vmem>>, vector<1x8x72xbf16>
    %12 = vector.shape_cast %11 : vector<1x8x72xbf16> to vector<8x72xbf16>
    %c2 = arith.constant 2 : index
    %c0_13 = arith.constant 0 : index
    %c0_14 = arith.constant 0 : index
    %13 = vector.load %arg2[%c2, %c0_13, %c0_14] : memref<9x32x8xbf16, #tpu.memory_space<vmem>>, vector<1x32x8xbf16>
    %14 = vector.shape_cast %13 : vector<1x32x8xbf16> to vector<32x8xbf16>
    %cst_15 = arith.constant dense<0.000000e+00> : vector<32x72xf32>
    %15 = tpu.matmul %14, %12, %cst_15 {dimension_numbers = #tpu.dot_dimension_numbers<[1], [0], [0], [1], [0, 0, 1, 1], [], []>} : vector<32x8xbf16>, vector<8x72xbf16>, vector<32x72xf32> -> vector<32x72xf32>
    %16 = arith.addf %10, %15 : vector<32x72xf32>
    %c0_16 = arith.constant 0 : index
    %c16 = arith.constant 16 : index
    %c0_17 = arith.constant 0 : index
    %17 = vector.load %arg1[%c0_16, %c16, %c0_17] : memref<1x32x90xbf16, #tpu.memory_space<vmem>>, vector<1x8x72xbf16>
    %18 = vector.shape_cast %17 : vector<1x8x72xbf16> to vector<8x72xbf16>
    %c3 = arith.constant 3 : index
    %c0_18 = arith.constant 0 : index
    %c0_19 = arith.constant 0 : index
    %19 = vector.load %arg2[%c3, %c0_18, %c0_19] : memref<9x32x8xbf16, #tpu.memory_space<vmem>>, vector<1x32x8xbf16>
    %20 = vector.shape_cast %19 : vector<1x32x8xbf16> to vector<32x8xbf16>
    %cst_20 = arith.constant dense<0.000000e+00> : vector<32x72xf32>
    %21 = tpu.matmul %20, %18, %cst_20 {dimension_numbers = #tpu.dot_dimension_numbers<[1], [0], [0], [1], [0, 0, 1, 1], [], []>} : vector<32x8xbf16>, vector<8x72xbf16>, vector<32x72xf32> -> vector<32x72xf32>
    %22 = arith.addf %16, %21 : vector<32x72xf32>
    %c0_21 = arith.constant 0 : index
    %c24 = arith.constant 24 : index
    %c0_22 = arith.constant 0 : index
    %23 = vector.load %arg1[%c0_21, %c24, %c0_22] : memref<1x32x90xbf16, #tpu.memory_space<vmem>>, vector<1x8x72xbf16>
    %24 = vector.shape_cast %23 : vector<1x8x72xbf16> to vector<8x72xbf16>
    %c4 = arith.constant 4 : index
    %c0_23 = arith.constant 0 : index
    %c0_24 = arith.constant 0 : index
    %25 = vector.load %arg2[%c4, %c0_23, %c0_24] : memref<9x32x8xbf16, #tpu.memory_space<vmem>>, vector<1x32x8xbf16>
    %26 = vector.shape_cast %25 : vector<1x32x8xbf16> to vector<32x8xbf16>
    %cst_25 = arith.constant dense<0.000000e+00> : vector<32x72xf32>
    %27 = tpu.matmul %26, %24, %cst_25 {dimension_numbers = #tpu.dot_dimension_numbers<[1], [0], [0], [1], [0, 0, 1, 1], [], []>} : vector<32x8xbf16>, vector<8x72xbf16>, vector<32x72xf32> -> vector<32x72xf32>
    %28 = arith.addf %22, %27 : vector<32x72xf32>
    %c0_26 = arith.constant 0 : index
    %c16_27 = arith.constant 16 : index
    %c1_28 = arith.constant 1 : index
    %29 = vector.load %arg1[%c0_26, %c16_27, %c1_28] : memref<1x32x90xbf16, #tpu.memory_space<vmem>>, vector<1x8x72xbf16>
    %30 = vector.shape_cast %29 : vector<1x8x72xbf16> to vector<8x72xbf16>
    %c5 = arith.constant 5 : index
    %c0_29 = arith.constant 0 : index
    %c0_30 = arith.constant 0 : index
    %31 = vector.load %arg2[%c5, %c0_29, %c0_30] : memref<9x32x8xbf16, #tpu.memory_space<vmem>>, vector<1x32x8xbf16>
    %32 = vector.shape_cast %31 : vector<1x32x8xbf16> to vector<32x8xbf16>
    %cst_31 = arith.constant dense<0.000000e+00> : vector<32x72xf32>
    %33 = tpu.matmul %32, %30, %cst_31 {dimension_numbers = #tpu.dot_dimension_numbers<[1], [0], [0], [1], [0, 0, 1, 1], [], []>} : vector<32x8xbf16>, vector<8x72xbf16>, vector<32x72xf32> -> vector<32x72xf32>
    %34 = arith.addf %28, %33 : vector<32x72xf32>
    %c0_32 = arith.constant 0 : index
    %c0_33 = arith.constant 0 : index
    %c9 = arith.constant 9 : index
    %35 = vector.load %arg1[%c0_32, %c0_33, %c9] : memref<1x32x90xbf16, #tpu.memory_space<vmem>>, vector<1x8x72xbf16>
    %36 = vector.shape_cast %35 : vector<1x8x72xbf16> to vector<8x72xbf16>
    %c6 = arith.constant 6 : index
    %c0_34 = arith.constant 0 : index
    %c0_35 = arith.constant 0 : index
    %37 = vector.load %arg2[%c6, %c0_34, %c0_35] : memref<9x32x8xbf16, #tpu.memory_space<vmem>>, vector<1x32x8xbf16>
    %38 = vector.shape_cast %37 : vector<1x32x8xbf16> to vector<32x8xbf16>
    %cst_36 = arith.constant dense<0.000000e+00> : vector<32x72xf32>
    %39 = tpu.matmul %38, %36, %cst_36 {dimension_numbers = #tpu.dot_dimension_numbers<[1], [0], [0], [1], [0, 0, 1, 1], [], []>} : vector<32x8xbf16>, vector<8x72xbf16>, vector<32x72xf32> -> vector<32x72xf32>
    %40 = arith.addf %34, %39 : vector<32x72xf32>
    %c0_37 = arith.constant 0 : index
    %c8_38 = arith.constant 8 : index
    %c9_39 = arith.constant 9 : index
    %41 = vector.load %arg1[%c0_37, %c8_38, %c9_39] : memref<1x32x90xbf16, #tpu.memory_space<vmem>>, vector<1x8x72xbf16>
    %42 = vector.shape_cast %41 : vector<1x8x72xbf16> to vector<8x72xbf16>
    %c7 = arith.constant 7 : index
    %c0_40 = arith.constant 0 : index
    %c0_41 = arith.constant 0 : index
    %43 = vector.load %arg2[%c7, %c0_40, %c0_41] : memref<9x32x8xbf16, #tpu.memory_space<vmem>>, vector<1x32x8xbf16>
    %44 = vector.shape_cast %43 : vector<1x32x8xbf16> to vector<32x8xbf16>
    %cst_42 = arith.constant dense<0.000000e+00> : vector<32x72xf32>
    %45 = tpu.matmul %44, %42, %cst_42 {dimension_numbers = #tpu.dot_dimension_numbers<[1], [0], [0], [1], [0, 0, 1, 1], [], []>} : vector<32x8xbf16>, vector<8x72xbf16>, vector<32x72xf32> -> vector<32x72xf32>
    %46 = arith.addf %40, %45 : vector<32x72xf32>
    %c0_43 = arith.constant 0 : index
    %c0_44 = arith.constant 0 : index
    %c10 = arith.constant 10 : index
    %47 = vector.load %arg1[%c0_43, %c0_44, %c10] : memref<1x32x90xbf16, #tpu.memory_space<vmem>>, vector<1x8x72xbf16>
    %48 = vector.shape_cast %47 : vector<1x8x72xbf16> to vector<8x72xbf16>
    %c8_45 = arith.constant 8 : index
    %c0_46 = arith.constant 0 : index
    %c0_47 = arith.constant 0 : index
    %49 = vector.load %arg2[%c8_45, %c0_46, %c0_47] : memref<9x32x8xbf16, #tpu.memory_space<vmem>>, vector<1x32x8xbf16>
    %50 = vector.shape_cast %49 : vector<1x32x8xbf16> to vector<32x8xbf16>
    %cst_48 = arith.constant dense<0.000000e+00> : vector<32x72xf32>
    %51 = tpu.matmul %50, %48, %cst_48 {dimension_numbers = #tpu.dot_dimension_numbers<[1], [0], [0], [1], [0, 0, 1, 1], [], []>} : vector<32x8xbf16>, vector<8x72xbf16>, vector<32x72xf32> -> vector<32x72xf32>
    %52 = arith.addf %46, %51 : vector<32x72xf32>
    %c0_49 = arith.constant 0 : index
    %c8_50 = arith.constant 8 : index
    %c0_51 = arith.constant 0 : index
    %53 = vector.load %arg1[%c0_49, %c8_50, %c0_51] : memref<1x32x90xbf16, #tpu.memory_space<vmem>>, vector<1x8x72xbf16>
    %54 = vector.shape_cast %53 : vector<1x8x72xbf16> to vector<8x72xbf16>
    %c0_52 = arith.constant 0 : index
    %c0_53 = arith.constant 0 : index
    %c0_54 = arith.constant 0 : index
    %55 = vector.load %arg2[%c0_52, %c0_53, %c0_54] : memref<9x32x8xbf16, #tpu.memory_space<vmem>>, vector<1x32x8xbf16>
    %56 = vector.shape_cast %55 : vector<1x32x8xbf16> to vector<32x8xbf16>
    %cst_55 = arith.constant dense<0.000000e+00> : vector<32x72xf32>
    %57 = tpu.matmul %56, %54, %cst_55 {dimension_numbers = #tpu.dot_dimension_numbers<[1], [0], [0], [1], [0, 0, 1, 1], [], []>} : vector<32x8xbf16>, vector<8x72xbf16>, vector<32x72xf32> -> vector<32x72xf32>
    %c0_56 = arith.constant 0 : index
    %c0_57 = arith.constant 0 : index
    %c1_58 = arith.constant 1 : index
    %58 = vector.load %arg1[%c0_56, %c0_57, %c1_58] : memref<1x32x90xbf16, #tpu.memory_space<vmem>>, vector<1x8x72xbf16>
    %59 = vector.shape_cast %58 : vector<1x8x72xbf16> to vector<8x72xbf16>
    %c1_59 = arith.constant 1 : index
    %c0_60 = arith.constant 0 : index
    %c0_61 = arith.constant 0 : index
    %60 = vector.load %arg2[%c1_59, %c0_60, %c0_61] : memref<9x32x8xbf16, #tpu.memory_space<vmem>>, vector<1x32x8xbf16>
    %61 = vector.shape_cast %60 : vector<1x32x8xbf16> to vector<32x8xbf16>
    %cst_62 = arith.constant dense<0.000000e+00> : vector<32x72xf32>
    %62 = tpu.matmul %61, %59, %cst_62 {dimension_numbers = #tpu.dot_dimension_numbers<[1], [0], [0], [1], [0, 0, 1, 1], [], []>} : vector<32x8xbf16>, vector<8x72xbf16>, vector<32x72xf32> -> vector<32x72xf32>
    %63 = arith.addf %57, %62 : vector<32x72xf32>
    %c0_63 = arith.constant 0 : index
    %c8_64 = arith.constant 8 : index
    %c1_65 = arith.constant 1 : index
    %64 = vector.load %arg1[%c0_63, %c8_64, %c1_65] : memref<1x32x90xbf16, #tpu.memory_space<vmem>>, vector<1x8x72xbf16>
    %65 = vector.shape_cast %64 : vector<1x8x72xbf16> to vector<8x72xbf16>
    %c2_66 = arith.constant 2 : index
    %c0_67 = arith.constant 0 : index
    %c0_68 = arith.constant 0 : index
    %66 = vector.load %arg2[%c2_66, %c0_67, %c0_68] : memref<9x32x8xbf16, #tpu.memory_space<vmem>>, vector<1x32x8xbf16>
    %67 = vector.shape_cast %66 : vector<1x32x8xbf16> to vector<32x8xbf16>
    %cst_69 = arith.constant dense<0.000000e+00> : vector<32x72xf32>
    %68 = tpu.matmul %67, %65, %cst_69 {dimension_numbers = #tpu.dot_dimension_numbers<[1], [0], [0], [1], [0, 0, 1, 1], [], []>} : vector<32x8xbf16>, vector<8x72xbf16>, vector<32x72xf32> -> vector<32x72xf32>
    %69 = arith.addf %63, %68 : vector<32x72xf32>
    %c0_70 = arith.constant 0 : index
    %c24_71 = arith.constant 24 : index
    %c0_72 = arith.constant 0 : index
    %70 = vector.load %arg1[%c0_70, %c24_71, %c0_72] : memref<1x32x90xbf16, #tpu.memory_space<vmem>>, vector<1x8x72xbf16>
    %71 = vector.shape_cast %70 : vector<1x8x72xbf16> to vector<8x72xbf16>
    %c3_73 = arith.constant 3 : index
    %c0_74 = arith.constant 0 : index
    %c0_75 = arith.constant 0 : index
    %72 = vector.load %arg2[%c3_73, %c0_74, %c0_75] : memref<9x32x8xbf16, #tpu.memory_space<vmem>>, vector<1x32x8xbf16>
    %73 = vector.shape_cast %72 : vector<1x32x8xbf16> to vector<32x8xbf16>
    %cst_76 = arith.constant dense<0.000000e+00> : vector<32x72xf32>
    %74 = tpu.matmul %73, %71, %cst_76 {dimension_numbers = #tpu.dot_dimension_numbers<[1], [0], [0], [1], [0, 0, 1, 1], [], []>} : vector<32x8xbf16>, vector<8x72xbf16>, vector<32x72xf32> -> vector<32x72xf32>
    %75 = arith.addf %69, %74 : vector<32x72xf32>
    %c0_77 = arith.constant 0 : index
    %c16_78 = arith.constant 16 : index
    %c1_79 = arith.constant 1 : index
    %76 = vector.load %arg1[%c0_77, %c16_78, %c1_79] : memref<1x32x90xbf16, #tpu.memory_space<vmem>>, vector<1x8x72xbf16>
    %77 = vector.shape_cast %76 : vector<1x8x72xbf16> to vector<8x72xbf16>
    %c4_80 = arith.constant 4 : index
    %c0_81 = arith.constant 0 : index
    %c0_82 = arith.constant 0 : index
    %78 = vector.load %arg2[%c4_80, %c0_81, %c0_82] : memref<9x32x8xbf16, #tpu.memory_space<vmem>>, vector<1x32x8xbf16>
    %79 = vector.shape_cast %78 : vector<1x32x8xbf16> to vector<32x8xbf16>
    %cst_83 = arith.constant dense<0.000000e+00> : vector<32x72xf32>
    %80 = tpu.matmul %79, %77, %cst_83 {dimension_numbers = #tpu.dot_dimension_numbers<[1], [0], [0], [1], [0, 0, 1, 1], [], []>} : vector<32x8xbf16>, vector<8x72xbf16>, vector<32x72xf32> -> vector<32x72xf32>
    %81 = arith.addf %75, %80 : vector<32x72xf32>
    %c0_84 = arith.constant 0 : index
    %c24_85 = arith.constant 24 : index
    %c1_86 = arith.constant 1 : index
    %82 = vector.load %arg1[%c0_84, %c24_85, %c1_86] : memref<1x32x90xbf16, #tpu.memory_space<vmem>>, vector<1x8x72xbf16>
    %83 = vector.shape_cast %82 : vector<1x8x72xbf16> to vector<8x72xbf16>
    %c5_87 = arith.constant 5 : index
    %c0_88 = arith.constant 0 : index
    %c0_89 = arith.constant 0 : index
    %84 = vector.load %arg2[%c5_87, %c0_88, %c0_89] : memref<9x32x8xbf16, #tpu.memory_space<vmem>>, vector<1x32x8xbf16>
    %85 = vector.shape_cast %84 : vector<1x32x8xbf16> to vector<32x8xbf16>
    %cst_90 = arith.constant dense<0.000000e+00> : vector<32x72xf32>
    %86 = tpu.matmul %85, %83, %cst_90 {dimension_numbers = #tpu.dot_dimension_numbers<[1], [0], [0], [1], [0, 0, 1, 1], [], []>} : vector<32x8xbf16>, vector<8x72xbf16>, vector<32x72xf32> -> vector<32x72xf32>
    %87 = arith.addf %81, %86 : vector<32x72xf32>
    %c0_91 = arith.constant 0 : index
    %c8_92 = arith.constant 8 : index
    %c9_93 = arith.constant 9 : index
    %88 = vector.load %arg1[%c0_91, %c8_92, %c9_93] : memref<1x32x90xbf16, #tpu.memory_space<vmem>>, vector<1x8x72xbf16>
    %89 = vector.shape_cast %88 : vector<1x8x72xbf16> to vector<8x72xbf16>
    %c6_94 = arith.constant 6 : index
    %c0_95 = arith.constant 0 : index
    %c0_96 = arith.constant 0 : index
    %90 = vector.load %arg2[%c6_94, %c0_95, %c0_96] : memref<9x32x8xbf16, #tpu.memory_space<vmem>>, vector<1x32x8xbf16>
    %91 = vector.shape_cast %90 : vector<1x32x8xbf16> to vector<32x8xbf16>
    %cst_97 = arith.constant dense<0.000000e+00> : vector<32x72xf32>
    %92 = tpu.matmul %91, %89, %cst_97 {dimension_numbers = #tpu.dot_dimension_numbers<[1], [0], [0], [1], [0, 0, 1, 1], [], []>} : vector<32x8xbf16>, vector<8x72xbf16>, vector<32x72xf32> -> vector<32x72xf32>
    %93 = arith.addf %87, %92 : vector<32x72xf32>
    %c0_98 = arith.constant 0 : index
    %c0_99 = arith.constant 0 : index
    %c10_100 = arith.constant 10 : index
    %94 = vector.load %arg1[%c0_98, %c0_99, %c10_100] : memref<1x32x90xbf16, #tpu.memory_space<vmem>>, vector<1x8x72xbf16>
    %95 = vector.shape_cast %94 : vector<1x8x72xbf16> to vector<8x72xbf16>
    %c7_101 = arith.constant 7 : index
    %c0_102 = arith.constant 0 : index
    %c0_103 = arith.constant 0 : index
    %96 = vector.load %arg2[%c7_101, %c0_102, %c0_103] : memref<9x32x8xbf16, #tpu.memory_space<vmem>>, vector<1x32x8xbf16>
    %97 = vector.shape_cast %96 : vector<1x32x8xbf16> to vector<32x8xbf16>
    %cst_104 = arith.constant dense<0.000000e+00> : vector<32x72xf32>
    %98 = tpu.matmul %97, %95, %cst_104 {dimension_numbers = #tpu.dot_dimension_numbers<[1], [0], [0], [1], [0, 0, 1, 1], [], []>} : vector<32x8xbf16>, vector<8x72xbf16>, vector<32x72xf32> -> vector<32x72xf32>
    %99 = arith.addf %93, %98 : vector<32x72xf32>
    %c0_105 = arith.constant 0 : index
    %c8_106 = arith.constant 8 : index
    %c10_107 = arith.constant 10 : index
    %100 = vector.load %arg1[%c0_105, %c8_106, %c10_107] : memref<1x32x90xbf16, #tpu.memory_space<vmem>>, vector<1x8x72xbf16>
    %101 = vector.shape_cast %100 : vector<1x8x72xbf16> to vector<8x72xbf16>
    %c8_108 = arith.constant 8 : index
    %c0_109 = arith.constant 0 : index
    %c0_110 = arith.constant 0 : index
    %102 = vector.load %arg2[%c8_108, %c0_109, %c0_110] : memref<9x32x8xbf16, #tpu.memory_space<vmem>>, vector<1x32x8xbf16>
    %103 = vector.shape_cast %102 : vector<1x32x8xbf16> to vector<32x8xbf16>
    %cst_111 = arith.constant dense<0.000000e+00> : vector<32x72xf32>
    %104 = tpu.matmul %103, %101, %cst_111 {dimension_numbers = #tpu.dot_dimension_numbers<[1], [0], [0], [1], [0, 0, 1, 1], [], []>} : vector<32x8xbf16>, vector<8x72xbf16>, vector<32x72xf32> -> vector<32x72xf32>
    %105 = arith.addf %99, %104 : vector<32x72xf32>
    %106 = arith.maximumf %52, %105 : vector<32x72xf32>
    %c0_112 = arith.constant 0 : index
    %c16_113 = arith.constant 16 : index
    %c0_114 = arith.constant 0 : index
    %107 = vector.load %arg1[%c0_112, %c16_113, %c0_114] : memref<1x32x90xbf16, #tpu.memory_space<vmem>>, vector<1x8x72xbf16>
    %108 = vector.shape_cast %107 : vector<1x8x72xbf16> to vector<8x72xbf16>
    %c0_115 = arith.constant 0 : index
    %c0_116 = arith.constant 0 : index
    %c0_117 = arith.constant 0 : index
    %109 = vector.load %arg2[%c0_115, %c0_116, %c0_117] : memref<9x32x8xbf16, #tpu.memory_space<vmem>>, vector<1x32x8xbf16>
    %110 = vector.shape_cast %109 : vector<1x32x8xbf16> to vector<32x8xbf16>
    %cst_118 = arith.constant dense<0.000000e+00> : vector<32x72xf32>
    %111 = tpu.matmul %110, %108, %cst_118 {dimension_numbers = #tpu.dot_dimension_numbers<[1], [0], [0], [1], [0, 0, 1, 1], [], []>} : vector<32x8xbf16>, vector<8x72xbf16>, vector<32x72xf32> -> vector<32x72xf32>
    %c0_119 = arith.constant 0 : index
    %c24_120 = arith.constant 24 : index
    %c0_121 = arith.constant 0 : index
    %112 = vector.load %arg1[%c0_119, %c24_120, %c0_121] : memref<1x32x90xbf16, #tpu.memory_space<vmem>>, vector<1x8x72xbf16>
    %113 = vector.shape_cast %112 : vector<1x8x72xbf16> to vector<8x72xbf16>
    %c1_122 = arith.constant 1 : index
    %c0_123 = arith.constant 0 : index
    %c0_124 = arith.constant 0 : index
    %114 = vector.load %arg2[%c1_122, %c0_123, %c0_124] : memref<9x32x8xbf16, #tpu.memory_space<vmem>>, vector<1x32x8xbf16>
    %115 = vector.shape_cast %114 : vector<1x32x8xbf16> to vector<32x8xbf16>
    %cst_125 = arith.constant dense<0.000000e+00> : vector<32x72xf32>
    %116 = tpu.matmul %115, %113, %cst_125 {dimension_numbers = #tpu.dot_dimension_numbers<[1], [0], [0], [1], [0, 0, 1, 1], [], []>} : vector<32x8xbf16>, vector<8x72xbf16>, vector<32x72xf32> -> vector<32x72xf32>
    %117 = arith.addf %111, %116 : vector<32x72xf32>
    %c0_126 = arith.constant 0 : index
    %c16_127 = arith.constant 16 : index
    %c1_128 = arith.constant 1 : index
    %118 = vector.load %arg1[%c0_126, %c16_127, %c1_128] : memref<1x32x90xbf16, #tpu.memory_space<vmem>>, vector<1x8x72xbf16>
    %119 = vector.shape_cast %118 : vector<1x8x72xbf16> to vector<8x72xbf16>
    %c2_129 = arith.constant 2 : index
    %c0_130 = arith.constant 0 : index
    %c0_131 = arith.constant 0 : index
    %120 = vector.load %arg2[%c2_129, %c0_130, %c0_131] : memref<9x32x8xbf16, #tpu.memory_space<vmem>>, vector<1x32x8xbf16>
    %121 = vector.shape_cast %120 : vector<1x32x8xbf16> to vector<32x8xbf16>
    %cst_132 = arith.constant dense<0.000000e+00> : vector<32x72xf32>
    %122 = tpu.matmul %121, %119, %cst_132 {dimension_numbers = #tpu.dot_dimension_numbers<[1], [0], [0], [1], [0, 0, 1, 1], [], []>} : vector<32x8xbf16>, vector<8x72xbf16>, vector<32x72xf32> -> vector<32x72xf32>
    %123 = arith.addf %117, %122 : vector<32x72xf32>
    %c0_133 = arith.constant 0 : index
    %c0_134 = arith.constant 0 : index
    %c9_135 = arith.constant 9 : index
    %124 = vector.load %arg1[%c0_133, %c0_134, %c9_135] : memref<1x32x90xbf16, #tpu.memory_space<vmem>>, vector<1x8x72xbf16>
    %125 = vector.shape_cast %124 : vector<1x8x72xbf16> to vector<8x72xbf16>
    %c3_136 = arith.constant 3 : index
    %c0_137 = arith.constant 0 : index
    %c0_138 = arith.constant 0 : index
    %126 = vector.load %arg2[%c3_136, %c0_137, %c0_138] : memref<9x32x8xbf16, #tpu.memory_space<vmem>>, vector<1x32x8xbf16>
    %127 = vector.shape_cast %126 : vector<1x32x8xbf16> to vector<32x8xbf16>
    %cst_139 = arith.constant dense<0.000000e+00> : vector<32x72xf32>
    %128 = tpu.matmul %127, %125, %cst_139 {dimension_numbers = #tpu.dot_dimension_numbers<[1], [0], [0], [1], [0, 0, 1, 1], [], []>} : vector<32x8xbf16>, vector<8x72xbf16>, vector<32x72xf32> -> vector<32x72xf32>
    %129 = arith.addf %123, %128 : vector<32x72xf32>
    %c0_140 = arith.constant 0 : index
    %c8_141 = arith.constant 8 : index
    %c9_142 = arith.constant 9 : index
    %130 = vector.load %arg1[%c0_140, %c8_141, %c9_142] : memref<1x32x90xbf16, #tpu.memory_space<vmem>>, vector<1x8x72xbf16>
    %131 = vector.shape_cast %130 : vector<1x8x72xbf16> to vector<8x72xbf16>
    %c4_143 = arith.constant 4 : index
    %c0_144 = arith.constant 0 : index
    %c0_145 = arith.constant 0 : index
    %132 = vector.load %arg2[%c4_143, %c0_144, %c0_145] : memref<9x32x8xbf16, #tpu.memory_space<vmem>>, vector<1x32x8xbf16>
    %133 = vector.shape_cast %132 : vector<1x32x8xbf16> to vector<32x8xbf16>
    %cst_146 = arith.constant dense<0.000000e+00> : vector<32x72xf32>
    %134 = tpu.matmul %133, %131, %cst_146 {dimension_numbers = #tpu.dot_dimension_numbers<[1], [0], [0], [1], [0, 0, 1, 1], [], []>} : vector<32x8xbf16>, vector<8x72xbf16>, vector<32x72xf32> -> vector<32x72xf32>
    %135 = arith.addf %129, %134 : vector<32x72xf32>
    %c0_147 = arith.constant 0 : index
    %c0_148 = arith.constant 0 : index
    %c10_149 = arith.constant 10 : index
    %136 = vector.load %arg1[%c0_147, %c0_148, %c10_149] : memref<1x32x90xbf16, #tpu.memory_space<vmem>>, vector<1x8x72xbf16>
    %137 = vector.shape_cast %136 : vector<1x8x72xbf16> to vector<8x72xbf16>
    %c5_150 = arith.constant 5 : index
    %c0_151 = arith.constant 0 : index
    %c0_152 = arith.constant 0 : index
    %138 = vector.load %arg2[%c5_150, %c0_151, %c0_152] : memref<9x32x8xbf16, #tpu.memory_space<vmem>>, vector<1x32x8xbf16>
    %139 = vector.shape_cast %138 : vector<1x32x8xbf16> to vector<32x8xbf16>
    %cst_153 = arith.constant dense<0.000000e+00> : vector<32x72xf32>
    %140 = tpu.matmul %139, %137, %cst_153 {dimension_numbers = #tpu.dot_dimension_numbers<[1], [0], [0], [1], [0, 0, 1, 1], [], []>} : vector<32x8xbf16>, vector<8x72xbf16>, vector<32x72xf32> -> vector<32x72xf32>
    %141 = arith.addf %135, %140 : vector<32x72xf32>
    %c0_154 = arith.constant 0 : index
    %c16_155 = arith.constant 16 : index
    %c9_156 = arith.constant 9 : index
    %142 = vector.load %arg1[%c0_154, %c16_155, %c9_156] : memref<1x32x90xbf16, #tpu.memory_space<vmem>>, vector<1x8x72xbf16>
    %143 = vector.shape_cast %142 : vector<1x8x72xbf16> to vector<8x72xbf16>
    %c6_157 = arith.constant 6 : index
    %c0_158 = arith.constant 0 : index
    %c0_159 = arith.constant 0 : index
    %144 = vector.load %arg2[%c6_157, %c0_158, %c0_159] : memref<9x32x8xbf16, #tpu.memory_space<vmem>>, vector<1x32x8xbf16>
    %145 = vector.shape_cast %144 : vector<1x32x8xbf16> to vector<32x8xbf16>
    %cst_160 = arith.constant dense<0.000000e+00> : vector<32x72xf32>
    %146 = tpu.matmul %145, %143, %cst_160 {dimension_numbers = #tpu.dot_dimension_numbers<[1], [0], [0], [1], [0, 0, 1, 1], [], []>} : vector<32x8xbf16>, vector<8x72xbf16>, vector<32x72xf32> -> vector<32x72xf32>
    %147 = arith.addf %141, %146 : vector<32x72xf32>
    %c0_161 = arith.constant 0 : index
    %c24_162 = arith.constant 24 : index
    %c9_163 = arith.constant 9 : index
    %148 = vector.load %arg1[%c0_161, %c24_162, %c9_163] : memref<1x32x90xbf16, #tpu.memory_space<vmem>>, vector<1x8x72xbf16>
    %149 = vector.shape_cast %148 : vector<1x8x72xbf16> to vector<8x72xbf16>
    %c7_164 = arith.constant 7 : index
    %c0_165 = arith.constant 0 : index
    %c0_166 = arith.constant 0 : index
    %150 = vector.load %arg2[%c7_164, %c0_165, %c0_166] : memref<9x32x8xbf16, #tpu.memory_space<vmem>>, vector<1x32x8xbf16>
    %151 = vector.shape_cast %150 : vector<1x32x8xbf16> to vector<32x8xbf16>
    %cst_167 = arith.constant dense<0.000000e+00> : vector<32x72xf32>
    %152 = tpu.matmul %151, %149, %cst_167 {dimension_numbers = #tpu.dot_dimension_numbers<[1], [0], [0], [1], [0, 0, 1, 1], [], []>} : vector<32x8xbf16>, vector<8x72xbf16>, vector<32x72xf32> -> vector<32x72xf32>
    %153 = arith.addf %147, %152 : vector<32x72xf32>
    %c0_168 = arith.constant 0 : index
    %c16_169 = arith.constant 16 : index
    %c10_170 = arith.constant 10 : index
    %154 = vector.load %arg1[%c0_168, %c16_169, %c10_170] : memref<1x32x90xbf16, #tpu.memory_space<vmem>>, vector<1x8x72xbf16>
    %155 = vector.shape_cast %154 : vector<1x8x72xbf16> to vector<8x72xbf16>
    %c8_171 = arith.constant 8 : index
    %c0_172 = arith.constant 0 : index
    %c0_173 = arith.constant 0 : index
    %156 = vector.load %arg2[%c8_171, %c0_172, %c0_173] : memref<9x32x8xbf16, #tpu.memory_space<vmem>>, vector<1x32x8xbf16>
    %157 = vector.shape_cast %156 : vector<1x32x8xbf16> to vector<32x8xbf16>
    %cst_174 = arith.constant dense<0.000000e+00> : vector<32x72xf32>
    %158 = tpu.matmul %157, %155, %cst_174 {dimension_numbers = #tpu.dot_dimension_numbers<[1], [0], [0], [1], [0, 0, 1, 1], [], []>} : vector<32x8xbf16>, vector<8x72xbf16>, vector<32x72xf32> -> vector<32x72xf32>
    %159 = arith.addf %153, %158 : vector<32x72xf32>
    %160 = arith.maximumf %106, %159 : vector<32x72xf32>
    %c0_175 = arith.constant 0 : index
    %c24_176 = arith.constant 24 : index
    %c0_177 = arith.constant 0 : index
    %161 = vector.load %arg1[%c0_175, %c24_176, %c0_177] : memref<1x32x90xbf16, #tpu.memory_space<vmem>>, vector<1x8x72xbf16>
    %162 = vector.shape_cast %161 : vector<1x8x72xbf16> to vector<8x72xbf16>
    %c0_178 = arith.constant 0 : index
    %c0_179 = arith.constant 0 : index
    %c0_180 = arith.constant 0 : index
    %163 = vector.load %arg2[%c0_178, %c0_179, %c0_180] : memref<9x32x8xbf16, #tpu.memory_space<vmem>>, vector<1x32x8xbf16>
    %164 = vector.shape_cast %163 : vector<1x32x8xbf16> to vector<32x8xbf16>
    %cst_181 = arith.constant dense<0.000000e+00> : vector<32x72xf32>
    %165 = tpu.matmul %164, %162, %cst_181 {dimension_numbers = #tpu.dot_dimension_numbers<[1], [0], [0], [1], [0, 0, 1, 1], [], []>} : vector<32x8xbf16>, vector<8x72xbf16>, vector<32x72xf32> -> vector<32x72xf32>
    %c0_182 = arith.constant 0 : index
    %c16_183 = arith.constant 16 : index
    %c1_184 = arith.constant 1 : index
    %166 = vector.load %arg1[%c0_182, %c16_183, %c1_184] : memref<1x32x90xbf16, #tpu.memory_space<vmem>>, vector<1x8x72xbf16>
    %167 = vector.shape_cast %166 : vector<1x8x72xbf16> to vector<8x72xbf16>
    %c1_185 = arith.constant 1 : index
    %c0_186 = arith.constant 0 : index
    %c0_187 = arith.constant 0 : index
    %168 = vector.load %arg2[%c1_185, %c0_186, %c0_187] : memref<9x32x8xbf16, #tpu.memory_space<vmem>>, vector<1x32x8xbf16>
    %169 = vector.shape_cast %168 : vector<1x32x8xbf16> to vector<32x8xbf16>
    %cst_188 = arith.constant dense<0.000000e+00> : vector<32x72xf32>
    %170 = tpu.matmul %169, %167, %cst_188 {dimension_numbers = #tpu.dot_dimension_numbers<[1], [0], [0], [1], [0, 0, 1, 1], [], []>} : vector<32x8xbf16>, vector<8x72xbf16>, vector<32x72xf32> -> vector<32x72xf32>
    %171 = arith.addf %165, %170 : vector<32x72xf32>
    %c0_189 = arith.constant 0 : index
    %c24_190 = arith.constant 24 : index
    %c1_191 = arith.constant 1 : index
    %172 = vector.load %arg1[%c0_189, %c24_190, %c1_191] : memref<1x32x90xbf16, #tpu.memory_space<vmem>>, vector<1x8x72xbf16>
    %173 = vector.shape_cast %172 : vector<1x8x72xbf16> to vector<8x72xbf16>
    %c2_192 = arith.constant 2 : index
    %c0_193 = arith.constant 0 : index
    %c0_194 = arith.constant 0 : index
    %174 = vector.load %arg2[%c2_192, %c0_193, %c0_194] : memref<9x32x8xbf16, #tpu.memory_space<vmem>>, vector<1x32x8xbf16>
    %175 = vector.shape_cast %174 : vector<1x32x8xbf16> to vector<32x8xbf16>
    %cst_195 = arith.constant dense<0.000000e+00> : vector<32x72xf32>
    %176 = tpu.matmul %175, %173, %cst_195 {dimension_numbers = #tpu.dot_dimension_numbers<[1], [0], [0], [1], [0, 0, 1, 1], [], []>} : vector<32x8xbf16>, vector<8x72xbf16>, vector<32x72xf32> -> vector<32x72xf32>
    %177 = arith.addf %171, %176 : vector<32x72xf32>
    %c0_196 = arith.constant 0 : index
    %c8_197 = arith.constant 8 : index
    %c9_198 = arith.constant 9 : index
    %178 = vector.load %arg1[%c0_196, %c8_197, %c9_198] : memref<1x32x90xbf16, #tpu.memory_space<vmem>>, vector<1x8x72xbf16>
    %179 = vector.shape_cast %178 : vector<1x8x72xbf16> to vector<8x72xbf16>
    %c3_199 = arith.constant 3 : index
    %c0_200 = arith.constant 0 : index
    %c0_201 = arith.constant 0 : index
    %180 = vector.load %arg2[%c3_199, %c0_200, %c0_201] : memref<9x32x8xbf16, #tpu.memory_space<vmem>>, vector<1x32x8xbf16>
    %181 = vector.shape_cast %180 : vector<1x32x8xbf16> to vector<32x8xbf16>
    %cst_202 = arith.constant dense<0.000000e+00> : vector<32x72xf32>
    %182 = tpu.matmul %181, %179, %cst_202 {dimension_numbers = #tpu.dot_dimension_numbers<[1], [0], [0], [1], [0, 0, 1, 1], [], []>} : vector<32x8xbf16>, vector<8x72xbf16>, vector<32x72xf32> -> vector<32x72xf32>
    %183 = arith.addf %177, %182 : vector<32x72xf32>
    %c0_203 = arith.constant 0 : index
    %c0_204 = arith.constant 0 : index
    %c10_205 = arith.constant 10 : index
    %184 = vector.load %arg1[%c0_203, %c0_204, %c10_205] : memref<1x32x90xbf16, #tpu.memory_space<vmem>>, vector<1x8x72xbf16>
    %185 = vector.shape_cast %184 : vector<1x8x72xbf16> to vector<8x72xbf16>
    %c4_206 = arith.constant 4 : index
    %c0_207 = arith.constant 0 : index
    %c0_208 = arith.constant 0 : index
    %186 = vector.load %arg2[%c4_206, %c0_207, %c0_208] : memref<9x32x8xbf16, #tpu.memory_space<vmem>>, vector<1x32x8xbf16>
    %187 = vector.shape_cast %186 : vector<1x32x8xbf16> to vector<32x8xbf16>
    %cst_209 = arith.constant dense<0.000000e+00> : vector<32x72xf32>
    %188 = tpu.matmul %187, %185, %cst_209 {dimension_numbers = #tpu.dot_dimension_numbers<[1], [0], [0], [1], [0, 0, 1, 1], [], []>} : vector<32x8xbf16>, vector<8x72xbf16>, vector<32x72xf32> -> vector<32x72xf32>
    %189 = arith.addf %183, %188 : vector<32x72xf32>
    %c0_210 = arith.constant 0 : index
    %c8_211 = arith.constant 8 : index
    %c10_212 = arith.constant 10 : index
    %190 = vector.load %arg1[%c0_210, %c8_211, %c10_212] : memref<1x32x90xbf16, #tpu.memory_space<vmem>>, vector<1x8x72xbf16>
    %191 = vector.shape_cast %190 : vector<1x8x72xbf16> to vector<8x72xbf16>
    %c5_213 = arith.constant 5 : index
    %c0_214 = arith.constant 0 : index
    %c0_215 = arith.constant 0 : index
    %192 = vector.load %arg2[%c5_213, %c0_214, %c0_215] : memref<9x32x8xbf16, #tpu.memory_space<vmem>>, vector<1x32x8xbf16>
    %193 = vector.shape_cast %192 : vector<1x32x8xbf16> to vector<32x8xbf16>
    %cst_216 = arith.constant dense<0.000000e+00> : vector<32x72xf32>
    %194 = tpu.matmul %193, %191, %cst_216 {dimension_numbers = #tpu.dot_dimension_numbers<[1], [0], [0], [1], [0, 0, 1, 1], [], []>} : vector<32x8xbf16>, vector<8x72xbf16>, vector<32x72xf32> -> vector<32x72xf32>
    %195 = arith.addf %189, %194 : vector<32x72xf32>
    %c0_217 = arith.constant 0 : index
    %c24_218 = arith.constant 24 : index
    %c9_219 = arith.constant 9 : index
    %196 = vector.load %arg1[%c0_217, %c24_218, %c9_219] : memref<1x32x90xbf16, #tpu.memory_space<vmem>>, vector<1x8x72xbf16>
    %197 = vector.shape_cast %196 : vector<1x8x72xbf16> to vector<8x72xbf16>
    %c6_220 = arith.constant 6 : index
    %c0_221 = arith.constant 0 : index
    %c0_222 = arith.constant 0 : index
    %198 = vector.load %arg2[%c6_220, %c0_221, %c0_222] : memref<9x32x8xbf16, #tpu.memory_space<vmem>>, vector<1x32x8xbf16>
    %199 = vector.shape_cast %198 : vector<1x32x8xbf16> to vector<32x8xbf16>
    %cst_223 = arith.constant dense<0.000000e+00> : vector<32x72xf32>
    %200 = tpu.matmul %199, %197, %cst_223 {dimension_numbers = #tpu.dot_dimension_numbers<[1], [0], [0], [1], [0, 0, 1, 1], [], []>} : vector<32x8xbf16>, vector<8x72xbf16>, vector<32x72xf32> -> vector<32x72xf32>
    %201 = arith.addf %195, %200 : vector<32x72xf32>
    %c0_224 = arith.constant 0 : index
    %c16_225 = arith.constant 16 : index
    %c10_226 = arith.constant 10 : index
    %202 = vector.load %arg1[%c0_224, %c16_225, %c10_226] : memref<1x32x90xbf16, #tpu.memory_space<vmem>>, vector<1x8x72xbf16>
    %203 = vector.shape_cast %202 : vector<1x8x72xbf16> to vector<8x72xbf16>
    %c7_227 = arith.constant 7 : index
    %c0_228 = arith.constant 0 : index
    %c0_229 = arith.constant 0 : index
    %204 = vector.load %arg2[%c7_227, %c0_228, %c0_229] : memref<9x32x8xbf16, #tpu.memory_space<vmem>>, vector<1x32x8xbf16>
    %205 = vector.shape_cast %204 : vector<1x32x8xbf16> to vector<32x8xbf16>
    %cst_230 = arith.constant dense<0.000000e+00> : vector<32x72xf32>
    %206 = tpu.matmul %205, %203, %cst_230 {dimension_numbers = #tpu.dot_dimension_numbers<[1], [0], [0], [1], [0, 0, 1, 1], [], []>} : vector<32x8xbf16>, vector<8x72xbf16>, vector<32x72xf32> -> vector<32x72xf32>
    %207 = arith.addf %201, %206 : vector<32x72xf32>
    %c0_231 = arith.constant 0 : index
    %c24_232 = arith.constant 24 : index
    %c10_233 = arith.constant 10 : index
    %208 = vector.load %arg1[%c0_231, %c24_232, %c10_233] : memref<1x32x90xbf16, #tpu.memory_space<vmem>>, vector<1x8x72xbf16>
    %209 = vector.shape_cast %208 : vector<1x8x72xbf16> to vector<8x72xbf16>
    %c8_234 = arith.constant 8 : index
    %c0_235 = arith.constant 0 : index
    %c0_236 = arith.constant 0 : index
    %210 = vector.load %arg2[%c8_234, %c0_235, %c0_236] : memref<9x32x8xbf16, #tpu.memory_space<vmem>>, vector<1x32x8xbf16>
    %211 = vector.shape_cast %210 : vector<1x32x8xbf16> to vector<32x8xbf16>
    %cst_237 = arith.constant dense<0.000000e+00> : vector<32x72xf32>
    %212 = tpu.matmul %211, %209, %cst_237 {dimension_numbers = #tpu.dot_dimension_numbers<[1], [0], [0], [1], [0, 0, 1, 1], [], []>} : vector<32x8xbf16>, vector<8x72xbf16>, vector<32x72xf32> -> vector<32x72xf32>
    %213 = arith.addf %207, %212 : vector<32x72xf32>
    %214 = arith.maximumf %160, %213 : vector<32x72xf32>
    %c0_238 = arith.constant 0 : index
    %c0_239 = arith.constant 0 : index
    %215 = vector.load %arg3[%c0_238, %c0_239] : memref<32x1xf32, #tpu.memory_space<vmem>>, vector<32x1xf32>
    %216 = vector.broadcast %215 : vector<32x1xf32> to vector<32x72xf32>
    %217 = arith.addf %214, %216 : vector<32x72xf32>
    %cst_240 = arith.constant 0.000000e+00 : f32
    %218 = vector.broadcast %cst_240 : f32 to vector<32x72xf32>
    %219 = arith.maximumf %217, %218 : vector<32x72xf32>
    %c0_241 = arith.constant 0 : index
    %c0_242 = arith.constant 0 : index
    %220 = vector.load %arg4[%c0_241, %c0_242] : memref<1x72xf32, #tpu.memory_space<vmem>>, vector<1x72xf32>
    %221 = vector.broadcast %220 : vector<1x72xf32> to vector<32x72xf32>
    %222 = arith.mulf %219, %221 : vector<32x72xf32>
    %223 = arith.truncf %222 : vector<32x72xf32> to vector<32x72xbf16>
    %c0_243 = arith.constant 0 : index
    %c0_244 = arith.constant 0 : index
    %c0_245 = arith.constant 0 : index
    %224 = vector.load %arg5[%c0_243, %c0_244, %c0_245] : memref<1x32x72xbf16, #tpu.memory_space<vmem>>, vector<1x32x72xbf16>
    %225 = vector.shape_cast %224 : vector<1x32x72xbf16> to vector<32x72xbf16>
    %226 = vector.shape_cast %223 : vector<32x72xbf16> to vector<1x32x72xbf16>
    tpu.vector_store %arg5[%c0_243, %c0_244, %c0_245], %226 {strides = array<i32>} : memref<1x32x72xbf16, #tpu.memory_space<vmem>>, vector<1x32x72xbf16>,
    return
  }
  func.func @transform_0(%arg0: i32) -> (i32, i32, i32) {
    %c0_i32 = arith.constant 0 : i32
    %c0_i32_0 = arith.constant 0 : i32
    %c0_i32_1 = arith.constant 0 : i32
    return %arg0, %c0_i32, %c0_i32_0 : i32, i32, i32
  }
  func.func @transform_1(%arg0: i32) -> (i32, i32, i32) {
    %c0_i32 = arith.constant 0 : i32
    %c0_i32_0 = arith.constant 0 : i32
    %c0_i32_1 = arith.constant 0 : i32
    %c0_i32_2 = arith.constant 0 : i32
    return %c0_i32, %c0_i32_0, %c0_i32_1 : i32, i32, i32
  }
  func.func @transform_2(%arg0: i32) -> (i32, i32) {
    %c0_i32 = arith.constant 0 : i32
    %c0_i32_0 = arith.constant 0 : i32
    %c0_i32_1 = arith.constant 0 : i32
    return %c0_i32, %c0_i32_0 : i32, i32
  }
  func.func @transform_3(%arg0: i32) -> (i32, i32) {
    %c0_i32 = arith.constant 0 : i32
    %c0_i32_0 = arith.constant 0 : i32
    %c0_i32_1 = arith.constant 0 : i32
    return %c0_i32, %c0_i32_0 : i32, i32
  }
  func.func @transform_4(%arg0: i32) -> (i32, i32, i32) {
    %c0_i32 = arith.constant 0 : i32
    %c0_i32_0 = arith.constant 0 : i32
    %c0_i32_1 = arith.constant 0 : i32
    return %arg0, %c0_i32, %c0_i32_0 : i32, i32, i32
  }
}

module attributes {stable_mosaic.version = 11 : i64} {
  func.func @_conv3x3_pool_kernel(%arg0: i32, %arg1: memref<1x128x30xbf16, #tpu.memory_space<vmem>>, %arg2: memref<9x64x32xbf16, #tpu.memory_space<vmem>>, %arg3: memref<64x1xf32, #tpu.memory_space<vmem>>, %arg4: memref<1x20xf32, #tpu.memory_space<vmem>>, %arg5: memref<1x64x20xbf16, #tpu.memory_space<vmem>>) attributes {dimension_semantics = [#tpu.dimension_semantics<parallel>], iteration_bounds = array<i64: 4>, scalar_prefetch = 0 : i64, scratch_operands = 0 : i64, tpu.core_type = #tpu.core_type<tc>, window_params = [{transform_indices = @transform_0, window_bounds = array<i64: 1, 128, 30>}, {pipeline_mode = #tpu.pipeline_mode<synchronous>, transform_indices = @transform_1, window_bounds = array<i64: 9, 64, 32>}, {pipeline_mode = #tpu.pipeline_mode<synchronous>, transform_indices = @transform_2, window_bounds = array<i64: 64, 1>}, {pipeline_mode = #tpu.pipeline_mode<synchronous>, transform_indices = @transform_3, window_bounds = array<i64: 1, 20>}, {transform_indices = @transform_4, window_bounds = array<i64: 1, 64, 20>}]} {
    %c0 = arith.constant 0 : index
    %c0_0 = arith.constant 0 : index
    %c0_1 = arith.constant 0 : index
    %0 = vector.load %arg1[%c0, %c0_0, %c0_1] : memref<1x128x30xbf16, #tpu.memory_space<vmem>>, vector<1x32x20xbf16>
    %1 = vector.shape_cast %0 : vector<1x32x20xbf16> to vector<32x20xbf16>
    %c0_2 = arith.constant 0 : index
    %c0_3 = arith.constant 0 : index
    %c0_4 = arith.constant 0 : index
    %2 = vector.load %arg2[%c0_2, %c0_3, %c0_4] : memref<9x64x32xbf16, #tpu.memory_space<vmem>>, vector<1x64x32xbf16>
    %3 = vector.shape_cast %2 : vector<1x64x32xbf16> to vector<64x32xbf16>
    %cst = arith.constant dense<0.000000e+00> : vector<64x20xf32>
    %4 = tpu.matmul %3, %1, %cst {dimension_numbers = #tpu.dot_dimension_numbers<[1], [0], [0], [1], [0, 0, 1, 1], [], []>} : vector<64x32xbf16>, vector<32x20xbf16>, vector<64x20xf32> -> vector<64x20xf32>
    %c0_5 = arith.constant 0 : index
    %c32 = arith.constant 32 : index
    %c0_6 = arith.constant 0 : index
    %5 = vector.load %arg1[%c0_5, %c32, %c0_6] : memref<1x128x30xbf16, #tpu.memory_space<vmem>>, vector<1x32x20xbf16>
    %6 = vector.shape_cast %5 : vector<1x32x20xbf16> to vector<32x20xbf16>
    %c1 = arith.constant 1 : index
    %c0_7 = arith.constant 0 : index
    %c0_8 = arith.constant 0 : index
    %7 = vector.load %arg2[%c1, %c0_7, %c0_8] : memref<9x64x32xbf16, #tpu.memory_space<vmem>>, vector<1x64x32xbf16>
    %8 = vector.shape_cast %7 : vector<1x64x32xbf16> to vector<64x32xbf16>
    %cst_9 = arith.constant dense<0.000000e+00> : vector<64x20xf32>
    %9 = tpu.matmul %8, %6, %cst_9 {dimension_numbers = #tpu.dot_dimension_numbers<[1], [0], [0], [1], [0, 0, 1, 1], [], []>} : vector<64x32xbf16>, vector<32x20xbf16>, vector<64x20xf32> -> vector<64x20xf32>
    %10 = arith.addf %4, %9 : vector<64x20xf32>
    %c0_10 = arith.constant 0 : index
    %c0_11 = arith.constant 0 : index
    %c1_12 = arith.constant 1 : index
    %11 = vector.load %arg1[%c0_10, %c0_11, %c1_12] : memref<1x128x30xbf16, #tpu.memory_space<vmem>>, vector<1x32x20xbf16>
    %12 = vector.shape_cast %11 : vector<1x32x20xbf16> to vector<32x20xbf16>
    %c2 = arith.constant 2 : index
    %c0_13 = arith.constant 0 : index
    %c0_14 = arith.constant 0 : index
    %13 = vector.load %arg2[%c2, %c0_13, %c0_14] : memref<9x64x32xbf16, #tpu.memory_space<vmem>>, vector<1x64x32xbf16>
    %14 = vector.shape_cast %13 : vector<1x64x32xbf16> to vector<64x32xbf16>
    %cst_15 = arith.constant dense<0.000000e+00> : vector<64x20xf32>
    %15 = tpu.matmul %14, %12, %cst_15 {dimension_numbers = #tpu.dot_dimension_numbers<[1], [0], [0], [1], [0, 0, 1, 1], [], []>} : vector<64x32xbf16>, vector<32x20xbf16>, vector<64x20xf32> -> vector<64x20xf32>
    %16 = arith.addf %10, %15 : vector<64x20xf32>
    %c0_16 = arith.constant 0 : index
    %c64 = arith.constant 64 : index
    %c0_17 = arith.constant 0 : index
    %17 = vector.load %arg1[%c0_16, %c64, %c0_17] : memref<1x128x30xbf16, #tpu.memory_space<vmem>>, vector<1x32x20xbf16>
    %18 = vector.shape_cast %17 : vector<1x32x20xbf16> to vector<32x20xbf16>
    %c3 = arith.constant 3 : index
    %c0_18 = arith.constant 0 : index
    %c0_19 = arith.constant 0 : index
    %19 = vector.load %arg2[%c3, %c0_18, %c0_19] : memref<9x64x32xbf16, #tpu.memory_space<vmem>>, vector<1x64x32xbf16>
    %20 = vector.shape_cast %19 : vector<1x64x32xbf16> to vector<64x32xbf16>
    %cst_20 = arith.constant dense<0.000000e+00> : vector<64x20xf32>
    %21 = tpu.matmul %20, %18, %cst_20 {dimension_numbers = #tpu.dot_dimension_numbers<[1], [0], [0], [1], [0, 0, 1, 1], [], []>} : vector<64x32xbf16>, vector<32x20xbf16>, vector<64x20xf32> -> vector<64x20xf32>
    %22 = arith.addf %16, %21 : vector<64x20xf32>
    %c0_21 = arith.constant 0 : index
    %c96 = arith.constant 96 : index
    %c0_22 = arith.constant 0 : index
    %23 = vector.load %arg1[%c0_21, %c96, %c0_22] : memref<1x128x30xbf16, #tpu.memory_space<vmem>>, vector<1x32x20xbf16>
    %24 = vector.shape_cast %23 : vector<1x32x20xbf16> to vector<32x20xbf16>
    %c4 = arith.constant 4 : index
    %c0_23 = arith.constant 0 : index
    %c0_24 = arith.constant 0 : index
    %25 = vector.load %arg2[%c4, %c0_23, %c0_24] : memref<9x64x32xbf16, #tpu.memory_space<vmem>>, vector<1x64x32xbf16>
    %26 = vector.shape_cast %25 : vector<1x64x32xbf16> to vector<64x32xbf16>
    %cst_25 = arith.constant dense<0.000000e+00> : vector<64x20xf32>
    %27 = tpu.matmul %26, %24, %cst_25 {dimension_numbers = #tpu.dot_dimension_numbers<[1], [0], [0], [1], [0, 0, 1, 1], [], []>} : vector<64x32xbf16>, vector<32x20xbf16>, vector<64x20xf32> -> vector<64x20xf32>
    %28 = arith.addf %22, %27 : vector<64x20xf32>
    %c0_26 = arith.constant 0 : index
    %c64_27 = arith.constant 64 : index
    %c1_28 = arith.constant 1 : index
    %29 = vector.load %arg1[%c0_26, %c64_27, %c1_28] : memref<1x128x30xbf16, #tpu.memory_space<vmem>>, vector<1x32x20xbf16>
    %30 = vector.shape_cast %29 : vector<1x32x20xbf16> to vector<32x20xbf16>
    %c5 = arith.constant 5 : index
    %c0_29 = arith.constant 0 : index
    %c0_30 = arith.constant 0 : index
    %31 = vector.load %arg2[%c5, %c0_29, %c0_30] : memref<9x64x32xbf16, #tpu.memory_space<vmem>>, vector<1x64x32xbf16>
    %32 = vector.shape_cast %31 : vector<1x64x32xbf16> to vector<64x32xbf16>
    %cst_31 = arith.constant dense<0.000000e+00> : vector<64x20xf32>
    %33 = tpu.matmul %32, %30, %cst_31 {dimension_numbers = #tpu.dot_dimension_numbers<[1], [0], [0], [1], [0, 0, 1, 1], [], []>} : vector<64x32xbf16>, vector<32x20xbf16>, vector<64x20xf32> -> vector<64x20xf32>
    %34 = arith.addf %28, %33 : vector<64x20xf32>
    %c0_32 = arith.constant 0 : index
    %c0_33 = arith.constant 0 : index
    %c5_34 = arith.constant 5 : index
    %35 = vector.load %arg1[%c0_32, %c0_33, %c5_34] : memref<1x128x30xbf16, #tpu.memory_space<vmem>>, vector<1x32x20xbf16>
    %36 = vector.shape_cast %35 : vector<1x32x20xbf16> to vector<32x20xbf16>
    %c6 = arith.constant 6 : index
    %c0_35 = arith.constant 0 : index
    %c0_36 = arith.constant 0 : index
    %37 = vector.load %arg2[%c6, %c0_35, %c0_36] : memref<9x64x32xbf16, #tpu.memory_space<vmem>>, vector<1x64x32xbf16>
    %38 = vector.shape_cast %37 : vector<1x64x32xbf16> to vector<64x32xbf16>
    %cst_37 = arith.constant dense<0.000000e+00> : vector<64x20xf32>
    %39 = tpu.matmul %38, %36, %cst_37 {dimension_numbers = #tpu.dot_dimension_numbers<[1], [0], [0], [1], [0, 0, 1, 1], [], []>} : vector<64x32xbf16>, vector<32x20xbf16>, vector<64x20xf32> -> vector<64x20xf32>
    %40 = arith.addf %34, %39 : vector<64x20xf32>
    %c0_38 = arith.constant 0 : index
    %c32_39 = arith.constant 32 : index
    %c5_40 = arith.constant 5 : index
    %41 = vector.load %arg1[%c0_38, %c32_39, %c5_40] : memref<1x128x30xbf16, #tpu.memory_space<vmem>>, vector<1x32x20xbf16>
    %42 = vector.shape_cast %41 : vector<1x32x20xbf16> to vector<32x20xbf16>
    %c7 = arith.constant 7 : index
    %c0_41 = arith.constant 0 : index
    %c0_42 = arith.constant 0 : index
    %43 = vector.load %arg2[%c7, %c0_41, %c0_42] : memref<9x64x32xbf16, #tpu.memory_space<vmem>>, vector<1x64x32xbf16>
    %44 = vector.shape_cast %43 : vector<1x64x32xbf16> to vector<64x32xbf16>
    %cst_43 = arith.constant dense<0.000000e+00> : vector<64x20xf32>
    %45 = tpu.matmul %44, %42, %cst_43 {dimension_numbers = #tpu.dot_dimension_numbers<[1], [0], [0], [1], [0, 0, 1, 1], [], []>} : vector<64x32xbf16>, vector<32x20xbf16>, vector<64x20xf32> -> vector<64x20xf32>
    %46 = arith.addf %40, %45 : vector<64x20xf32>
    %c0_44 = arith.constant 0 : index
    %c0_45 = arith.constant 0 : index
    %c6_46 = arith.constant 6 : index
    %47 = vector.load %arg1[%c0_44, %c0_45, %c6_46] : memref<1x128x30xbf16, #tpu.memory_space<vmem>>, vector<1x32x20xbf16>
    %48 = vector.shape_cast %47 : vector<1x32x20xbf16> to vector<32x20xbf16>
    %c8 = arith.constant 8 : index
    %c0_47 = arith.constant 0 : index
    %c0_48 = arith.constant 0 : index
    %49 = vector.load %arg2[%c8, %c0_47, %c0_48] : memref<9x64x32xbf16, #tpu.memory_space<vmem>>, vector<1x64x32xbf16>
    %50 = vector.shape_cast %49 : vector<1x64x32xbf16> to vector<64x32xbf16>
    %cst_49 = arith.constant dense<0.000000e+00> : vector<64x20xf32>
    %51 = tpu.matmul %50, %48, %cst_49 {dimension_numbers = #tpu.dot_dimension_numbers<[1], [0], [0], [1], [0, 0, 1, 1], [], []>} : vector<64x32xbf16>, vector<32x20xbf16>, vector<64x20xf32> -> vector<64x20xf32>
    %52 = arith.addf %46, %51 : vector<64x20xf32>
    %c0_50 = arith.constant 0 : index
    %c32_51 = arith.constant 32 : index
    %c0_52 = arith.constant 0 : index
    %53 = vector.load %arg1[%c0_50, %c32_51, %c0_52] : memref<1x128x30xbf16, #tpu.memory_space<vmem>>, vector<1x32x20xbf16>
    %54 = vector.shape_cast %53 : vector<1x32x20xbf16> to vector<32x20xbf16>
    %c0_53 = arith.constant 0 : index
    %c0_54 = arith.constant 0 : index
    %c0_55 = arith.constant 0 : index
    %55 = vector.load %arg2[%c0_53, %c0_54, %c0_55] : memref<9x64x32xbf16, #tpu.memory_space<vmem>>, vector<1x64x32xbf16>
    %56 = vector.shape_cast %55 : vector<1x64x32xbf16> to vector<64x32xbf16>
    %cst_56 = arith.constant dense<0.000000e+00> : vector<64x20xf32>
    %57 = tpu.matmul %56, %54, %cst_56 {dimension_numbers = #tpu.dot_dimension_numbers<[1], [0], [0], [1], [0, 0, 1, 1], [], []>} : vector<64x32xbf16>, vector<32x20xbf16>, vector<64x20xf32> -> vector<64x20xf32>
    %c0_57 = arith.constant 0 : index
    %c0_58 = arith.constant 0 : index
    %c1_59 = arith.constant 1 : index
    %58 = vector.load %arg1[%c0_57, %c0_58, %c1_59] : memref<1x128x30xbf16, #tpu.memory_space<vmem>>, vector<1x32x20xbf16>
    %59 = vector.shape_cast %58 : vector<1x32x20xbf16> to vector<32x20xbf16>
    %c1_60 = arith.constant 1 : index
    %c0_61 = arith.constant 0 : index
    %c0_62 = arith.constant 0 : index
    %60 = vector.load %arg2[%c1_60, %c0_61, %c0_62] : memref<9x64x32xbf16, #tpu.memory_space<vmem>>, vector<1x64x32xbf16>
    %61 = vector.shape_cast %60 : vector<1x64x32xbf16> to vector<64x32xbf16>
    %cst_63 = arith.constant dense<0.000000e+00> : vector<64x20xf32>
    %62 = tpu.matmul %61, %59, %cst_63 {dimension_numbers = #tpu.dot_dimension_numbers<[1], [0], [0], [1], [0, 0, 1, 1], [], []>} : vector<64x32xbf16>, vector<32x20xbf16>, vector<64x20xf32> -> vector<64x20xf32>
    %63 = arith.addf %57, %62 : vector<64x20xf32>
    %c0_64 = arith.constant 0 : index
    %c32_65 = arith.constant 32 : index
    %c1_66 = arith.constant 1 : index
    %64 = vector.load %arg1[%c0_64, %c32_65, %c1_66] : memref<1x128x30xbf16, #tpu.memory_space<vmem>>, vector<1x32x20xbf16>
    %65 = vector.shape_cast %64 : vector<1x32x20xbf16> to vector<32x20xbf16>
    %c2_67 = arith.constant 2 : index
    %c0_68 = arith.constant 0 : index
    %c0_69 = arith.constant 0 : index
    %66 = vector.load %arg2[%c2_67, %c0_68, %c0_69] : memref<9x64x32xbf16, #tpu.memory_space<vmem>>, vector<1x64x32xbf16>
    %67 = vector.shape_cast %66 : vector<1x64x32xbf16> to vector<64x32xbf16>
    %cst_70 = arith.constant dense<0.000000e+00> : vector<64x20xf32>
    %68 = tpu.matmul %67, %65, %cst_70 {dimension_numbers = #tpu.dot_dimension_numbers<[1], [0], [0], [1], [0, 0, 1, 1], [], []>} : vector<64x32xbf16>, vector<32x20xbf16>, vector<64x20xf32> -> vector<64x20xf32>
    %69 = arith.addf %63, %68 : vector<64x20xf32>
    %c0_71 = arith.constant 0 : index
    %c96_72 = arith.constant 96 : index
    %c0_73 = arith.constant 0 : index
    %70 = vector.load %arg1[%c0_71, %c96_72, %c0_73] : memref<1x128x30xbf16, #tpu.memory_space<vmem>>, vector<1x32x20xbf16>
    %71 = vector.shape_cast %70 : vector<1x32x20xbf16> to vector<32x20xbf16>
    %c3_74 = arith.constant 3 : index
    %c0_75 = arith.constant 0 : index
    %c0_76 = arith.constant 0 : index
    %72 = vector.load %arg2[%c3_74, %c0_75, %c0_76] : memref<9x64x32xbf16, #tpu.memory_space<vmem>>, vector<1x64x32xbf16>
    %73 = vector.shape_cast %72 : vector<1x64x32xbf16> to vector<64x32xbf16>
    %cst_77 = arith.constant dense<0.000000e+00> : vector<64x20xf32>
    %74 = tpu.matmul %73, %71, %cst_77 {dimension_numbers = #tpu.dot_dimension_numbers<[1], [0], [0], [1], [0, 0, 1, 1], [], []>} : vector<64x32xbf16>, vector<32x20xbf16>, vector<64x20xf32> -> vector<64x20xf32>
    %75 = arith.addf %69, %74 : vector<64x20xf32>
    %c0_78 = arith.constant 0 : index
    %c64_79 = arith.constant 64 : index
    %c1_80 = arith.constant 1 : index
    %76 = vector.load %arg1[%c0_78, %c64_79, %c1_80] : memref<1x128x30xbf16, #tpu.memory_space<vmem>>, vector<1x32x20xbf16>
    %77 = vector.shape_cast %76 : vector<1x32x20xbf16> to vector<32x20xbf16>
    %c4_81 = arith.constant 4 : index
    %c0_82 = arith.constant 0 : index
    %c0_83 = arith.constant 0 : index
    %78 = vector.load %arg2[%c4_81, %c0_82, %c0_83] : memref<9x64x32xbf16, #tpu.memory_space<vmem>>, vector<1x64x32xbf16>
    %79 = vector.shape_cast %78 : vector<1x64x32xbf16> to vector<64x32xbf16>
    %cst_84 = arith.constant dense<0.000000e+00> : vector<64x20xf32>
    %80 = tpu.matmul %79, %77, %cst_84 {dimension_numbers = #tpu.dot_dimension_numbers<[1], [0], [0], [1], [0, 0, 1, 1], [], []>} : vector<64x32xbf16>, vector<32x20xbf16>, vector<64x20xf32> -> vector<64x20xf32>
    %81 = arith.addf %75, %80 : vector<64x20xf32>
    %c0_85 = arith.constant 0 : index
    %c96_86 = arith.constant 96 : index
    %c1_87 = arith.constant 1 : index
    %82 = vector.load %arg1[%c0_85, %c96_86, %c1_87] : memref<1x128x30xbf16, #tpu.memory_space<vmem>>, vector<1x32x20xbf16>
    %83 = vector.shape_cast %82 : vector<1x32x20xbf16> to vector<32x20xbf16>
    %c5_88 = arith.constant 5 : index
    %c0_89 = arith.constant 0 : index
    %c0_90 = arith.constant 0 : index
    %84 = vector.load %arg2[%c5_88, %c0_89, %c0_90] : memref<9x64x32xbf16, #tpu.memory_space<vmem>>, vector<1x64x32xbf16>
    %85 = vector.shape_cast %84 : vector<1x64x32xbf16> to vector<64x32xbf16>
    %cst_91 = arith.constant dense<0.000000e+00> : vector<64x20xf32>
    %86 = tpu.matmul %85, %83, %cst_91 {dimension_numbers = #tpu.dot_dimension_numbers<[1], [0], [0], [1], [0, 0, 1, 1], [], []>} : vector<64x32xbf16>, vector<32x20xbf16>, vector<64x20xf32> -> vector<64x20xf32>
    %87 = arith.addf %81, %86 : vector<64x20xf32>
    %c0_92 = arith.constant 0 : index
    %c32_93 = arith.constant 32 : index
    %c5_94 = arith.constant 5 : index
    %88 = vector.load %arg1[%c0_92, %c32_93, %c5_94] : memref<1x128x30xbf16, #tpu.memory_space<vmem>>, vector<1x32x20xbf16>
    %89 = vector.shape_cast %88 : vector<1x32x20xbf16> to vector<32x20xbf16>
    %c6_95 = arith.constant 6 : index
    %c0_96 = arith.constant 0 : index
    %c0_97 = arith.constant 0 : index
    %90 = vector.load %arg2[%c6_95, %c0_96, %c0_97] : memref<9x64x32xbf16, #tpu.memory_space<vmem>>, vector<1x64x32xbf16>
    %91 = vector.shape_cast %90 : vector<1x64x32xbf16> to vector<64x32xbf16>
    %cst_98 = arith.constant dense<0.000000e+00> : vector<64x20xf32>
    %92 = tpu.matmul %91, %89, %cst_98 {dimension_numbers = #tpu.dot_dimension_numbers<[1], [0], [0], [1], [0, 0, 1, 1], [], []>} : vector<64x32xbf16>, vector<32x20xbf16>, vector<64x20xf32> -> vector<64x20xf32>
    %93 = arith.addf %87, %92 : vector<64x20xf32>
    %c0_99 = arith.constant 0 : index
    %c0_100 = arith.constant 0 : index
    %c6_101 = arith.constant 6 : index
    %94 = vector.load %arg1[%c0_99, %c0_100, %c6_101] : memref<1x128x30xbf16, #tpu.memory_space<vmem>>, vector<1x32x20xbf16>
    %95 = vector.shape_cast %94 : vector<1x32x20xbf16> to vector<32x20xbf16>
    %c7_102 = arith.constant 7 : index
    %c0_103 = arith.constant 0 : index
    %c0_104 = arith.constant 0 : index
    %96 = vector.load %arg2[%c7_102, %c0_103, %c0_104] : memref<9x64x32xbf16, #tpu.memory_space<vmem>>, vector<1x64x32xbf16>
    %97 = vector.shape_cast %96 : vector<1x64x32xbf16> to vector<64x32xbf16>
    %cst_105 = arith.constant dense<0.000000e+00> : vector<64x20xf32>
    %98 = tpu.matmul %97, %95, %cst_105 {dimension_numbers = #tpu.dot_dimension_numbers<[1], [0], [0], [1], [0, 0, 1, 1], [], []>} : vector<64x32xbf16>, vector<32x20xbf16>, vector<64x20xf32> -> vector<64x20xf32>
    %99 = arith.addf %93, %98 : vector<64x20xf32>
    %c0_106 = arith.constant 0 : index
    %c32_107 = arith.constant 32 : index
    %c6_108 = arith.constant 6 : index
    %100 = vector.load %arg1[%c0_106, %c32_107, %c6_108] : memref<1x128x30xbf16, #tpu.memory_space<vmem>>, vector<1x32x20xbf16>
    %101 = vector.shape_cast %100 : vector<1x32x20xbf16> to vector<32x20xbf16>
    %c8_109 = arith.constant 8 : index
    %c0_110 = arith.constant 0 : index
    %c0_111 = arith.constant 0 : index
    %102 = vector.load %arg2[%c8_109, %c0_110, %c0_111] : memref<9x64x32xbf16, #tpu.memory_space<vmem>>, vector<1x64x32xbf16>
    %103 = vector.shape_cast %102 : vector<1x64x32xbf16> to vector<64x32xbf16>
    %cst_112 = arith.constant dense<0.000000e+00> : vector<64x20xf32>
    %104 = tpu.matmul %103, %101, %cst_112 {dimension_numbers = #tpu.dot_dimension_numbers<[1], [0], [0], [1], [0, 0, 1, 1], [], []>} : vector<64x32xbf16>, vector<32x20xbf16>, vector<64x20xf32> -> vector<64x20xf32>
    %105 = arith.addf %99, %104 : vector<64x20xf32>
    %106 = arith.maximumf %52, %105 : vector<64x20xf32>
    %c0_113 = arith.constant 0 : index
    %c64_114 = arith.constant 64 : index
    %c0_115 = arith.constant 0 : index
    %107 = vector.load %arg1[%c0_113, %c64_114, %c0_115] : memref<1x128x30xbf16, #tpu.memory_space<vmem>>, vector<1x32x20xbf16>
    %108 = vector.shape_cast %107 : vector<1x32x20xbf16> to vector<32x20xbf16>
    %c0_116 = arith.constant 0 : index
    %c0_117 = arith.constant 0 : index
    %c0_118 = arith.constant 0 : index
    %109 = vector.load %arg2[%c0_116, %c0_117, %c0_118] : memref<9x64x32xbf16, #tpu.memory_space<vmem>>, vector<1x64x32xbf16>
    %110 = vector.shape_cast %109 : vector<1x64x32xbf16> to vector<64x32xbf16>
    %cst_119 = arith.constant dense<0.000000e+00> : vector<64x20xf32>
    %111 = tpu.matmul %110, %108, %cst_119 {dimension_numbers = #tpu.dot_dimension_numbers<[1], [0], [0], [1], [0, 0, 1, 1], [], []>} : vector<64x32xbf16>, vector<32x20xbf16>, vector<64x20xf32> -> vector<64x20xf32>
    %c0_120 = arith.constant 0 : index
    %c96_121 = arith.constant 96 : index
    %c0_122 = arith.constant 0 : index
    %112 = vector.load %arg1[%c0_120, %c96_121, %c0_122] : memref<1x128x30xbf16, #tpu.memory_space<vmem>>, vector<1x32x20xbf16>
    %113 = vector.shape_cast %112 : vector<1x32x20xbf16> to vector<32x20xbf16>
    %c1_123 = arith.constant 1 : index
    %c0_124 = arith.constant 0 : index
    %c0_125 = arith.constant 0 : index
    %114 = vector.load %arg2[%c1_123, %c0_124, %c0_125] : memref<9x64x32xbf16, #tpu.memory_space<vmem>>, vector<1x64x32xbf16>
    %115 = vector.shape_cast %114 : vector<1x64x32xbf16> to vector<64x32xbf16>
    %cst_126 = arith.constant dense<0.000000e+00> : vector<64x20xf32>
    %116 = tpu.matmul %115, %113, %cst_126 {dimension_numbers = #tpu.dot_dimension_numbers<[1], [0], [0], [1], [0, 0, 1, 1], [], []>} : vector<64x32xbf16>, vector<32x20xbf16>, vector<64x20xf32> -> vector<64x20xf32>
    %117 = arith.addf %111, %116 : vector<64x20xf32>
    %c0_127 = arith.constant 0 : index
    %c64_128 = arith.constant 64 : index
    %c1_129 = arith.constant 1 : index
    %118 = vector.load %arg1[%c0_127, %c64_128, %c1_129] : memref<1x128x30xbf16, #tpu.memory_space<vmem>>, vector<1x32x20xbf16>
    %119 = vector.shape_cast %118 : vector<1x32x20xbf16> to vector<32x20xbf16>
    %c2_130 = arith.constant 2 : index
    %c0_131 = arith.constant 0 : index
    %c0_132 = arith.constant 0 : index
    %120 = vector.load %arg2[%c2_130, %c0_131, %c0_132] : memref<9x64x32xbf16, #tpu.memory_space<vmem>>, vector<1x64x32xbf16>
    %121 = vector.shape_cast %120 : vector<1x64x32xbf16> to vector<64x32xbf16>
    %cst_133 = arith.constant dense<0.000000e+00> : vector<64x20xf32>
    %122 = tpu.matmul %121, %119, %cst_133 {dimension_numbers = #tpu.dot_dimension_numbers<[1], [0], [0], [1], [0, 0, 1, 1], [], []>} : vector<64x32xbf16>, vector<32x20xbf16>, vector<64x20xf32> -> vector<64x20xf32>
    %123 = arith.addf %117, %122 : vector<64x20xf32>
    %c0_134 = arith.constant 0 : index
    %c0_135 = arith.constant 0 : index
    %c5_136 = arith.constant 5 : index
    %124 = vector.load %arg1[%c0_134, %c0_135, %c5_136] : memref<1x128x30xbf16, #tpu.memory_space<vmem>>, vector<1x32x20xbf16>
    %125 = vector.shape_cast %124 : vector<1x32x20xbf16> to vector<32x20xbf16>
    %c3_137 = arith.constant 3 : index
    %c0_138 = arith.constant 0 : index
    %c0_139 = arith.constant 0 : index
    %126 = vector.load %arg2[%c3_137, %c0_138, %c0_139] : memref<9x64x32xbf16, #tpu.memory_space<vmem>>, vector<1x64x32xbf16>
    %127 = vector.shape_cast %126 : vector<1x64x32xbf16> to vector<64x32xbf16>
    %cst_140 = arith.constant dense<0.000000e+00> : vector<64x20xf32>
    %128 = tpu.matmul %127, %125, %cst_140 {dimension_numbers = #tpu.dot_dimension_numbers<[1], [0], [0], [1], [0, 0, 1, 1], [], []>} : vector<64x32xbf16>, vector<32x20xbf16>, vector<64x20xf32> -> vector<64x20xf32>
    %129 = arith.addf %123, %128 : vector<64x20xf32>
    %c0_141 = arith.constant 0 : index
    %c32_142 = arith.constant 32 : index
    %c5_143 = arith.constant 5 : index
    %130 = vector.load %arg1[%c0_141, %c32_142, %c5_143] : memref<1x128x30xbf16, #tpu.memory_space<vmem>>, vector<1x32x20xbf16>
    %131 = vector.shape_cast %130 : vector<1x32x20xbf16> to vector<32x20xbf16>
    %c4_144 = arith.constant 4 : index
    %c0_145 = arith.constant 0 : index
    %c0_146 = arith.constant 0 : index
    %132 = vector.load %arg2[%c4_144, %c0_145, %c0_146] : memref<9x64x32xbf16, #tpu.memory_space<vmem>>, vector<1x64x32xbf16>
    %133 = vector.shape_cast %132 : vector<1x64x32xbf16> to vector<64x32xbf16>
    %cst_147 = arith.constant dense<0.000000e+00> : vector<64x20xf32>
    %134 = tpu.matmul %133, %131, %cst_147 {dimension_numbers = #tpu.dot_dimension_numbers<[1], [0], [0], [1], [0, 0, 1, 1], [], []>} : vector<64x32xbf16>, vector<32x20xbf16>, vector<64x20xf32> -> vector<64x20xf32>
    %135 = arith.addf %129, %134 : vector<64x20xf32>
    %c0_148 = arith.constant 0 : index
    %c0_149 = arith.constant 0 : index
    %c6_150 = arith.constant 6 : index
    %136 = vector.load %arg1[%c0_148, %c0_149, %c6_150] : memref<1x128x30xbf16, #tpu.memory_space<vmem>>, vector<1x32x20xbf16>
    %137 = vector.shape_cast %136 : vector<1x32x20xbf16> to vector<32x20xbf16>
    %c5_151 = arith.constant 5 : index
    %c0_152 = arith.constant 0 : index
    %c0_153 = arith.constant 0 : index
    %138 = vector.load %arg2[%c5_151, %c0_152, %c0_153] : memref<9x64x32xbf16, #tpu.memory_space<vmem>>, vector<1x64x32xbf16>
    %139 = vector.shape_cast %138 : vector<1x64x32xbf16> to vector<64x32xbf16>
    %cst_154 = arith.constant dense<0.000000e+00> : vector<64x20xf32>
    %140 = tpu.matmul %139, %137, %cst_154 {dimension_numbers = #tpu.dot_dimension_numbers<[1], [0], [0], [1], [0, 0, 1, 1], [], []>} : vector<64x32xbf16>, vector<32x20xbf16>, vector<64x20xf32> -> vector<64x20xf32>
    %141 = arith.addf %135, %140 : vector<64x20xf32>
    %c0_155 = arith.constant 0 : index
    %c64_156 = arith.constant 64 : index
    %c5_157 = arith.constant 5 : index
    %142 = vector.load %arg1[%c0_155, %c64_156, %c5_157] : memref<1x128x30xbf16, #tpu.memory_space<vmem>>, vector<1x32x20xbf16>
    %143 = vector.shape_cast %142 : vector<1x32x20xbf16> to vector<32x20xbf16>
    %c6_158 = arith.constant 6 : index
    %c0_159 = arith.constant 0 : index
    %c0_160 = arith.constant 0 : index
    %144 = vector.load %arg2[%c6_158, %c0_159, %c0_160] : memref<9x64x32xbf16, #tpu.memory_space<vmem>>, vector<1x64x32xbf16>
    %145 = vector.shape_cast %144 : vector<1x64x32xbf16> to vector<64x32xbf16>
    %cst_161 = arith.constant dense<0.000000e+00> : vector<64x20xf32>
    %146 = tpu.matmul %145, %143, %cst_161 {dimension_numbers = #tpu.dot_dimension_numbers<[1], [0], [0], [1], [0, 0, 1, 1], [], []>} : vector<64x32xbf16>, vector<32x20xbf16>, vector<64x20xf32> -> vector<64x20xf32>
    %147 = arith.addf %141, %146 : vector<64x20xf32>
    %c0_162 = arith.constant 0 : index
    %c96_163 = arith.constant 96 : index
    %c5_164 = arith.constant 5 : index
    %148 = vector.load %arg1[%c0_162, %c96_163, %c5_164] : memref<1x128x30xbf16, #tpu.memory_space<vmem>>, vector<1x32x20xbf16>
    %149 = vector.shape_cast %148 : vector<1x32x20xbf16> to vector<32x20xbf16>
    %c7_165 = arith.constant 7 : index
    %c0_166 = arith.constant 0 : index
    %c0_167 = arith.constant 0 : index
    %150 = vector.load %arg2[%c7_165, %c0_166, %c0_167] : memref<9x64x32xbf16, #tpu.memory_space<vmem>>, vector<1x64x32xbf16>
    %151 = vector.shape_cast %150 : vector<1x64x32xbf16> to vector<64x32xbf16>
    %cst_168 = arith.constant dense<0.000000e+00> : vector<64x20xf32>
    %152 = tpu.matmul %151, %149, %cst_168 {dimension_numbers = #tpu.dot_dimension_numbers<[1], [0], [0], [1], [0, 0, 1, 1], [], []>} : vector<64x32xbf16>, vector<32x20xbf16>, vector<64x20xf32> -> vector<64x20xf32>
    %153 = arith.addf %147, %152 : vector<64x20xf32>
    %c0_169 = arith.constant 0 : index
    %c64_170 = arith.constant 64 : index
    %c6_171 = arith.constant 6 : index
    %154 = vector.load %arg1[%c0_169, %c64_170, %c6_171] : memref<1x128x30xbf16, #tpu.memory_space<vmem>>, vector<1x32x20xbf16>
    %155 = vector.shape_cast %154 : vector<1x32x20xbf16> to vector<32x20xbf16>
    %c8_172 = arith.constant 8 : index
    %c0_173 = arith.constant 0 : index
    %c0_174 = arith.constant 0 : index
    %156 = vector.load %arg2[%c8_172, %c0_173, %c0_174] : memref<9x64x32xbf16, #tpu.memory_space<vmem>>, vector<1x64x32xbf16>
    %157 = vector.shape_cast %156 : vector<1x64x32xbf16> to vector<64x32xbf16>
    %cst_175 = arith.constant dense<0.000000e+00> : vector<64x20xf32>
    %158 = tpu.matmul %157, %155, %cst_175 {dimension_numbers = #tpu.dot_dimension_numbers<[1], [0], [0], [1], [0, 0, 1, 1], [], []>} : vector<64x32xbf16>, vector<32x20xbf16>, vector<64x20xf32> -> vector<64x20xf32>
    %159 = arith.addf %153, %158 : vector<64x20xf32>
    %160 = arith.maximumf %106, %159 : vector<64x20xf32>
    %c0_176 = arith.constant 0 : index
    %c96_177 = arith.constant 96 : index
    %c0_178 = arith.constant 0 : index
    %161 = vector.load %arg1[%c0_176, %c96_177, %c0_178] : memref<1x128x30xbf16, #tpu.memory_space<vmem>>, vector<1x32x20xbf16>
    %162 = vector.shape_cast %161 : vector<1x32x20xbf16> to vector<32x20xbf16>
    %c0_179 = arith.constant 0 : index
    %c0_180 = arith.constant 0 : index
    %c0_181 = arith.constant 0 : index
    %163 = vector.load %arg2[%c0_179, %c0_180, %c0_181] : memref<9x64x32xbf16, #tpu.memory_space<vmem>>, vector<1x64x32xbf16>
    %164 = vector.shape_cast %163 : vector<1x64x32xbf16> to vector<64x32xbf16>
    %cst_182 = arith.constant dense<0.000000e+00> : vector<64x20xf32>
    %165 = tpu.matmul %164, %162, %cst_182 {dimension_numbers = #tpu.dot_dimension_numbers<[1], [0], [0], [1], [0, 0, 1, 1], [], []>} : vector<64x32xbf16>, vector<32x20xbf16>, vector<64x20xf32> -> vector<64x20xf32>
    %c0_183 = arith.constant 0 : index
    %c64_184 = arith.constant 64 : index
    %c1_185 = arith.constant 1 : index
    %166 = vector.load %arg1[%c0_183, %c64_184, %c1_185] : memref<1x128x30xbf16, #tpu.memory_space<vmem>>, vector<1x32x20xbf16>
    %167 = vector.shape_cast %166 : vector<1x32x20xbf16> to vector<32x20xbf16>
    %c1_186 = arith.constant 1 : index
    %c0_187 = arith.constant 0 : index
    %c0_188 = arith.constant 0 : index
    %168 = vector.load %arg2[%c1_186, %c0_187, %c0_188] : memref<9x64x32xbf16, #tpu.memory_space<vmem>>, vector<1x64x32xbf16>
    %169 = vector.shape_cast %168 : vector<1x64x32xbf16> to vector<64x32xbf16>
    %cst_189 = arith.constant dense<0.000000e+00> : vector<64x20xf32>
    %170 = tpu.matmul %169, %167, %cst_189 {dimension_numbers = #tpu.dot_dimension_numbers<[1], [0], [0], [1], [0, 0, 1, 1], [], []>} : vector<64x32xbf16>, vector<32x20xbf16>, vector<64x20xf32> -> vector<64x20xf32>
    %171 = arith.addf %165, %170 : vector<64x20xf32>
    %c0_190 = arith.constant 0 : index
    %c96_191 = arith.constant 96 : index
    %c1_192 = arith.constant 1 : index
    %172 = vector.load %arg1[%c0_190, %c96_191, %c1_192] : memref<1x128x30xbf16, #tpu.memory_space<vmem>>, vector<1x32x20xbf16>
    %173 = vector.shape_cast %172 : vector<1x32x20xbf16> to vector<32x20xbf16>
    %c2_193 = arith.constant 2 : index
    %c0_194 = arith.constant 0 : index
    %c0_195 = arith.constant 0 : index
    %174 = vector.load %arg2[%c2_193, %c0_194, %c0_195] : memref<9x64x32xbf16, #tpu.memory_space<vmem>>, vector<1x64x32xbf16>
    %175 = vector.shape_cast %174 : vector<1x64x32xbf16> to vector<64x32xbf16>
    %cst_196 = arith.constant dense<0.000000e+00> : vector<64x20xf32>
    %176 = tpu.matmul %175, %173, %cst_196 {dimension_numbers = #tpu.dot_dimension_numbers<[1], [0], [0], [1], [0, 0, 1, 1], [], []>} : vector<64x32xbf16>, vector<32x20xbf16>, vector<64x20xf32> -> vector<64x20xf32>
    %177 = arith.addf %171, %176 : vector<64x20xf32>
    %c0_197 = arith.constant 0 : index
    %c32_198 = arith.constant 32 : index
    %c5_199 = arith.constant 5 : index
    %178 = vector.load %arg1[%c0_197, %c32_198, %c5_199] : memref<1x128x30xbf16, #tpu.memory_space<vmem>>, vector<1x32x20xbf16>
    %179 = vector.shape_cast %178 : vector<1x32x20xbf16> to vector<32x20xbf16>
    %c3_200 = arith.constant 3 : index
    %c0_201 = arith.constant 0 : index
    %c0_202 = arith.constant 0 : index
    %180 = vector.load %arg2[%c3_200, %c0_201, %c0_202] : memref<9x64x32xbf16, #tpu.memory_space<vmem>>, vector<1x64x32xbf16>
    %181 = vector.shape_cast %180 : vector<1x64x32xbf16> to vector<64x32xbf16>
    %cst_203 = arith.constant dense<0.000000e+00> : vector<64x20xf32>
    %182 = tpu.matmul %181, %179, %cst_203 {dimension_numbers = #tpu.dot_dimension_numbers<[1], [0], [0], [1], [0, 0, 1, 1], [], []>} : vector<64x32xbf16>, vector<32x20xbf16>, vector<64x20xf32> -> vector<64x20xf32>
    %183 = arith.addf %177, %182 : vector<64x20xf32>
    %c0_204 = arith.constant 0 : index
    %c0_205 = arith.constant 0 : index
    %c6_206 = arith.constant 6 : index
    %184 = vector.load %arg1[%c0_204, %c0_205, %c6_206] : memref<1x128x30xbf16, #tpu.memory_space<vmem>>, vector<1x32x20xbf16>
    %185 = vector.shape_cast %184 : vector<1x32x20xbf16> to vector<32x20xbf16>
    %c4_207 = arith.constant 4 : index
    %c0_208 = arith.constant 0 : index
    %c0_209 = arith.constant 0 : index
    %186 = vector.load %arg2[%c4_207, %c0_208, %c0_209] : memref<9x64x32xbf16, #tpu.memory_space<vmem>>, vector<1x64x32xbf16>
    %187 = vector.shape_cast %186 : vector<1x64x32xbf16> to vector<64x32xbf16>
    %cst_210 = arith.constant dense<0.000000e+00> : vector<64x20xf32>
    %188 = tpu.matmul %187, %185, %cst_210 {dimension_numbers = #tpu.dot_dimension_numbers<[1], [0], [0], [1], [0, 0, 1, 1], [], []>} : vector<64x32xbf16>, vector<32x20xbf16>, vector<64x20xf32> -> vector<64x20xf32>
    %189 = arith.addf %183, %188 : vector<64x20xf32>
    %c0_211 = arith.constant 0 : index
    %c32_212 = arith.constant 32 : index
    %c6_213 = arith.constant 6 : index
    %190 = vector.load %arg1[%c0_211, %c32_212, %c6_213] : memref<1x128x30xbf16, #tpu.memory_space<vmem>>, vector<1x32x20xbf16>
    %191 = vector.shape_cast %190 : vector<1x32x20xbf16> to vector<32x20xbf16>
    %c5_214 = arith.constant 5 : index
    %c0_215 = arith.constant 0 : index
    %c0_216 = arith.constant 0 : index
    %192 = vector.load %arg2[%c5_214, %c0_215, %c0_216] : memref<9x64x32xbf16, #tpu.memory_space<vmem>>, vector<1x64x32xbf16>
    %193 = vector.shape_cast %192 : vector<1x64x32xbf16> to vector<64x32xbf16>
    %cst_217 = arith.constant dense<0.000000e+00> : vector<64x20xf32>
    %194 = tpu.matmul %193, %191, %cst_217 {dimension_numbers = #tpu.dot_dimension_numbers<[1], [0], [0], [1], [0, 0, 1, 1], [], []>} : vector<64x32xbf16>, vector<32x20xbf16>, vector<64x20xf32> -> vector<64x20xf32>
    %195 = arith.addf %189, %194 : vector<64x20xf32>
    %c0_218 = arith.constant 0 : index
    %c96_219 = arith.constant 96 : index
    %c5_220 = arith.constant 5 : index
    %196 = vector.load %arg1[%c0_218, %c96_219, %c5_220] : memref<1x128x30xbf16, #tpu.memory_space<vmem>>, vector<1x32x20xbf16>
    %197 = vector.shape_cast %196 : vector<1x32x20xbf16> to vector<32x20xbf16>
    %c6_221 = arith.constant 6 : index
    %c0_222 = arith.constant 0 : index
    %c0_223 = arith.constant 0 : index
    %198 = vector.load %arg2[%c6_221, %c0_222, %c0_223] : memref<9x64x32xbf16, #tpu.memory_space<vmem>>, vector<1x64x32xbf16>
    %199 = vector.shape_cast %198 : vector<1x64x32xbf16> to vector<64x32xbf16>
    %cst_224 = arith.constant dense<0.000000e+00> : vector<64x20xf32>
    %200 = tpu.matmul %199, %197, %cst_224 {dimension_numbers = #tpu.dot_dimension_numbers<[1], [0], [0], [1], [0, 0, 1, 1], [], []>} : vector<64x32xbf16>, vector<32x20xbf16>, vector<64x20xf32> -> vector<64x20xf32>
    %201 = arith.addf %195, %200 : vector<64x20xf32>
    %c0_225 = arith.constant 0 : index
    %c64_226 = arith.constant 64 : index
    %c6_227 = arith.constant 6 : index
    %202 = vector.load %arg1[%c0_225, %c64_226, %c6_227] : memref<1x128x30xbf16, #tpu.memory_space<vmem>>, vector<1x32x20xbf16>
    %203 = vector.shape_cast %202 : vector<1x32x20xbf16> to vector<32x20xbf16>
    %c7_228 = arith.constant 7 : index
    %c0_229 = arith.constant 0 : index
    %c0_230 = arith.constant 0 : index
    %204 = vector.load %arg2[%c7_228, %c0_229, %c0_230] : memref<9x64x32xbf16, #tpu.memory_space<vmem>>, vector<1x64x32xbf16>
    %205 = vector.shape_cast %204 : vector<1x64x32xbf16> to vector<64x32xbf16>
    %cst_231 = arith.constant dense<0.000000e+00> : vector<64x20xf32>
    %206 = tpu.matmul %205, %203, %cst_231 {dimension_numbers = #tpu.dot_dimension_numbers<[1], [0], [0], [1], [0, 0, 1, 1], [], []>} : vector<64x32xbf16>, vector<32x20xbf16>, vector<64x20xf32> -> vector<64x20xf32>
    %207 = arith.addf %201, %206 : vector<64x20xf32>
    %c0_232 = arith.constant 0 : index
    %c96_233 = arith.constant 96 : index
    %c6_234 = arith.constant 6 : index
    %208 = vector.load %arg1[%c0_232, %c96_233, %c6_234] : memref<1x128x30xbf16, #tpu.memory_space<vmem>>, vector<1x32x20xbf16>
    %209 = vector.shape_cast %208 : vector<1x32x20xbf16> to vector<32x20xbf16>
    %c8_235 = arith.constant 8 : index
    %c0_236 = arith.constant 0 : index
    %c0_237 = arith.constant 0 : index
    %210 = vector.load %arg2[%c8_235, %c0_236, %c0_237] : memref<9x64x32xbf16, #tpu.memory_space<vmem>>, vector<1x64x32xbf16>
    %211 = vector.shape_cast %210 : vector<1x64x32xbf16> to vector<64x32xbf16>
    %cst_238 = arith.constant dense<0.000000e+00> : vector<64x20xf32>
    %212 = tpu.matmul %211, %209, %cst_238 {dimension_numbers = #tpu.dot_dimension_numbers<[1], [0], [0], [1], [0, 0, 1, 1], [], []>} : vector<64x32xbf16>, vector<32x20xbf16>, vector<64x20xf32> -> vector<64x20xf32>
    %213 = arith.addf %207, %212 : vector<64x20xf32>
    %214 = arith.maximumf %160, %213 : vector<64x20xf32>
    %c0_239 = arith.constant 0 : index
    %c0_240 = arith.constant 0 : index
    %215 = vector.load %arg3[%c0_239, %c0_240] : memref<64x1xf32, #tpu.memory_space<vmem>>, vector<64x1xf32>
    %216 = vector.broadcast %215 : vector<64x1xf32> to vector<64x20xf32>
    %217 = arith.addf %214, %216 : vector<64x20xf32>
    %cst_241 = arith.constant 0.000000e+00 : f32
    %218 = vector.broadcast %cst_241 : f32 to vector<64x20xf32>
    %219 = arith.maximumf %217, %218 : vector<64x20xf32>
    %c0_242 = arith.constant 0 : index
    %c0_243 = arith.constant 0 : index
    %220 = vector.load %arg4[%c0_242, %c0_243] : memref<1x20xf32, #tpu.memory_space<vmem>>, vector<1x20xf32>
    %221 = vector.broadcast %220 : vector<1x20xf32> to vector<64x20xf32>
    %222 = arith.mulf %219, %221 : vector<64x20xf32>
    %223 = arith.truncf %222 : vector<64x20xf32> to vector<64x20xbf16>
    %c0_244 = arith.constant 0 : index
    %c0_245 = arith.constant 0 : index
    %c0_246 = arith.constant 0 : index
    %224 = vector.load %arg5[%c0_244, %c0_245, %c0_246] : memref<1x64x20xbf16, #tpu.memory_space<vmem>>, vector<1x64x20xbf16>
    %225 = vector.shape_cast %224 : vector<1x64x20xbf16> to vector<64x20xbf16>
    %226 = vector.shape_cast %223 : vector<64x20xbf16> to vector<1x64x20xbf16>
    tpu.vector_store %arg5[%c0_244, %c0_245, %c0_246], %226 {strides = array<i32>} : memref<1x64x20xbf16, #tpu.memory_space<vmem>>, vector<1x64x20xbf16>,
    return
  }
  func.func @transform_0(%arg0: i32) -> (i32, i32, i32) {
    %c0_i32 = arith.constant 0 : i32
    %c0_i32_0 = arith.constant 0 : i32
    %c0_i32_1 = arith.constant 0 : i32
    return %arg0, %c0_i32, %c0_i32_0 : i32, i32, i32
  }
  func.func @transform_1(%arg0: i32) -> (i32, i32, i32) {
    %c0_i32 = arith.constant 0 : i32
    %c0_i32_0 = arith.constant 0 : i32
    %c0_i32_1 = arith.constant 0 : i32
    %c0_i32_2 = arith.constant 0 : i32
    return %c0_i32, %c0_i32_0, %c0_i32_1 : i32, i32, i32
  }
  func.func @transform_2(%arg0: i32) -> (i32, i32) {
    %c0_i32 = arith.constant 0 : i32
    %c0_i32_0 = arith.constant 0 : i32
    %c0_i32_1 = arith.constant 0 : i32
    return %c0_i32, %c0_i32_0 : i32, i32
  }
  func.func @transform_3(%arg0: i32) -> (i32, i32) {
    %c0_i32 = arith.constant 0 : i32
    %c0_i32_0 = arith.constant 0 : i32
    %c0_i32_1 = arith.constant 0 : i32
    return %c0_i32, %c0_i32_0 : i32, i32
  }
  func.func @transform_4(%arg0: i32) -> (i32, i32, i32) {
    %c0_i32 = arith.constant 0 : i32
    %c0_i32_0 = arith.constant 0 : i32
    %c0_i32_1 = arith.constant 0 : i32
    return %arg0, %c0_i32, %c0_i32_0 : i32, i32, i32
  }
}

module attributes {stable_mosaic.version = 11 : i64} {
  func.func @_classifier_kernel(%arg0: i32, %arg1: memref<4x640xbf16, #tpu.memory_space<vmem>>, %arg2: memref<640x512xbf16, #tpu.memory_space<vmem>>, %arg3: memref<1x512xf32, #tpu.memory_space<vmem>>, %arg4: memref<512x5xbf16, #tpu.memory_space<vmem>>, %arg5: memref<1x5xf32, #tpu.memory_space<vmem>>, %arg6: memref<4x5xf32, #tpu.memory_space<vmem>>, %arg7: memref<4x512xf32, #tpu.memory_space<vmem>>) attributes {dimension_semantics = [#tpu.dimension_semantics<arbitrary>], iteration_bounds = array<i64: 2>, scalar_prefetch = 0 : i64, scratch_operands = 1 : i64, tpu.core_type = #tpu.core_type<tc>, window_params = [{transform_indices = @transform_0, window_bounds = array<i64: 4, 640>}, {transform_indices = @transform_1, window_bounds = array<i64: 640, 512>}, {pipeline_mode = #tpu.pipeline_mode<synchronous>, transform_indices = @transform_2, window_bounds = array<i64: 1, 512>}, {pipeline_mode = #tpu.pipeline_mode<synchronous>, transform_indices = @transform_3, window_bounds = array<i64: 512, 5>}, {pipeline_mode = #tpu.pipeline_mode<synchronous>, transform_indices = @transform_4, window_bounds = array<i64: 1, 5>}, {pipeline_mode = #tpu.pipeline_mode<synchronous>, transform_indices = @transform_5, window_bounds = array<i64: 4, 5>}]} {
    %c0_i32 = arith.constant 0 : i32
    %0 = arith.cmpi eq, %arg0, %c0_i32 : i32
    %1 = arith.extui %0 : i1 to i32
    %c0_i32_0 = arith.constant 0 : i32
    %2 = arith.cmpi ne, %1, %c0_i32_0 : i32
    scf.if %2 {
      %cst_9 = arith.constant 0.000000e+00 : f32
      %12 = vector.broadcast %cst_9 : f32 to vector<4x512xf32>
      %c0_10 = arith.constant 0 : index
      %c0_11 = arith.constant 0 : index
      %13 = vector.load %arg7[%c0_10, %c0_11] : memref<4x512xf32, #tpu.memory_space<vmem>>, vector<4x512xf32>
      tpu.vector_store %arg7[%c0_10, %c0_11], %12 {strides = array<i32>} : memref<4x512xf32, #tpu.memory_space<vmem>>, vector<4x512xf32>,
    } else {
    }
    %c0 = arith.constant 0 : index
    %c0_1 = arith.constant 0 : index
    %3 = vector.load %arg7[%c0, %c0_1] : memref<4x512xf32, #tpu.memory_space<vmem>>, vector<4x512xf32>
    %c0_2 = arith.constant 0 : index
    %c0_3 = arith.constant 0 : index
    %4 = vector.load %arg1[%c0_2, %c0_3] : memref<4x640xbf16, #tpu.memory_space<vmem>>, vector<4x640xbf16>
    %c0_4 = arith.constant 0 : index
    %c0_5 = arith.constant 0 : index
    %5 = vector.load %arg2[%c0_4, %c0_5] : memref<640x512xbf16, #tpu.memory_space<vmem>>, vector<640x512xbf16>
    %cst = arith.constant dense<0.000000e+00> : vector<4x512xf32>
    %6 = tpu.matmul %4, %5, %cst {dimension_numbers = #tpu.dot_dimension_numbers<[1], [0], [0], [1], [0, 0, 1, 1], [], []>} : vector<4x640xbf16>, vector<640x512xbf16>, vector<4x512xf32> -> vector<4x512xf32>
    %7 = arith.addf %3, %6 : vector<4x512xf32>
    %c0_6 = arith.constant 0 : index
    %c0_7 = arith.constant 0 : index
    %8 = vector.load %arg7[%c0_6, %c0_7] : memref<4x512xf32, #tpu.memory_space<vmem>>, vector<4x512xf32>
    tpu.vector_store %arg7[%c0_6, %c0_7], %7 {strides = array<i32>} : memref<4x512xf32, #tpu.memory_space<vmem>>, vector<4x512xf32>,
    %c1_i32 = arith.constant 1 : i32
    %9 = arith.cmpi eq, %arg0, %c1_i32 : i32
    %10 = arith.extui %9 : i1 to i32
    %c0_i32_8 = arith.constant 0 : i32
    %11 = arith.cmpi ne, %10, %c0_i32_8 : i32
    scf.if %11 {
      %c0_9 = arith.constant 0 : index
      %c0_10 = arith.constant 0 : index
      %12 = vector.load %arg7[%c0_9, %c0_10] : memref<4x512xf32, #tpu.memory_space<vmem>>, vector<4x512xf32>
      %c0_11 = arith.constant 0 : index
      %c0_12 = arith.constant 0 : index
      %13 = vector.load %arg3[%c0_11, %c0_12] : memref<1x512xf32, #tpu.memory_space<vmem>>, vector<1x512xf32>
      %14 = vector.broadcast %13 : vector<1x512xf32> to vector<4x512xf32>
      %15 = arith.addf %12, %14 : vector<4x512xf32>
      %cst_13 = arith.constant 0.000000e+00 : f32
      %16 = vector.broadcast %cst_13 : f32 to vector<4x512xf32>
      %17 = arith.maximumf %15, %16 : vector<4x512xf32>
      %18 = arith.truncf %17 : vector<4x512xf32> to vector<4x512xbf16>
      %c0_14 = arith.constant 0 : index
      %c0_15 = arith.constant 0 : index
      %19 = vector.load %arg4[%c0_14, %c0_15] : memref<512x5xbf16, #tpu.memory_space<vmem>>, vector<512x5xbf16>
      %cst_16 = arith.constant dense<0.000000e+00> : vector<4x5xf32>
      %20 = tpu.matmul %18, %19, %cst_16 {dimension_numbers = #tpu.dot_dimension_numbers<[1], [0], [0], [1], [0, 0, 1, 1], [], []>} : vector<4x512xbf16>, vector<512x5xbf16>, vector<4x5xf32> -> vector<4x5xf32>
      %c0_17 = arith.constant 0 : index
      %c0_18 = arith.constant 0 : index
      %21 = vector.load %arg5[%c0_17, %c0_18] : memref<1x5xf32, #tpu.memory_space<vmem>>, vector<1x5xf32>
      %22 = vector.broadcast %21 : vector<1x5xf32> to vector<4x5xf32>
      %23 = arith.addf %20, %22 : vector<4x5xf32>
      %c0_19 = arith.constant 0 : index
      %c0_20 = arith.constant 0 : index
      %24 = vector.load %arg6[%c0_19, %c0_20] : memref<4x5xf32, #tpu.memory_space<vmem>>, vector<4x5xf32>
      tpu.vector_store %arg6[%c0_19, %c0_20], %23 {strides = array<i32>} : memref<4x5xf32, #tpu.memory_space<vmem>>, vector<4x5xf32>,
    } else {
    }
    return
  }
  func.func @transform_0(%arg0: i32) -> (i32, i32) {
    %c0_i32 = arith.constant 0 : i32
    %c0_i32_0 = arith.constant 0 : i32
    return %c0_i32, %arg0 : i32, i32
  }
  func.func @transform_1(%arg0: i32) -> (i32, i32) {
    %c0_i32 = arith.constant 0 : i32
    %c0_i32_0 = arith.constant 0 : i32
    return %arg0, %c0_i32 : i32, i32
  }
  func.func @transform_2(%arg0: i32) -> (i32, i32) {
    %c0_i32 = arith.constant 0 : i32
    %c0_i32_0 = arith.constant 0 : i32
    %c0_i32_1 = arith.constant 0 : i32
    return %c0_i32, %c0_i32_0 : i32, i32
  }
  func.func @transform_3(%arg0: i32) -> (i32, i32) {
    %c0_i32 = arith.constant 0 : i32
    %c0_i32_0 = arith.constant 0 : i32
    %c0_i32_1 = arith.constant 0 : i32
    return %c0_i32, %c0_i32_0 : i32, i32
  }
  func.func @transform_4(%arg0: i32) -> (i32, i32) {
    %c0_i32 = arith.constant 0 : i32
    %c0_i32_0 = arith.constant 0 : i32
    %c0_i32_1 = arith.constant 0 : i32
    return %c0_i32, %c0_i32_0 : i32, i32
  }
  func.func @transform_5(%arg0: i32) -> (i32, i32) {
    %c0_i32 = arith.constant 0 : i32
    %c0_i32_0 = arith.constant 0 : i32
    %c0_i32_1 = arith.constant 0 : i32
    return %c0_i32, %c0_i32_0 : i32, i32
  }
}

</mosaic_0001>

<bundles_post_ra>
// kernel: simple_cnn_forward.3
= control target key start
LH: loop header
LB: loop body
LE: loop exit
PB: predicated region body
PF: predicated region fallthrough
CT: control target
= control target key end

     0   :  { %s1649_s15 = smov 0   ;;  %s2040_s0 = inlined_call_operand.vmem [shape: bf16[4,32,90], index: 0, kind: input, shape index: {}]   ;;  %s2041_s1 = inlined_call_operand.vmem [shape: bf16[9,32,8], index: 1, kind: input, shape index: {}]   ;;  %s2042_s2 = inlined_call_operand.vmem [shape: f32[32,1], index: 2, kind: input, shape index: {}]   ;;  %s2043_s3 = inlined_call_operand.vmem [shape: f32[1,72], index: 3, kind: input, shape index: {}]   ;;  %s2044_s4 = inlined_call_operand.vmem [shape: bf16[4,32,72], index: 4, kind: output, shape index: {}]  }
   0x1 LB: > { %s1389_s16 = sadd.s32 4294967295, %s1618_s15   ;;  %p1393_p0 = scmp.ge.s32.totalorder %s1618_s15, 1  ;;  %s1618_s15 = sphi %s1649_s15, %s14_s15  }
   0x2   : > { %p162_p1 = scmp.lt.s32.totalorder %s1618_s15, 5 }
   0x4   : > { %p163_p2 = pnand %p1393_p0, %p162_p1 }
   0x5   : > { %p188_p3 = scmp.lt.s32.totalorder (!%p163_p2), %s1389_s16, 3  ;;  %s1620_s23 = smov (!%p163_p2), 119  }
   0x6   : > { %166 = sbr.rel (%p163_p2) target bundleno = 565 (0x235), region = 36  ;;  %s1621_s24 = smov (!%p163_p2), 127  }
   0x7   : > { %s1622_s25 = smov (!%p163_p2), 118  }
   0xb   : > { %s2046_s16 = smov (!%p188_p3, %s1389_s16), 3  ;;  %vm227_vm0 = vcmask 1043456   ;;  %v1672_v7 = vld [vmem:[%s2041_s1 + $0x10] sm:$0xff]  ;;  %vm220_vm1 = vcmask 64512   ;;  %v1683_v15 = vld [vmem:[%s2041_s1 + $0x18] sm:$0xff]  ;;  %v1701_v18 = vld [vmem:[%s2041_s1 + $0x40] sm:$0xff] }
   0xc   : > { %s1576_s17 = sshll.u32 %s2046_s16, 4  ;;  %v1693_v17 = vld [vmem:[%s2041_s1 + $0x30] sm:$0xff]  ;;  %v1708_v19 = vld [vmem:[%s2041_s1 + $0x48] sm:$0xff]  ;;  %v1716_v21 = vld [vmem:[%s2041_s1] sm:$0xff]  ;;  %vm1329_vm2 = vcmask 584704  }
   0xd   : > { %s192_s20 = scalar_lea.vmem %s2040_s0, %s1576_s17  ;;  %v1723_v22 = vld [vmem:[%s2041_s1 + $0x38] sm:$0xff]  ;;  %v1730_v23 = vld [vmem:[%s2041_s1 + $0x8] sm:$0xff]  ;;  %v1740_v26 = vld [vmem:[%s2041_s1 + $0x80] sm:$0xff]  ;;  %s2024_s26 = scalar_lea.vmem %s2044_s4, %s1576_s17 }
   0xe   : > { %v204_v0 = vld [vmem:[%s192_s20 + $0x4] sm:$0xf]  ;;  %v199_v1 = vld [vmem:[%s192_s20] sm:$0xf]  ;;  %v388_v5 = vld [vmem:[%s192_s20 + $0xc] sm:$0xf] }
   0xf   : > { %v553_v2 = vunpack.c.l.b16 %v204_v0  ;;  %v304_v3 = vunpack.c.l.b16 %v199_v1  ;;  %v1666_v4 = vsel %vm227_vm0, %v204_v0, 0  ;;  %v340_v6 = vld [vmem:[%s192_s20 + $0x8] sm:$0xf]  ;;  %v1675_v8 = vsel %vm227_vm0, %v388_v5, 0  ;;  %v1762_v34 = vld [vmem:[%s2041_s1 + $0x20] sm:$0xff]  ;;  %v1767_v35 = vld [vmem:[%s2041_s1 + $0x70] sm:$0xff] }
  0x10   : > { %238 = vmatpush.bf16.msra.mxu0 %v1666_v4  ;;  %v452_v11 = vunpack.c.l.b16 %v340_v6  ;;  %v751_v13 = vunpack.c.l.b16 %v388_v5  ;;  %v1688_v16 = vsel %vm227_vm0, %v340_v6, 0  ;;  %v267_v20 = vsel %vm227_vm0, %v199_v1, 0  ;;  %v1750_v27 = vld [vmem:[%s2041_s1 + $0x88] sm:$0xff]  ;;  %v1782_v40 = vld [vmem:[%s2041_s1 + $0x50] sm:$0xff]  ;;  %v1800_v42 = vld [vmem:[%s2041_s1 + $0x78] sm:$0xff] }
  0x11   : > { %v554_v9 = vpack.c.b16 %v553_v2, %v553_v2  ;;  %v305_v10 = vpack.c.b16 %v304_v3, %v304_v3  ;;  %372 = vmatpush.bf16.msra.mxu3 %v1688_v16  ;;  %276 = vmatpush.bf16.msra.mxu1 %v267_v20  ;;  %v1795_v41 = vld [vmem:[%s2041_s1 + $0x28] sm:$0xff]  ;;  %v1809_v43 = vld [vmem:[%s2041_s1 + $0x58] sm:$0xff]  ;;  %v1818_v44 = vld [vmem:[%s2041_s1 + $0x60] sm:$0xff] }
  0x12   : > { %v453_v12 = vpack.c.b16 %v452_v11, %v452_v11  ;;  %v752_v14 = vpack.c.b16 %v751_v13, %v751_v13  ;;  %v1837_v49 = vld [vmem:[%s2041_s1 + $0x68] sm:$0xff] }
  0x13   : > { %555 = vrot.lane.b32.xlu1 %v554_v9, %s1620_s23  ;;  %306 = vrot.lane.b32.xlu0 %v305_v10, %s1621_s24 }
  0x14   : > { %420 = vmatpush.bf16.msrb.mxu0 %v1675_v8  ;;  %604 = vrot.lane.b32.xlu2 %v305_v10, %s1622_s25 }
  0x15   : > { %1410 = vmatmul.msk.bf16.vlgmr.msra.gmra.mxu0 %vm220_vm1, %v1672_v7  ;;  %1448 = vmatmul.msk.bf16.vlgmr.msra.gmra.mxu3 %vm220_vm1, %v1693_v17 }
  0x16   : > { %1420 = vmatmul.msk.bf16.vlgmr.msra.gmra.mxu1 %vm220_vm1, %v1716_v21 }
  0x1b   : > { %454 = vrot.lane.b32.xlu1 %v453_v12, %s1621_s24  ;;  %503 = vrot.lane.b32.xlu0 %v305_v10, %s1620_s23 }
  0x1c   : > { %676 = vrot.lane.b32.xlu2 %v554_v9, %s1621_s24 }
  0x23   : > { %753 = vrot.lane.b32.xlu0 %v752_v14, %s1621_s24  ;;  %827 = vrot.lane.b32.xlu1 %v554_v9, %s1622_s25 }
  0x24   : > { %1045 = vrot.lane.b32.xlu2 %v453_v12, %s1622_s25 }
  0x25   : > { %1411 = vmatmul.msk.bf16.gmra.mxu0 %vm220_vm1, %v1683_v15  ;;  %1449 = vmatmul.msk.bf16.gmra.mxu3 %vm220_vm1, %v1723_v22 }
  0x26   : > { %1421 = vmatmul.msk.bf16.gmra.mxu1 %vm220_vm1, %v1730_v23 }
  0x2b   : > { %989 = vrot.lane.b32.xlu0 %v453_v12, %s1620_s23  ;;  %1017 = vrot.lane.b32.xlu1 %v752_v14, %s1620_s23 }
  0x2c   : > { %1253 = vrot.lane.b32.xlu2 %v752_v14, %s1622_s25 }
  0x35   : > { %1462 = vmatmul.msk.bf16.vlgmr.msrb.gmra.mxu0 %vm220_vm1, %v1701_v18 }
  0x45   : > { %1463 = vmatmul.msk.bf16.gmra.mxu0 %vm220_vm1, %v1708_v19 }
  0x6e   : > { %v605_v24 = vpop.permute.xlu2 %604 }
  0x6f   : > { %v1735_v25 = vsel %vm227_vm0, %v605_v24, 0 }
  0x70   : > { %622 = vmatpush.bf16.msra.mxu0 %v1735_v25 }
  0x73   : > { %1518 = vmatmul.msk.bf16.vlgmr.msra.gmra.mxu0 %vm220_vm1, %v1740_v26 }
  0x74   : > { %711 = vmatpush.bf16.msrb.mxu0 %v1675_v8 }
  0x76   : > { %v677_v28 = vpop.permute.xlu2 %676 }
  0x77   : > { %v679_v31 = vsel %vm227_vm0, %v677_v28, 0 }
  0x78   : > { %811 = vmatpush.bf16.msra.mxu0 %v1735_v25 }
  0x7e   : > { %v1046_v9 = vpop.permute.xlu2 %1045 }
  0x7f   : > { %v1892_v10 = vsel %vm227_vm0, %v1046_v9, 0 }
  0x83   : > { %1519 = vmatmul.msk.bf16.gmra.mxu0 %vm220_vm1, %v1750_v27 }
  0x85   : > { %v556_v29 = vpop.permute.xlu1 %555  ;;  %v307_v30 = vpop.permute.xlu0 %306 }
  0x86   : > { %v1756_v32 = vsel %vm227_vm0, %v556_v29, 0  ;;  %v315_v33 = vsel %vm227_vm0, %v307_v30, 0 }
  0x87   : > { %324 = vmatpush.bf16.msra.mxu2 %v315_v33  ;;  %573 = vmatpush.bf16.msrb.mxu3 %v1756_v32 }
  0x8a   : > { %1434 = vmatmul.msk.bf16.vlgmr.msra.gmra.mxu2 %vm220_vm1, %v1762_v34  ;;  %1504 = vmatmul.msk.bf16.vlgmr.msrb.gmra.mxu3 %vm220_vm1, %v1767_v35 }
  0x8b   : > { %688 = vmatpush.bf16.msra.mxu3 %v679_v31 }
  0x8d   : > { %v455_v36 = vpop.permute.xlu1 %454  ;;  %v504_v37 = vpop.permute.xlu0 %503 }
  0x8e   : > { %v1776_v38 = vsel %vm227_vm0, %v455_v36, 0  ;;  %v512_v39 = vsel %vm227_vm0, %v504_v37, 0 }
  0x8f   : > { %788 = vmatpush.bf16.msrb.mxu3 %v1756_v32  ;;  %472 = vmatpush.bf16.msrb.mxu1 %v1776_v38 }
  0x90   : > { %521 = vmatpush.bf16.msrb.mxu2 %v512_v39 }
  0x92   : > { %1476 = vmatmul.msk.bf16.vlgmr.msrb.gmra.mxu1 %vm220_vm1, %v1782_v40  ;;  %v240_v50 = vpop.f32.mrf.mxu0 }
  0x93   : > { %645 = vmatpush.bf16.msra.mxu1 %v315_v33  ;;  %1526 = vmatmul.msk.bf16.vlgmr.msrb.gmra.mxu0 %vm220_vm1, %v1693_v17  ;;  %v278_v53 = vpop.f32.mrf.mxu1 }
  0x94   : > { %664 = vmatpush.bf16.msra.mxu2 %v1666_v4  ;;  %904 = vmatpush.bf16.msrb.mxu0 %v1776_v38  ;;  %v279_v54 = vadd.f32 %v278_v53, %v240_v50 }
  0x95   : > { %v754_v45 = vpop.permute.xlu0 %753  ;;  %v828_v47 = vpop.permute.xlu1 %827 }
  0x96   : > { %v1826_v46 = vsel %vm227_vm0, %v754_v45, 0  ;;  %v830_v48 = vsel %vm227_vm0, %v828_v47, 0 }
  0x97   : > { %734 = vmatpush.bf16.msrb.mxu1 %v1776_v38 }
  0x98   : > { %v374_v61 = vpop.f32.mrf.mxu3 }
  0x9a   : > { %1435 = vmatmul.msk.bf16.gmra.mxu2 %vm220_vm1, %v1795_v41  ;;  %1505 = vmatmul.msk.bf16.gmra.mxu3 %vm220_vm1, %v1800_v42  ;;  %v242_v55 = vpop.f32.mrf.mxu0 }
  0x9b   : > { %v280_v56 = vpop.f32.mrf.mxu1 }
  0x9c   : > { %v281_v28 = vadd.f32 %v280_v56, %v242_v55 }
  0x9d   : > { %v990_v51 = vpop.permute.xlu0 %989  ;;  %v1018_v63 = vpop.permute.xlu1 %1017 }
  0x9e   : > { %v992_v52 = vsel %vm227_vm0, %v990_v51, 0  ;;  %v1876_v1 = vsel %vm227_vm0, %v1018_v63, 0 }
  0xa0   : > { %v376_v0 = vpop.f32.mrf.mxu3 }
  0xa2   : > { %1477 = vmatmul.msk.bf16.gmra.mxu1 %vm220_vm1, %v1809_v43  ;;  %v245_v57 = vpop.f32.mrf.mxu0 }
  0xa3   : > { %1527 = vmatmul.msk.bf16.gmra.mxu0 %vm220_vm1, %v1723_v22  ;;  %v283_v58 = vpop.f32.mrf.mxu1 }
  0xa4   : > { %v284_v59 = vadd.f32 %v283_v58, %v245_v57 }
  0xa8   : > { %v379_v3 = vpop.f32.mrf.mxu3 }
  0xaa   : > { %1490 = vmatmul.msk.bf16.vlgmr.msrb.gmra.mxu2 %vm220_vm1, %v1818_v44  ;;  %1524 = vmatmul.msk.bf16.vlgmr.msra.gmra.mxu3 %vm220_vm1, %v1762_v34  ;;  %v1863_v60 = vpop.f32.mrf.mxu0 }
  0xab   : > { %885 = vmatpush.bf16.msra.mxu3 %v1688_v16  ;;  %765 = vmatpush.bf16.msrb.mxu2 %v1826_v46 }
  0xb0   : > { %v381_v6 = vpop.f32.mrf.mxu3 }
  0xb2   : > { %1520 = vmatmul.msk.bf16.vlgmr.msra.gmra.mxu1 %vm220_vm1, %v1672_v7  ;;  %v422_v62 = vpop.f32.mrf.mxu0 }
  0xb3   : > { %1534 = vmatmul.msk.bf16.vlgmr.msra.gmra.mxu0 %vm220_vm1, %v1767_v35  ;;  %839 = vmatpush.bf16.msra.mxu1 %v830_v48 }
  0xb4   : > { %1001 = vmatpush.bf16.msra.mxu0 %v992_v52 }
  0xba   : > { %1491 = vmatmul.msk.bf16.gmra.mxu2 %vm220_vm1, %v1837_v49  ;;  %1525 = vmatmul.msk.bf16.gmra.mxu3 %vm220_vm1, %v1795_v41  ;;  %v424_v2 = vpop.f32.mrf.mxu0 }
  0xc2   : > { %1521 = vmatmul.msk.bf16.gmra.mxu1 %vm220_vm1, %v1683_v15  ;;  %v427_v4 = vpop.f32.mrf.mxu0 }
  0xc3   : > { %1535 = vmatmul.msk.bf16.gmra.mxu0 %vm220_vm1, %v1800_v42 }
  0xca   : > { %1522 = vmatmul.msk.bf16.vlgmr.msra.gmra.mxu2 %vm220_vm1, %v1716_v21  ;;  %1532 = vmatmul.msk.bf16.vlgmr.msrb.gmra.mxu3 %vm220_vm1, %v1818_v44  ;;  %v429_v5 = vpop.f32.mrf.mxu0 }
  0xcb   : > { %973 = vmatpush.bf16.msrb.mxu3 %v1735_v25  ;;  %866 = vmatpush.bf16.msra.mxu2 %v1675_v8 }
  0xd2   : > { %1528 = vmatmul.msk.bf16.vlgmr.msrb.gmra.mxu1 %vm220_vm1, %v1701_v18 }
  0xd3   : > { %927 = vmatpush.bf16.msrb.mxu1 %v512_v39  ;;  %1542 = vmatmul.msk.bf16.vlgmr.msrb.gmra.mxu0 %vm220_vm1, %v1762_v34 }
  0xd4   : > { %1103 = vmatpush.bf16.msrb.mxu0 %v1675_v8  ;;  %v285_v8 = vpop.f32.mrf.mxu1 }
  0xd5   : > { %v286_v52 = vadd.f32 %v285_v8, %v1863_v60 }
  0xda   : > { %1523 = vmatmul.msk.bf16.gmra.mxu2 %vm220_vm1, %v1730_v23  ;;  %1533 = vmatmul.msk.bf16.gmra.mxu3 %vm220_vm1, %v1837_v49 }
  0xe2   : > { %1529 = vmatmul.msk.bf16.gmra.mxu1 %vm220_vm1, %v1708_v19 }
  0xe3   : > { %1543 = vmatmul.msk.bf16.gmra.mxu0 %vm220_vm1, %v1795_v41 }
  0xea   : > { %1530 = vmatmul.msk.bf16.vlgmr.msrb.gmra.mxu2 %vm220_vm1, %v1782_v40  ;;  %1540 = vmatmul.msk.bf16.vlgmr.msra.gmra.mxu3 %vm220_vm1, %v1716_v21 }
  0xeb   : > { %950 = vmatpush.bf16.msrb.mxu2 %v1756_v32  ;;  %1084 = vmatpush.bf16.msra.mxu3 %v1776_v38 }
  0xf0   : > { %v624_v11 = vpop.f32.mrf.mxu0 }
  0xf2   : > { %1536 = vmatmul.msk.bf16.vlgmr.msra.gmra.mxu1 %vm220_vm1, %v1740_v26 }
  0xf3   : > { %1550 = vmatmul.msk.bf16.vlgmr.msra.gmra.mxu0 %vm220_vm1, %v1818_v44  ;;  %1029 = vmatpush.bf16.msra.mxu1 %v1876_v1 }
  0xf4   : > { %1191 = vmatpush.bf16.msra.mxu0 %v830_v48 }
  0xf8   : > { %v626_v30 = vpop.f32.mrf.mxu0 }
  0xfa   : > { %1531 = vmatmul.msk.bf16.gmra.mxu2 %vm220_vm1, %v1809_v43  ;;  %1541 = vmatmul.msk.bf16.gmra.mxu3 %vm220_vm1, %v1730_v23 }
 0x102   : > { %1537 = vmatmul.msk.bf16.gmra.mxu1 %vm220_vm1, %v1750_v27 }
 0x103   : > { %1551 = vmatmul.msk.bf16.gmra.mxu0 %vm220_vm1, %v1837_v49 }
 0x10a   : > { %1538 = vmatmul.msk.bf16.vlgmr.msra.gmra.mxu2 %vm220_vm1, %v1672_v7  ;;  %1548 = vmatmul.msk.bf16.vlgmr.msrb.gmra.mxu3 %vm220_vm1, %v1782_v40 }
 0x10b   : > { %1168 = vmatpush.bf16.msrb.mxu3 %v1735_v25  ;;  %1057 = vmatpush.bf16.msra.mxu2 %v1892_v10 }
 0x10d   : > { %v326_v12 = vpop.f32.mrf.mxu2  ;;  %v575_v13 = vpop.f32.mrf.mxu3 }
 0x10e   : > { %v336_v14 = vadd.f32 %v326_v12, %v279_v54 }
 0x10f   : > { %v474_v16 = vpop.f32.mrf.mxu1 }
 0x110   : > { %v384_v20 = vadd.f32 %v374_v61, %v336_v14 }
 0x112   : > { %v432_v24 = vadd.f32 %v422_v62, %v384_v20  ;;  %1544 = vmatmul.msk.bf16.vlgmr.msrb.gmra.mxu1 %vm220_vm1, %v1693_v17 }
 0x113   : > { %1122 = vmatpush.bf16.msrb.mxu1 %v1826_v46  ;;  %1558 = vmatmul.msk.bf16.vlgmr.msrb.gmra.mxu0 %vm220_vm1, %v1716_v21  ;;  %v629_v21 = vpop.f32.mrf.mxu0 }
 0x114   : > { %v484_v29 = vadd.f32 %v474_v16, %v432_v24 }
 0x115   : > { %v328_v25 = vpop.f32.mrf.mxu2  ;;  %v577_v31 = vpop.f32.mrf.mxu3 }
 0x116   : > { %v337_v33 = vadd.f32 %v328_v25, %v281_v28 }
 0x117   : > { %v476_v36 = vpop.f32.mrf.mxu1 }
 0x118   : > { %v385_v37 = vadd.f32 %v376_v0, %v337_v33 }
 0x11a   : > { %v433_v38 = vadd.f32 %v424_v2, %v385_v37  ;;  %1539 = vmatmul.msk.bf16.gmra.mxu2 %vm220_vm1, %v1683_v15  ;;  %1549 = vmatmul.msk.bf16.gmra.mxu3 %vm220_vm1, %v1809_v43 }
 0x11b   : > { %v631_v61 = vpop.f32.mrf.mxu0 }
 0x11c   : > { %v485_v39 = vadd.f32 %v476_v36, %v433_v38 }
 0x11d   : > { %v331_v45 = vpop.f32.mrf.mxu2  ;;  %v580_v46 = vpop.f32.mrf.mxu3 }
 0x11e   : > { %v338_v47 = vadd.f32 %v331_v45, %v284_v59 }
 0x11f   : > { %v479_v48 = vpop.f32.mrf.mxu1 }
 0x120   : > { %v386_v50 = vadd.f32 %v379_v3, %v338_v47 }
 0x122   : > { %v434_v51 = vadd.f32 %v427_v4, %v386_v50  ;;  %1545 = vmatmul.msk.bf16.gmra.mxu1 %vm220_vm1, %v1723_v22 }
 0x123   : > { %1559 = vmatmul.msk.bf16.gmra.mxu0 %vm220_vm1, %v1730_v23  ;;  %v713_v3 = vpop.f32.mrf.mxu0 }
 0x124   : > { %v486_v53 = vadd.f32 %v479_v48, %v434_v51 }
 0x125   : > { %v333_v54 = vpop.f32.mrf.mxu2  ;;  %v582_v55 = vpop.f32.mrf.mxu3 }
 0x126   : > { %v339_v56 = vadd.f32 %v333_v54, %v286_v52 }
 0x127   : > { %v481_v57 = vpop.f32.mrf.mxu1 }
 0x128   : > { %v387_v58 = vadd.f32 %v381_v6, %v339_v56 }
 0x12a   : > { %v435_v59 = vadd.f32 %v429_v5, %v387_v58  ;;  %1546 = vmatmul.msk.bf16.vlgmr.msrb.gmra.mxu2 %vm220_vm1, %v1701_v18  ;;  %1556 = vmatmul.msk.bf16.vlgmr.msra.gmra.mxu3 %vm220_vm1, %v1672_v7 }
 0x12b   : > { %1145 = vmatpush.bf16.msrb.mxu2 %v1756_v32 }
 0x12c   : > { %v487_v62 = vadd.f32 %v481_v57, %v435_v59 }
 0x12d   : > { %v523_v23 = vpop.f32.mrf.mxu2  ;;  %v690_v63 = vpop.f32.mrf.mxu3 }
 0x12e   : > { %v533_v60 = vadd.f32 %v523_v23, %v484_v29 }
 0x12f   : > { %v647_v0 = vpop.f32.mrf.mxu1 }
 0x130   : > { %v585_v2 = vadd.f32 %v575_v13, %v533_v60 }
 0x132   : > { %1552 = vmatmul.msk.bf16.vlgmr.msra.gmra.mxu1 %vm220_vm1, %v1767_v35  ;;  %v1921_v4 = vadd.f32 %v624_v11, %v585_v2  ;;  %v715_v11 = vpop.f32.mrf.mxu0 }
 0x133   : > { %1214 = vmatpush.bf16.msra.mxu1 %v1876_v1  ;;  %1566 = vmatmul.msk.bf16.vlgmr.msra.gmra.mxu0 %vm220_vm1, %v1782_v40 }
 0x135   : > { %v525_v7 = vpop.f32.mrf.mxu2  ;;  %v692_v5 = vpop.f32.mrf.mxu3 }
 0x136   : > { %v534_v32 = vadd.f32 %v525_v7, %v485_v39  ;;  %v1254_v39 = vpop.permute.xlu2 %1253 }
 0x137   : > { %v649_v6 = vpop.f32.mrf.mxu1  ;;  %v1256_v45 = vsel %vm227_vm0, %v1254_v39, 0 }
 0x138   : > { %v586_v8 = vadd.f32 %v577_v31, %v534_v32  ;;  %1265 = vmatpush.bf16.msra.mxu3 %v1256_v45 }
 0x13a   : > { %1547 = vmatmul.msk.bf16.gmra.mxu2 %vm220_vm1, %v1708_v19  ;;  %1557 = vmatmul.msk.bf16.gmra.mxu3 %vm220_vm1, %v1683_v15  ;;  %v1930_v9 = vadd.f32 %v626_v30, %v586_v8  ;;  %v718_v15 = vpop.f32.mrf.mxu0 }
 0x13d   : > { %v528_v12 = vpop.f32.mrf.mxu2  ;;  %v695_v13 = vpop.f32.mrf.mxu3 }
 0x13e   : > { %v535_v1 = vadd.f32 %v528_v12, %v486_v53 }
 0x13f   : > { %v652_v14 = vpop.f32.mrf.mxu1 }
 0x140   : > { %v587_v16 = vadd.f32 %v580_v46, %v535_v1 }
 0x142   : > { %1553 = vmatmul.msk.bf16.gmra.mxu1 %vm220_vm1, %v1800_v42  ;;  %v1934_v40 = vadd.f32 %v629_v21, %v587_v16  ;;  %v720_v38 = vpop.f32.mrf.mxu0 }
 0x143   : > { %1567 = vmatmul.msk.bf16.gmra.mxu0 %vm220_vm1, %v1809_v43 }
 0x145   : > { %v530_v20 = vpop.f32.mrf.mxu2  ;;  %v697_v24 = vpop.f32.mrf.mxu3 }
 0x146   : > { %v536_v28 = vadd.f32 %v530_v20, %v487_v62 }
 0x147   : > { %v654_v29 = vpop.f32.mrf.mxu1 }
 0x148   : > { %v588_v30 = vadd.f32 %v582_v55, %v536_v28 }
 0x14a   : > { %1554 = vmatmul.msk.bf16.vlgmr.msra.gmra.mxu2 %vm220_vm1, %v1740_v26  ;;  %1564 = vmatmul.msk.bf16.vlgmr.msrb.gmra.mxu3 %vm220_vm1, %v1701_v18  ;;  %v1942_v25 = vadd.f32 %v631_v61, %v588_v30  ;;  %v813_v52 = vpop.f32.mrf.mxu0 }
 0x14b   : > { %1237 = vmatpush.bf16.msra.mxu2 %v1892_v10 }
 0x14d   : > { %v666_v31 = vpop.f32.mrf.mxu2  ;;  %v790_v33 = vpop.f32.mrf.mxu3 }
 0x14e   : > { %v667_v36 = vadd.f32 %v666_v31, %v647_v0 }
 0x14f   : > { %v736_v43 = vpop.f32.mrf.mxu1 }
 0x150   : > { %v700_v37 = vadd.f32 %v690_v63, %v667_v36  ;;  %v1285_v36 = vld [vmem:[%s2042_s2] sm:$0xff] }
 0x152   : > { %v723_v46 = vadd.f32 %v713_v3, %v700_v37  ;;  %1560 = vmatmul.msk.bf16.vlgmr.msrb.gmra.mxu1 %vm220_vm1, %v1762_v34  ;;  %v815_v59 = vpop.f32.mrf.mxu0 }
 0x154   : > { %v746_v47 = vadd.f32 %v736_v43, %v723_v46 }
 0x155   : > { %v668_v18 = vpop.f32.mrf.mxu2  ;;  %v792_v21 = vpop.f32.mrf.mxu3 }
 0x156   : > { %v669_v48 = vadd.f32 %v668_v18, %v649_v6  ;;  %v1286_v18 = vld [vmem:[%s2042_s2 + $0x8] sm:$0xff] }
 0x157   : > { %v738_v50 = vpop.f32.mrf.mxu1 }
 0x158   : > { %v701_v10 = vadd.f32 %v692_v5, %v669_v48 }
 0x15a   : > { %v724_v51 = vadd.f32 %v715_v11, %v701_v10  ;;  %1555 = vmatmul.msk.bf16.gmra.mxu2 %vm220_vm1, %v1750_v27  ;;  %1565 = vmatmul.msk.bf16.gmra.mxu3 %vm220_vm1, %v1708_v19 }
 0x15c   : > { %v747_v53 = vadd.f32 %v738_v50, %v724_v51 }
 0x15d   : > { %v671_v54 = vpop.f32.mrf.mxu2  ;;  %v795_v55 = vpop.f32.mrf.mxu3 }
 0x15e   : > { %v672_v56 = vadd.f32 %v671_v54, %v652_v14 }
 0x15f   : > { %v741_v34 = vpop.f32.mrf.mxu1 }
 0x160   : > { %v702_v57 = vadd.f32 %v695_v13, %v672_v56 }
 0x162   : > { %v725_v58 = vadd.f32 %v718_v15, %v702_v57  ;;  %1561 = vmatmul.msk.bf16.gmra.mxu1 %vm220_vm1, %v1795_v41  ;;  %v818_v41 = vpop.f32.mrf.mxu0 }
 0x164   : > { %v748_v61 = vadd.f32 %v741_v34, %v725_v58 }
 0x165   : > { %v673_v62 = vpop.f32.mrf.mxu2  ;;  %v797_v23 = vpop.f32.mrf.mxu3 }
 0x166   : > { %v674_v63 = vadd.f32 %v673_v62, %v654_v29 }
 0x167   : > { %v743_v60 = vpop.f32.mrf.mxu1 }
 0x168   : > { %v703_v0 = vadd.f32 %v697_v24, %v674_v63 }
 0x16a   : > { %v726_v2 = vadd.f32 %v720_v38, %v703_v0  ;;  %1562 = vmatmul.msk.bf16.vlgmr.msrb.gmra.mxu2 %vm220_vm1, %v1693_v17  ;;  %1572 = vmatmul.msk.bf16.vlgmr.msra.gmra.mxu3 %vm220_vm1, %v1740_v26  ;;  %v820_v16 = vpop.f32.mrf.mxu0 }
 0x16c   : > { %v749_v19 = vadd.f32 %v743_v60, %v726_v2 }
 0x16d   : > { %v767_v3 = vpop.f32.mrf.mxu2  ;;  %v887_v7 = vpop.f32.mrf.mxu3 }
 0x16e   : > { %v777_v5 = vadd.f32 %v767_v3, %v746_v47 }
 0x16f   : > { %v841_v32 = vpop.f32.mrf.mxu1 }
 0x170   : > { %v800_v6 = vadd.f32 %v790_v33, %v777_v5  ;;  %v1623_v33 = vmov 0  }
 0x171   : > { %1608 = vset.pattern.permute.xlu0 %v1623_v33  ;;  %1609 = vset.pattern.permute.xlu1 %v1623_v33 }
 0x172   : > { %v823_v8 = vadd.f32 %v813_v52, %v800_v6  ;;  %1568 = vmatmul.msk.bf16.vlgmr.msra.gmra.mxu1 %vm220_vm1, %v1818_v44  ;;  %1291 = vperm.xlu0 %1608, %v1285_v36   ;;  %v1287_v6 = vld [vmem:[%s2042_s2 + $0x10] sm:$0xff] }
 0x173   : > { %1610 = vset.pattern.permute.xlu2 %v1623_v33  ;;  %1296 = vperm.xlu1 %1609, %v1286_v18  }
 0x174   : > { %v1960_v11 = vadd.f32 %v841_v32, %v823_v8  ;;  %1301 = vperm.xlu2 %1610, %v1287_v6  }
 0x175   : > { %v769_v12 = vpop.f32.mrf.mxu2  ;;  %v889_v13 = vpop.f32.mrf.mxu3 }
 0x176   : > { %v855_v17 = vmax.f32 %v1921_v4, %v1960_v11  ;;  %v778_v1 = vadd.f32 %v769_v12, %v747_v53 }
 0x177   : > { %v843_v26 = vpop.f32.mrf.mxu1 }
 0x178   : > { %v801_v14 = vadd.f32 %v792_v21, %v778_v1 }
 0x17a   : > { %v824_v20 = vadd.f32 %v815_v59, %v801_v14  ;;  %1563 = vmatmul.msk.bf16.gmra.mxu2 %vm220_vm1, %v1723_v22  ;;  %1573 = vmatmul.msk.bf16.gmra.mxu3 %vm220_vm1, %v1750_v27  ;;  %v906_v27 = vpop.f32.mrf.mxu0 }
 0x17c   : > { %v1968_v24 = vadd.f32 %v843_v26, %v824_v20 }
 0x17d   : > { %v772_v44 = vpop.f32.mrf.mxu2  ;;  %v892_v28 = vpop.f32.mrf.mxu3 }
 0x17e   : > { %v856_v15 = vmax.f32 %v1930_v9, %v1968_v24  ;;  %v779_v29 = vadd.f32 %v772_v44, %v748_v61 }
 0x17f   : > { %v846_v30 = vpop.f32.mrf.mxu1 }
 0x180   : > { %v802_v31 = vadd.f32 %v795_v55, %v779_v29  ;;  %v1288_v55 = vld [vmem:[%s2042_s2 + $0x18] sm:$0xff] }
 0x181   : > { %1306 = vperm.xlu1 %1609, %v1288_v55  }
 0x182   : > { %v825_v22 = vadd.f32 %v818_v41, %v802_v31  ;;  %1569 = vmatmul.msk.bf16.gmra.mxu1 %vm220_vm1, %v1837_v49  ;;  %v908_v50 = vpop.f32.mrf.mxu0 }
 0x184   : > { %v1977_v43 = vadd.f32 %v846_v30, %v825_v22 }
 0x185   : > { %v774_v37 = vpop.f32.mrf.mxu2  ;;  %v894_v46 = vpop.f32.mrf.mxu3 }
 0x186   : > { %v857_v38 = vmax.f32 %v1934_v40, %v1977_v43  ;;  %v780_v39 = vadd.f32 %v774_v37, %v749_v19 }
 0x187   : > { %v848_v45 = vpop.f32.mrf.mxu1 }
 0x188   : > { %v803_v47 = vadd.f32 %v797_v23, %v780_v39 }
 0x18a   : > { %v826_v21 = vadd.f32 %v820_v16, %v803_v47  ;;  %1570 = vmatmul.msk.bf16.vlgmr.msra.gmra.mxu2 %vm220_vm1, %v1767_v35  ;;  %v911_v58 = vpop.f32.mrf.mxu0 }
 0x18c   : > { %v1986_v49 = vadd.f32 %v848_v45, %v826_v21 }
 0x18d   : > { %v868_v48 = vpop.f32.mrf.mxu2  ;;  %v975_v54 = vpop.f32.mrf.mxu3 }
 0x18e   : > { %v858_v10 = vmax.f32 %v1942_v25, %v1986_v49  ;;  %v888_v51 = vadd.f32 %v887_v7, %v868_v48 }
 0x18f   : > { %v929_v52 = vpop.f32.mrf.mxu1 }
 0x190   : > { %v916_v53 = vadd.f32 %v906_v27, %v888_v51 }
 0x192   : > { %v939_v56 = vadd.f32 %v929_v52, %v916_v53  ;;  %v913_v2 = vpop.f32.mrf.mxu0 }
 0x195   : > { %v870_v34 = vpop.f32.mrf.mxu2  ;;  %v977_v62 = vpop.f32.mrf.mxu3 }
 0x196   : > { %v890_v35 = vadd.f32 %v889_v13, %v870_v34 }
 0x197   : > { %v931_v57 = vpop.f32.mrf.mxu1 }
 0x198   : > { %v917_v61 = vadd.f32 %v908_v50, %v890_v35 }
 0x19a   : > { %v940_v59 = vadd.f32 %v931_v57, %v917_v61  ;;  %1571 = vmatmul.msk.bf16.gmra.mxu2 %vm220_vm1, %v1800_v42  ;;  %v1003_v12 = vpop.f32.mrf.mxu0 }
 0x19d   : > { %v873_v23 = vpop.f32.mrf.mxu2  ;;  %v980_v7 = vpop.f32.mrf.mxu3 }
 0x19e   : > { %v893_v63 = vadd.f32 %v892_v28, %v873_v23 }
 0x19f   : > { %v934_v60 = vpop.f32.mrf.mxu1 }
 0x1a0   : > { %v918_v0 = vadd.f32 %v911_v58, %v893_v63 }
 0x1a2   : > { %v941_v19 = vadd.f32 %v934_v60, %v918_v0  ;;  %v1005_v44 = vpop.f32.mrf.mxu0 }
 0x1a5   : > { %v875_v3 = vpop.f32.mrf.mxu2  ;;  %v982_v26 = vpop.f32.mrf.mxu3 }
 0x1a6   : > { %v895_v5 = vadd.f32 %v894_v46, %v875_v3 }
 0x1a7   : > { %v936_v32 = vpop.f32.mrf.mxu1 }
 0x1a8   : > { %v919_v41 = vadd.f32 %v913_v2, %v895_v5 }
 0x1aa   : > { %v942_v8 = vadd.f32 %v936_v32, %v919_v41  ;;  %v1008_v39 = vpop.f32.mrf.mxu0 }
 0x1ad   : > { %v952_v42 = vpop.f32.mrf.mxu2  ;;  %v1086_v33 = vpop.f32.mrf.mxu3 }
 0x1ae   : > { %v962_v13 = vadd.f32 %v952_v42, %v939_v56 }
 0x1af   : > { %v1031_v1 = vpop.f32.mrf.mxu1 }
 0x1b0   : > { %v985_v14 = vadd.f32 %v975_v54, %v962_v13 }
 0x1b2   : > { %v1013_v16 = vadd.f32 %v1003_v12, %v985_v14  ;;  %v1010_v52 = vpop.f32.mrf.mxu0 }
 0x1b4   : > { %v1041_v20 = vadd.f32 %v1031_v1, %v1013_v16 }
 0x1b5   : > { %v954_v28 = vpop.f32.mrf.mxu2  ;;  %v1088_v18 = vpop.f32.mrf.mxu3 }
 0x1b6   : > { %v963_v29 = vadd.f32 %v954_v28, %v940_v59 }
 0x1b7   : > { %v1033_v30 = vpop.f32.mrf.mxu1 }
 0x1b8   : > { %v986_v31 = vadd.f32 %v977_v62, %v963_v29 }
 0x1ba   : > { %v1014_v36 = vadd.f32 %v1005_v44, %v986_v31  ;;  %v1105_v62 = vpop.f32.mrf.mxu0 }
 0x1bb   : > { %v1106_v40 = vadd.f32 %v1105_v62, %v1086_v33 }
 0x1bc   : > { %v1042_v22 = vadd.f32 %v1033_v30, %v1014_v36 }
 0x1bd   : > { %v957_v27 = vpop.f32.mrf.mxu2  ;;  %v1091_v34 = vpop.f32.mrf.mxu3 }
 0x1be   : > { %v964_v37 = vadd.f32 %v957_v27, %v941_v19 }
 0x1bf   : > { %v1036_v46 = vpop.f32.mrf.mxu1 }
 0x1c0   : > { %v987_v45 = vadd.f32 %v980_v7, %v964_v37 }
 0x1c2   : > { %v1015_v47 = vadd.f32 %v1008_v39, %v987_v45  ;;  %v1107_v4 = vpop.f32.mrf.mxu0 }
 0x1c4   : > { %v1043_v21 = vadd.f32 %v1036_v46, %v1015_v47 }
 0x1c5   : > { %v959_v48 = vpop.f32.mrf.mxu2  ;;  %v1093_v59 = vpop.f32.mrf.mxu3 }
 0x1c6   : > { %v965_v50 = vadd.f32 %v959_v48, %v942_v8 }
 0x1c7   : > { %v1038_v54 = vpop.f32.mrf.mxu1 }
 0x1c8   : > { %v988_v51 = vadd.f32 %v982_v26, %v965_v50  ;;  %v1108_v26 = vadd.f32 %v1107_v4, %v1088_v18 }
 0x1ca   : > { %v1016_v53 = vadd.f32 %v1010_v52, %v988_v51  ;;  %v1110_v24 = vpop.f32.mrf.mxu0  ;;  %v1611_v51 = vld [vmem:[%s2043_s3] ss:$0 sm:$0xff] }
 0x1cb   : > { %v1111_v28 = vadd.f32 %v1110_v24, %v1091_v34 }
 0x1cc   : > { %v1044_v55 = vadd.f32 %v1038_v54, %v1016_v53 }
 0x1cd   : > { %v1059_v56 = vpop.f32.mrf.mxu2  ;;  %v1170_v19 = vpop.f32.mrf.mxu3 }
 0x1ce   : > { %v1069_v35 = vadd.f32 %v1059_v56, %v1041_v20 }
 0x1cf   : > { %v1124_v63 = vpop.f32.mrf.mxu1 }
 0x1d0   : > { %v1073_v57 = vmax.f32 %v855_v17, %v1069_v35  ;;  %v1134_v8 = vadd.f32 %v1124_v63, %v1106_v40 }
 0x1d2   : > { %v1112_v6 = vpop.f32.mrf.mxu0 }
 0x1d5   : > { %v1061_v58 = vpop.f32.mrf.mxu2  ;;  %v1172_v9 = vpop.f32.mrf.mxu3 }
 0x1d6   : > { %v1070_v61 = vadd.f32 %v1061_v58, %v1042_v22 }
 0x1d7   : > { %v1126_v3 = vpop.f32.mrf.mxu1 }
 0x1d8   : > { %v2004_v23 = vmax.f32 %v856_v15, %v1070_v61  ;;  %v1135_v49 = vadd.f32 %v1126_v3, %v1108_v26 }
 0x1da   : > { %v1193_v12 = vpop.f32.mrf.mxu0 }
 0x1dd   : > { %v1064_v60 = vpop.f32.mrf.mxu2  ;;  %v1175_v41 = vpop.f32.mrf.mxu3 }
 0x1de   : > { %v1071_v0 = vadd.f32 %v1064_v60, %v1043_v21  ;;  %v1113_v21 = vadd.f32 %v1112_v6, %v1093_v59 }
 0x1df   : > { %v1129_v5 = vpop.f32.mrf.mxu1 }
 0x1e0   : > { %v2009_v2 = vmax.f32 %v857_v38, %v1071_v0  ;;  %v1136_v36 = vadd.f32 %v1129_v5, %v1111_v28 }
 0x1e2   : > { %v1195_v20 = vpop.f32.mrf.mxu0 }
 0x1e4   : > { %v1292_v45 = vpop.permute.xlu0 %1291 }
 0x1e5   : > { %v1066_v11 = vpop.f32.mrf.mxu2  ;;  %v1177_v42 = vpop.f32.mrf.mxu3 }
 0x1e6   : > { %v1072_v17 = vadd.f32 %v1066_v11, %v1044_v55 }
 0x1e7   : > { %v1131_v43 = vpop.f32.mrf.mxu1 }
 0x1e8   : > { %v2014_v7 = vmax.f32 %v858_v10, %v1072_v17  ;;  %v1137_v54 = vadd.f32 %v1131_v43, %v1113_v21 }
 0x1ea   : > { %v1198_v46 = vpop.f32.mrf.mxu0 }
 0x1ed   : > { %v1147_v15 = vpop.f32.mrf.mxu2  ;;  %v1267_v44 = vpop.f32.mrf.mxu3 }
 0x1ee   : > { %v1157_v13 = vadd.f32 %v1147_v15, %v1134_v8 }
 0x1ef   : > { %v1216_v1 = vpop.f32.mrf.mxu1 }
 0x1f0   : > { %v1180_v14 = vadd.f32 %v1170_v19, %v1157_v13 }
 0x1f2   : > { %v1203_v10 = vadd.f32 %v1193_v12, %v1180_v14  ;;  %v1200_v19 = vpop.f32.mrf.mxu0 }
 0x1f4   : > { %v1226_v29 = vadd.f32 %v1216_v1, %v1203_v10 }
 0x1f5   : > { %v1149_v32 = vpop.f32.mrf.mxu2  ;;  %v1269_v18 = vpop.f32.mrf.mxu3 }
 0x1f6   : > { %v1158_v16 = vadd.f32 %v1149_v32, %v1135_v49 }
 0x1f7   : > { %v1218_v31 = vpop.f32.mrf.mxu1 }
 0x1f8   : > { %v1181_v30 = vadd.f32 %v1172_v9, %v1158_v16 }
 0x1fa   : > { %v1204_v27 = vadd.f32 %v1195_v20, %v1181_v30 }
 0x1fc   : > { %v1227_v48 = vadd.f32 %v1218_v31, %v1204_v27 }
 0x1fd   : > { %v1152_v38 = vpop.f32.mrf.mxu2  ;;  %v1272_v11 = vpop.f32.mrf.mxu3 }
 0x1fe   : > { %v1159_v37 = vadd.f32 %v1152_v38, %v1136_v36 }
 0x1ff   : > { %v1221_v34 = vpop.f32.mrf.mxu1 }
 0x200   : > { %v1182_v50 = vadd.f32 %v1175_v41, %v1159_v37  ;;  %v1302_v41 = vpop.permute.xlu2 %1301 }
 0x202   : > { %v1205_v35 = vadd.f32 %v1198_v46, %v1182_v50 }
 0x204   : > { %v1228_v60 = vadd.f32 %v1221_v34, %v1205_v35 }
 0x205   : > { %v1154_v25 = vpop.f32.mrf.mxu2 }
 0x206   : > { %v1160_v58 = vadd.f32 %v1154_v25, %v1137_v54 }
 0x207   : > { %v1223_v32 = vpop.f32.mrf.mxu1 }
 0x208   : > { %v1183_v0 = vadd.f32 %v1177_v42, %v1160_v58  ;;  %v1274_v42 = vpop.f32.mrf.mxu3 }
 0x20a   : > { %v1206_v24 = vadd.f32 %v1200_v19, %v1183_v0 }
 0x20c   : > { %v1229_v40 = vadd.f32 %v1223_v32, %v1206_v24 }
 0x20d   : > { %v1239_v33 = vpop.f32.mrf.mxu2 }
 0x20e   : > { %v1249_v22 = vadd.f32 %v1239_v33, %v1226_v29 }
 0x210   : > { %v1277_v39 = vadd.f32 %v1267_v44, %v1249_v22 }
 0x212   : > { %v1281_v47 = vmax.f32 %v1073_v57, %v1277_v39  ;;  %v1297_v57 = vpop.permute.xlu1 %1296 }
 0x214   : > { %v1309_v52 = vadd.f32 %v1292_v45, %v1281_v47 }
 0x215   : > { %v1241_v53 = vpop.f32.mrf.mxu2 }
 0x216   : > { %v1313_v55 = vmax.f32 %v1309_v52, 0.0  ;;  %v1250_v56 = vadd.f32 %v1241_v53, %v1227_v48 }
 0x218   : > { %v1321_v61 = vmul.f32 %v1611_v51, %v1313_v55  ;;  %v1278_v62 = vadd.f32 %v1269_v18, %v1250_v56 }
 0x21a   : > { %v1325_v59 = vpack.c.bf16 %v1321_v61, %v1321_v61  ;;  %v1282_v63 = vmax.f32 %v2004_v23, %v1278_v62  ;;  %v1307_v25 = vpop.permute.xlu1 %1306 }
 0x21c   : > { %1330 = vst.msk [vmem:[%s2024_s26] sm:$0xf] %vm1329_vm2, %v1325_v59  ;;  %v1310_v4 = vadd.f32 %v1297_v57, %v1282_v63 }
 0x21d   : > { %v1244_v17 = vpop.f32.mrf.mxu2 }
 0x21e   : > { %v1314_v3 = vmax.f32 %v1310_v4, 0.0  ;;  %v1251_v9 = vadd.f32 %v1244_v17, %v1228_v60 }
 0x220   : > { %v1322_v15 = vmul.f32 %v1611_v51, %v1314_v3  ;;  %v1279_v5 = vadd.f32 %v1272_v11, %v1251_v9 }
 0x222   : > { %v1326_v6 = vpack.c.bf16 %v1322_v15, %v1322_v15  ;;  %v1283_v23 = vmax.f32 %v2009_v2, %v1279_v5 }
 0x224   : > { %1331 = vst.msk [vmem:[%s2024_s26 + $0x4] sm:$0xf] %vm1329_vm2, %v1326_v6  ;;  %v1311_v43 = vadd.f32 %v1302_v41, %v1283_v23 }
 0x225   : > { %v1246_v38 = vpop.f32.mrf.mxu2 }
 0x226   : > { %v1315_v8 = vmax.f32 %v1311_v43, 0.0  ;;  %v1252_v12 = vadd.f32 %v1246_v38, %v1229_v40 }
 0x228   : > { %v1323_v13 = vmul.f32 %v1611_v51, %v1315_v8  ;;  %v1280_v1 = vadd.f32 %v1274_v42, %v1252_v12 }
 0x22a   : > { %v1327_v26 = vpack.c.bf16 %v1323_v13, %v1323_v13  ;;  %v1284_v14 = vmax.f32 %v2014_v7, %v1280_v1 }
 0x22c   : > { %1332 = vst.msk [vmem:[%s2024_s26 + $0x8] sm:$0xf] %vm1329_vm2, %v1327_v26  ;;  %v1312_v49 = vadd.f32 %v1307_v25, %v1284_v14 }
 0x22e   : > { %v1316_v10 = vmax.f32 %v1312_v49, 0.0 }
 0x230   : > { %v1324_v2 = vmul.f32 %v1611_v51, %v1316_v10 }
 0x232   : > { %v1328_v16 = vpack.c.bf16 %v1324_v2, %v1324_v2 }
 0x234   : > { %1333 = vst.msk [vmem:[%s2024_s26 + $0xc] sm:$0xf] %vm1329_vm2, %v1328_v16 }
 0x235 PF: > { %s14_s15 = sadd.s32 1, %s1618_s15  }
 0x236   : > { %p11_p4 = scmp.ge.s32.totalorder %s14_s15, 6  }
 0x238   :  { %13 = sbr.rel (!%p11_p4) target bundleno = 1 (0x1), region = 74 }

// kernel: simple_cnn_forward.4
= control target key start
LH: loop header
LB: loop body
LE: loop exit
PB: predicated region body
PF: predicated region fallthrough
CT: control target
= control target key end

     0   :  { %s2654_s15 = smov 0   ;;  %s3707_s0 = inlined_call_operand.vmem [shape: bf16[4,128,30], index: 0, kind: input, shape index: {}]   ;;  %s3708_s1 = inlined_call_operand.vmem [shape: bf16[9,64,32], index: 1, kind: input, shape index: {}]   ;;  %s3709_s2 = inlined_call_operand.vmem [shape: f32[64,1], index: 2, kind: input, shape index: {}]   ;;  %s3710_s3 = inlined_call_operand.vmem [shape: f32[1,20], index: 3, kind: input, shape index: {}]   ;;  %s3711_s4 = inlined_call_operand.vmem [shape: bf16[4,64,20], index: 4, kind: output, shape index: {}]  }
   0x1 LB: > { %s2144_s16 = sadd.s32 4294967295, %s2623_s15   ;;  %p2148_p0 = scmp.ge.s32.totalorder %s2623_s15, 1  ;;  %s2623_s15 = sphi %s2654_s15, %s14_s15  }
   0x2   : > { %p162_p1 = scmp.lt.s32.totalorder %s2623_s15, 5 }
   0x4   : > { %p163_p2 = pnand %p2148_p0, %p162_p1 }
   0x6   : > { %166 = sbr.rel (%p163_p2) target bundleno = 858 (0x35a), region = 36 }
   0xb   : > { %p188_p3 = scmp.lt.s32.totalorder %s2144_s16, 3  ;;  %s2625_s21 = smov 123   ;;  %v2694_v6 = vld [vmem:[%s3708_s1 + $0x20] sm:$0xff]  ;;  %vm256_vm0 = vcmask 261120   ;;  %v2711_v7 = vld [vmem:[%s3708_s1 + $0x28] sm:$0xff]  ;;  %v2751_v12 = vld [vmem:[%s3708_s1 + $0x30] sm:$0xff] }
   0xc   : > { %s2626_s22 = smov 127   ;;  %3749 = vst [vmem:[#allocation2_spill] sm:$0xff] %v2694_v6  ;;  %s2627_s25 = smov 122   ;;  %v2723_v8 = vld [vmem:[%s3708_s1] sm:$0xff]  ;;  %v2760_v13 = vld [vmem:[%s3708_s1 + $0x8] sm:$0xff]  ;;  %v2784_v15 = vld [vmem:[%s3708_s1 + $0x38] sm:$0xff] }
   0xd   : > { %s3809_s16 = smov (!%p188_p3, %s2144_s16), 3  ;;  %3750 = vst [vmem:[#allocation3_spill] sm:$0xff] %v2711_v7  ;;  %v2728_v9 = vld [vmem:[%s3708_s1 + $0x60] sm:$0xff]  ;;  %v2765_v14 = vld [vmem:[%s3708_s1 + $0x68] sm:$0xff]  ;;  %v2793_v16 = vld [vmem:[%s3708_s1 + $0x10] sm:$0xff]  ;;  %vm2080_vm1 = vcmask 158720  }
   0xe   : > { %s2539_s17 = sshll.u32 %s3809_s16, 6  ;;  %3751 = vst [vmem:[#allocation4_spill] sm:$0xff] %v2728_v9  ;;  %v2798_v17 = vld [vmem:[%s3708_s1 + $0x70] sm:$0xff]  ;;  %v2811_v18 = vld [vmem:[%s3708_s1 + $0x80] sm:$0xff]  ;;  %v2818_v19 = vld [vmem:[%s3708_s1 + $0x18] sm:$0xff]  ;;  %s2540_s26 = sshll.u32 %s3809_s16, 5 }
   0xf   : > { %s2668_s20 = scalar_lea.vmem %s3707_s0, %s2539_s17  ;;  %3752 = vst [vmem:[#allocation5_spill] sm:$0xff] %v2751_v12  ;;  %v2823_v20 = vld [vmem:[%s3708_s1 + $0x78] sm:$0xff]  ;;  %v2828_v21 = vld [vmem:[%s3708_s1 + $0x88] sm:$0xff]  ;;  %v2844_v24 = vld [vmem:[%s3708_s1 + $0x90] sm:$0xff]  ;;  %s3651_s29 = scalar_lea.vmem %s3711_s4, %s2540_s26 }
  0x10   : > { %v2542_v0 = vld [vmem:[%s2668_s20 + $0x8] sm:$0xff]  ;;  %v2672_v1 = vld [vmem:[%s2668_s20 + $0x18] sm:$0xff]  ;;  %v2681_v3 = vld [vmem:[%s2668_s20 + $0x10] sm:$0xff]  ;;  %3753 = vst [vmem:[#allocation6_spill] sm:$0xff] %v2765_v14 }
  0x11   : > { %v2675_v2 = vld [vmem:[%s2668_s20 + $0x28] sm:$0xff]  ;;  %758 = vrot.lane.b32.xlu1 %v2542_v0, %s2625_s21  ;;  %402 = vrot.lane.b32.xlu0 %v2542_v0, %s2626_s22  ;;  %v2541_v4 = vld [vmem:[%s2668_s20] sm:$0xff]  ;;  %3754 = vst [vmem:[#allocation7_spill] sm:$0xff] %v2784_v15 }
  0x12   : > { %275 = vmatpush.bf16.msra.mxu0 %v2672_v1  ;;  %674 = vrot.lane.b32.xlu2 %v2675_v2, %s2626_s22  ;;  %v2688_v5 = vld [vmem:[%s2668_s20 + $0x20] sm:$0xff]  ;;  %v2731_v10 = vld [vmem:[%s2668_s20 + $0x38] sm:$0xff]  ;;  %v2739_v11 = vld [vmem:[%s2668_s20 + $0x30] sm:$0xff]  ;;  %3755 = vst [vmem:[#allocation8_spill] sm:$0xff] %v2798_v17 }
  0x13   : > { %348 = vmatpush.bf16.msra.mxu1 %v2542_v0  ;;  %518 = vmatpush.bf16.msra.mxu3 %v2675_v2  ;;  %3756 = vst [vmem:[#allocation9_spill] sm:$0xff] %v2811_v18  ;;  %v2856_v28 = vld [vmem:[%s3708_s1 + $0x98] sm:$0xff]  ;;  %v2865_v31 = vld [vmem:[%s3708_s1 + $0x40] sm:$0xff]  ;;  %v2905_v39 = vld [vmem:[%s3708_s1 + $0x48] sm:$0xff] }
  0x14   : > { %3757 = vst [vmem:[#allocation10_spill] sm:$0xff] %v2818_v19  ;;  %v2880_v34 = vld [vmem:[%s3708_s1 + $0xa0] sm:$0xff]  ;;  %v2920_v41 = vld [vmem:[%s3708_s1 + $0xa8] sm:$0xff]  ;;  %v2936_v44 = vld [vmem:[%s3708_s1 + $0x50] sm:$0xff] }
  0x15   : > { %3758 = vst [vmem:[#allocation11_spill] sm:$0xff] %v2823_v20  ;;  %v2885_v35 = vld [vmem:[%s3708_s1 + $0xe0] sm:$0xff]  ;;  %v2925_v42 = vld [vmem:[%s3708_s1 + $0xe8] sm:$0xff]  ;;  %v2954_v49 = vld [vmem:[%s3708_s1 + $0xb0] sm:$0xff] }
  0x16   : > { %276 = vmatpush.bf16.msra.mxu0 %v2681_v3  ;;  %3759 = vst [vmem:[#allocation12_spill] sm:$0xff] %v2865_v31  ;;  %v2900_v38 = vld [vmem:[%s3708_s1 + $0x100] sm:$0xff]  ;;  %v2941_v45 = vld [vmem:[%s3708_s1 + $0x108] sm:$0xff]  ;;  %v2959_v50 = vld [vmem:[%s3708_s1 + $0xf0] sm:$0xff] }
  0x17   : > { %349 = vmatpush.bf16.msra.mxu1 %v2541_v4  ;;  %519 = vmatpush.bf16.msra.mxu3 %v2688_v5  ;;  %3760 = vst [vmem:[#allocation13_spill] sm:$0xff] %v2900_v38  ;;  %v2970_v53 = vld [vmem:[%s3708_s1 + $0x58] sm:$0xff]  ;;  %v2975_v54 = vld [vmem:[%s3708_s1 + $0x110] sm:$0xff]  ;;  %v3002_v60 = vld [vmem:[%s3708_s1 + $0xc0] sm:$0xff] }
  0x18   : > { %3761 = vst [vmem:[#allocation14_spill] sm:$0xff] %v2905_v39  ;;  %v2984_v55 = vld [vmem:[%s3708_s1 + $0xb8] sm:$0xff] }
  0x19   : > { %842 = vrot.lane.b32.xlu1 %v2672_v1, %s2625_s21  ;;  %400 = vrot.lane.b32.xlu0 %v2541_v4, %s2626_s22  ;;  %3762 = vst [vmem:[#allocation15_spill] sm:$0xff] %v2920_v41  ;;  %v2989_v56 = vld [vmem:[%s3708_s1 + $0xf8] sm:$0xff] }
  0x1a   : > { %2185 = vmatmul.msk.bf16.vlgmr.msra.gmra.mxu0 %vm256_vm0, %v2694_v6  ;;  %756 = vrot.lane.b32.xlu2 %v2541_v4, %s2625_s21  ;;  %3763 = vst [vmem:[#allocation16_spill] sm:$0xff] %v2936_v44  ;;  %v3007_v61 = vld [vmem:[%s3708_s1 + $0x118] sm:$0xff] }
  0x1b   : > { %2213 = vmatmul.msk.bf16.vlgmr.msra.gmra.mxu1 %vm256_vm0, %v2723_v8  ;;  %2277 = vmatmul.msk.bf16.vlgmr.msra.gmra.mxu3 %vm256_vm0, %v2728_v9  ;;  %3764 = vst [vmem:[#allocation17_spill] sm:$0xff] %v2941_v45 }
  0x1c   : > { %612 = vmatpush.bf16.msrb.mxu0 %v2731_v10  ;;  %3765 = vst [vmem:[#allocation18_spill] sm:$0xff] %v2970_v53 }
  0x1d   : > { %3766 = vst [vmem:[#allocation19_spill] sm:$0xff] %v2975_v54 }
  0x1e   : > { %3767 = vst [vmem:[#allocation20_spill] sm:$0xff] %v2984_v55 }
  0x1f   : > { %3768 = vst [vmem:[#allocation21_spill] sm:$0xff] %v3002_v60 }
  0x20   : > { %613 = vmatpush.bf16.msrb.mxu0 %v2739_v11  ;;  %3769 = vst [vmem:[#allocation22_spill] sm:$0xff] %v3007_v61 }
  0x21   : > { %672 = vrot.lane.b32.xlu1 %v2688_v5, %s2626_s22  ;;  %840 = vrot.lane.b32.xlu0 %v2681_v3, %s2625_s21 }
  0x22   : > { %926 = vrot.lane.b32.xlu2 %v2542_v0, %s2627_s25 }
  0x29   : > { %924 = vrot.lane.b32.xlu1 %v2541_v4, %s2627_s25  ;;  %1039 = vrot.lane.b32.xlu0 %v2672_v1, %s2626_s22  ;;  %v3027_v4 = vld [vmem:[%s3708_s1 + $0xc8] sm:$0xff] }
  0x2a   : > { %2186 = vmatmul.msk.bf16.gmra.mxu0 %vm256_vm0, %v2711_v7  ;;  %1037 = vrot.lane.b32.xlu2 %v2681_v3, %s2626_s22  ;;  %3770 = vst [vmem:[#allocation23_spill] sm:$0xff] %v3027_v4 }
  0x2b   : > { %2214 = vmatmul.msk.bf16.gmra.mxu1 %vm256_vm0, %v2760_v13  ;;  %2278 = vmatmul.msk.bf16.gmra.mxu3 %vm256_vm0, %v2765_v14 }
  0x31   : > { %1156 = vrot.lane.b32.xlu0 %v2731_v10, %s2626_s22  ;;  %1154 = vrot.lane.b32.xlu1 %v2739_v11, %s2626_s22 }
  0x32   : > { %1273 = vrot.lane.b32.xlu2 %v2672_v1, %s2627_s25 }
  0x39   : > { %1271 = vrot.lane.b32.xlu0 %v2681_v3, %s2627_s25  ;;  %1616 = vrot.lane.b32.xlu1 %v2675_v2, %s2627_s25 }
  0x3a   : > { %2187 = vmatmul.msk.bf16.gmra.mxu0 %vm256_vm0, %v2751_v12  ;;  %1530 = vrot.lane.b32.xlu2 %v2675_v2, %s2625_s21 }
  0x3b   : > { %2215 = vmatmul.msk.bf16.gmra.mxu1 %vm256_vm0, %v2793_v16  ;;  %2279 = vmatmul.msk.bf16.gmra.mxu3 %vm256_vm0, %v2798_v17 }
  0x41   : > { %1573 = vrot.lane.b32.xlu0 %v2731_v10, %s2625_s21  ;;  %1614 = vrot.lane.b32.xlu1 %v2688_v5, %s2627_s25 }
  0x42   : > { %1528 = vrot.lane.b32.xlu2 %v2688_v5, %s2625_s21 }
  0x49   : > { %1571 = vrot.lane.b32.xlu0 %v2739_v11, %s2625_s21  ;;  %1947 = vrot.lane.b32.xlu1 %v2731_v10, %s2627_s25 }
  0x4a   : > { %2188 = vmatmul.msk.bf16.gmra.mxu0 %vm256_vm0, %v2784_v15  ;;  %1945 = vrot.lane.b32.xlu2 %v2739_v11, %s2627_s25 }
  0x4b   : > { %2216 = vmatmul.msk.bf16.gmra.mxu1 %vm256_vm0, %v2818_v19  ;;  %2280 = vmatmul.msk.bf16.gmra.mxu3 %vm256_vm0, %v2823_v20 }
  0x5a   : > { %2313 = vmatmul.msk.bf16.vlgmr.msrb.gmra.mxu0 %vm256_vm0, %v2811_v18 }
  0x6a   : > { %2314 = vmatmul.msk.bf16.gmra.mxu0 %vm256_vm0, %v2828_v21 }
  0x6c   : > { %v2836_v22 = vpop.permute.xlu2 %674 }
  0x6d   : > { %696 = vmatpush.bf16.msrb.mxu1 %v2836_v22 }
  0x74   : > { %v2839_v23 = vpop.permute.xlu2 %756 }
  0x7a   : > { %2315 = vmatmul.msk.bf16.gmra.mxu0 %vm256_vm0, %v2844_v24 }
  0x7c   : > { %v2848_v25 = vpop.permute.xlu2 %926 }
  0x7d   : > { %948 = vmatpush.bf16.msra.mxu0 %v2848_v25 }
  0x83   : > { %v2851_v26 = vpop.permute.xlu1 %758  ;;  %v403_v27 = vpop.permute.xlu0 %402 }
  0x84   : > { %424 = vmatpush.bf16.msra.mxu2 %v403_v27  ;;  %v1038_v40 = vpop.permute.xlu2 %1037 }
  0x8a   : > { %2316 = vmatmul.msk.bf16.gmra.mxu0 %vm256_vm0, %v2856_v28 }
  0x8b   : > { %v2860_v29 = vpop.permute.xlu1 %842  ;;  %v401_v30 = vpop.permute.xlu0 %400 }
  0x8c   : > { %425 = vmatpush.bf16.msra.mxu2 %v401_v30  ;;  %864 = vmatpush.bf16.msrb.mxu3 %v2860_v29 }
  0x8f   : > { %2241 = vmatmul.msk.bf16.vlgmr.msra.gmra.mxu2 %vm256_vm0, %v2865_v31 }
  0x90   : > { %780 = vmatpush.bf16.msrb.mxu2 %v2851_v26 }
  0x93   : > { %v2873_v32 = vpop.permute.xlu1 %672  ;;  %v2875_v33 = vpop.permute.xlu0 %840 }
  0x94   : > { %781 = vmatpush.bf16.msrb.mxu2 %v2839_v23  ;;  %697 = vmatpush.bf16.msrb.mxu1 %v2873_v32 }
  0x95   : > { %865 = vmatpush.bf16.msrb.mxu3 %v2875_v33 }
  0x97   : > { %2341 = vmatmul.msk.bf16.vlgmr.msrb.gmra.mxu1 %vm256_vm0, %v2880_v34  ;;  %v278_v43 = vpop.f32.mrf.mxu0 }
  0x98   : > { %1014 = vmatpush.bf16.msra.mxu2 %v2672_v1  ;;  %985 = vmatpush.bf16.msra.mxu1 %v403_v27  ;;  %v351_v46 = vpop.f32.mrf.mxu1 }
  0x99   : > { %2397 = vmatmul.msk.bf16.vlgmr.msrb.gmra.mxu3 %vm256_vm0, %v2885_v35  ;;  %v2949_v48 = vadd.f32 %v351_v46, %v278_v43  ;;  %v3052_v43 = vld [vmem:[%s3708_s1 + $0xd0] sm:$0xff] }
  0x9a   : > { %3772 = vst [vmem:[#allocation25_spill] sm:$0xff] %v3052_v43 }
  0x9b   : > { %v2895_v36 = vpop.permute.xlu1 %924  ;;  %v1040_v37 = vpop.permute.xlu0 %1039 }
  0x9c   : > { %1015 = vmatpush.bf16.msra.mxu2 %v2681_v3  ;;  %986 = vmatpush.bf16.msra.mxu1 %v401_v30 }
  0x9d   : > { %949 = vmatpush.bf16.msra.mxu0 %v2895_v36  ;;  %1049 = vmatpush.bf16.msra.mxu3 %v1040_v37 }
  0x9e   : > { %v521_v46 = vpop.f32.mrf.mxu3 }
  0x9f   : > { %2242 = vmatmul.msk.bf16.gmra.mxu2 %vm256_vm0, %v2905_v39  ;;  %v2947_v47 = vpop.f32.mrf.mxu0 }
  0xa0   : > { %1123 = vmatpush.bf16.msrb.mxu1 %v2836_v22  ;;  %2425 = vmatmul.msk.bf16.vlgmr.msra.gmra.mxu0 %vm256_vm0, %v2900_v38  ;;  %v2965_v52 = vpop.f32.mrf.mxu1 }
  0xa1   : > { %1086 = vmatpush.bf16.msrb.mxu0 %v2731_v10  ;;  %1050 = vmatpush.bf16.msra.mxu3 %v1038_v40 }
  0xa4   : > { %1124 = vmatpush.bf16.msrb.mxu1 %v2873_v32 }
  0xa5   : > { %1203 = vmatpush.bf16.msrb.mxu3 %v2860_v29  ;;  %1087 = vmatpush.bf16.msrb.mxu0 %v2739_v11 }
  0xa7   : > { %2342 = vmatmul.msk.bf16.gmra.mxu1 %vm256_vm0, %v2920_v41  ;;  %v283_v51 = vpop.f32.mrf.mxu0 }
  0xa8   : > { %v356_v58 = vpop.f32.mrf.mxu1 }
  0xa9   : > { %1240 = vmatpush.bf16.msra.mxu0 %v2848_v25  ;;  %1204 = vmatpush.bf16.msrb.mxu3 %v2875_v33  ;;  %v2993_v59 = vadd.f32 %v356_v58, %v283_v51  ;;  %v3058_v58 = vpop.permute.xlu2 %1273 }
  0xaa   : > { %2398 = vmatmul.msk.bf16.gmra.mxu3 %vm256_vm0, %v2925_v42  ;;  %3773 = vst [vmem:[#allocation26_spill] sm:$0xff] %v3058_v58 }
  0xad   : > { %1241 = vmatpush.bf16.msra.mxu0 %v2895_v36 }
  0xaf   : > { %2243 = vmatmul.msk.bf16.gmra.mxu2 %vm256_vm0, %v2936_v44  ;;  %v2991_v57 = vpop.f32.mrf.mxu0 }
  0xb0   : > { %2426 = vmatmul.msk.bf16.gmra.mxu0 %vm256_vm0, %v2941_v45  ;;  %v3009_v63 = vpop.f32.mrf.mxu1 }
  0xb7   : > { %2343 = vmatmul.msk.bf16.gmra.mxu1 %vm256_vm0, %v2954_v49  ;;  %v288_v62 = vpop.f32.mrf.mxu0 }
  0xb8   : > { %v361_v1 = vpop.f32.mrf.mxu1 }
  0xb9   : > { %v3017_v3 = vadd.f32 %v361_v1, %v288_v62  ;;  %v523_v62 = vpop.f32.mrf.mxu3 }
  0xba   : > { %2399 = vmatmul.msk.bf16.gmra.mxu3 %vm256_vm0, %v2959_v50 }
  0xbf   : > { %2244 = vmatmul.msk.bf16.gmra.mxu2 %vm256_vm0, %v2970_v53  ;;  %v3015_v0 = vpop.f32.mrf.mxu0 }
  0xc0   : > { %2427 = vmatmul.msk.bf16.gmra.mxu0 %vm256_vm0, %v2975_v54  ;;  %v3029_v30 = vpop.f32.mrf.mxu1 }
  0xc7   : > { %2344 = vmatmul.msk.bf16.gmra.mxu1 %vm256_vm0, %v2984_v55  ;;  %v293_v27 = vpop.f32.mrf.mxu0 }
  0xc8   : > { %v366_v37 = vpop.f32.mrf.mxu1 }
  0xc9   : > { %v3040_v40 = vadd.f32 %v366_v37, %v293_v27  ;;  %v3071_v37 = vld [vmem:[%s3708_s1 + $0xd8] sm:$0xff] }
  0xca   : > { %2400 = vmatmul.msk.bf16.gmra.mxu3 %vm256_vm0, %v2989_v56 }
  0xcf   : > { %2369 = vmatmul.msk.bf16.vlgmr.msrb.gmra.mxu2 %vm256_vm0, %v3002_v60 }
  0xd0   : > { %2428 = vmatmul.msk.bf16.gmra.mxu0 %vm256_vm0, %v3007_v61 }
  0xd7   : > { %2429 = vmatmul.msk.bf16.vlgmr.msra.gmra.mxu1 %vm256_vm0, %v2694_v6  ;;  %v3087_v6 = vpop.permute.xlu1 %1154 }
  0xd8   : > { %1283 = vmatpush.bf16.msra.mxu1 %v3058_v58 }
  0xda   : > { %2437 = vmatmul.msk.bf16.vlgmr.msra.gmra.mxu3 %vm256_vm0, %v2865_v31 }
  0xdb   : > { %1357 = vmatpush.bf16.msra.mxu3 %v2675_v2  ;;  %v3038_v2 = vpop.f32.mrf.mxu0 }
  0xdf   : > { %1358 = vmatpush.bf16.msra.mxu3 %v2688_v5  ;;  %2370 = vmatmul.msk.bf16.gmra.mxu2 %vm256_vm0, %v3027_v4  ;;  %v3046_v5 = vpop.permute.xlu0 %1156 }
  0xe0   : > { %2441 = vmatmul.msk.bf16.vlgmr.msrb.gmra.mxu0 %vm256_vm0, %v2728_v9  ;;  %3771 = vst [vmem:[#allocation24_spill] sm:$0xff] %v3046_v5  ;;  %1166 = vmatpush.bf16.msrb.mxu2 %v3046_v5 }
  0xe1   : > { %1386 = vmatpush.bf16.msrb.mxu0 %v2836_v22 }
  0xe3   : > { %v615_v51 = vpop.f32.mrf.mxu0 }
  0xe4   : > { %1167 = vmatpush.bf16.msrb.mxu2 %v3087_v6 }
  0xe5   : > { %1387 = vmatpush.bf16.msrb.mxu0 %v2873_v32 }
  0xe7   : > { %2430 = vmatmul.msk.bf16.gmra.mxu1 %vm256_vm0, %v2711_v7  ;;  %v3061_v27 = vpop.permute.xlu0 %1271 }
  0xe8   : > { %3774 = vst [vmem:[#allocation27_spill] sm:$0xff] %v3061_v27  ;;  %1284 = vmatpush.bf16.msra.mxu1 %v3061_v27  ;;  %v3081_v27 = vpop.f32.mrf.mxu1 }
  0xea   : > { %2438 = vmatmul.msk.bf16.gmra.mxu3 %vm256_vm0, %v2905_v39 }
  0xeb   : > { %v617_v1 = vpop.f32.mrf.mxu0 }
  0xef   : > { %2371 = vmatmul.msk.bf16.gmra.mxu2 %vm256_vm0, %v3052_v43 }
  0xf0   : > { %2442 = vmatmul.msk.bf16.gmra.mxu0 %vm256_vm0, %v2765_v14  ;;  %v526_v14 = vpop.f32.mrf.mxu3 }
  0xf3   : > { %v620_v7 = vpop.f32.mrf.mxu0 }
  0xf7   : > { %2431 = vmatmul.msk.bf16.gmra.mxu1 %vm256_vm0, %v2751_v12 }
  0xf8   : > { %v528_v58 = vpop.f32.mrf.mxu3 }
  0xfa   : > { %2439 = vmatmul.msk.bf16.gmra.mxu3 %vm256_vm0, %v2936_v44 }
  0xfb   : > { %v622_v12 = vpop.f32.mrf.mxu0 }
  0xff   : > { %2372 = vmatmul.msk.bf16.gmra.mxu2 %vm256_vm0, %v3071_v37 }
 0x100   : > { %2443 = vmatmul.msk.bf16.gmra.mxu0 %vm256_vm0, %v2798_v17  ;;  %v531_v5 = vpop.f32.mrf.mxu3 }
 0x103   : > { %v625_v9 = vpop.f32.mrf.mxu0 }
 0x107   : > { %2432 = vmatmul.msk.bf16.gmra.mxu1 %vm256_vm0, %v2784_v15 }
 0x108   : > { %v533_v44 = vpop.f32.mrf.mxu3 }
 0x10a   : > { %2440 = vmatmul.msk.bf16.gmra.mxu3 %vm256_vm0, %v2970_v53 }
 0x10b   : > { %v627_v55 = vpop.f32.mrf.mxu0 }
 0x10f   : > { %2433 = vmatmul.msk.bf16.vlgmr.msra.gmra.mxu2 %vm256_vm0, %v2723_v8 }
 0x110   : > { %2444 = vmatmul.msk.bf16.gmra.mxu0 %vm256_vm0, %v2823_v20  ;;  %1328 = vmatpush.bf16.msra.mxu2 %v2731_v10 }
 0x112   : > { %v427_v17 = vpop.f32.mrf.mxu2 }
 0x113   : > { %v447_v15 = vadd.f32 %v427_v17, %v2949_v48  ;;  %v354_v17 = vadd.f32 %v2965_v52, %v2947_v47  ;;  %v630_v20 = vpop.f32.mrf.mxu0 }
 0x114   : > { %v699_v53 = vpop.f32.mrf.mxu1  ;;  %1329 = vmatpush.bf16.msra.mxu2 %v2739_v11 }
 0x115   : > { %v541_v61 = vadd.f32 %v521_v46, %v447_v15 }
 0x117   : > { %v635_v54 = vadd.f32 %v615_v51, %v541_v61  ;;  %2445 = vmatmul.msk.bf16.vlgmr.msrb.gmra.mxu1 %vm256_vm0, %v2811_v18  ;;  %v536_v18 = vpop.f32.mrf.mxu3 }
 0x118   : > { %1423 = vmatpush.bf16.msrb.mxu1 %v2851_v26 }
 0x119   : > { %v3100_v48 = vadd.f32 %v699_v53, %v635_v54 }
 0x11a   : > { %2453 = vmatmul.msk.bf16.vlgmr.msrb.gmra.mxu3 %vm256_vm0, %v3002_v60  ;;  %v429_v15 = vpop.f32.mrf.mxu2 }
 0x11b   : > { %1497 = vmatpush.bf16.msrb.mxu3 %v2848_v25  ;;  %v448_v46 = vadd.f32 %v429_v15, %v354_v17  ;;  %v632_v15 = vpop.f32.mrf.mxu0 }
 0x11c   : > { %1424 = vmatpush.bf16.msrb.mxu1 %v2839_v23  ;;  %v701_v61 = vpop.f32.mrf.mxu1 }
 0x11d   : > { %v542_v51 = vadd.f32 %v523_v62, %v448_v46  ;;  %v359_v62 = vadd.f32 %v3009_v63, %v2991_v57 }
 0x11f   : > { %1498 = vmatpush.bf16.msrb.mxu3 %v2895_v36  ;;  %v636_v26 = vadd.f32 %v617_v1, %v542_v51  ;;  %2434 = vmatmul.msk.bf16.gmra.mxu2 %vm256_vm0, %v2760_v13  ;;  %v538_v17 = vpop.f32.mrf.mxu3 }
 0x120   : > { %2457 = vmatmul.msk.bf16.vlgmr.msra.gmra.mxu0 %vm256_vm0, %v2885_v35 }
 0x121   : > { %v3109_v47 = vadd.f32 %v701_v61, %v636_v26 }
 0x122   : > { %v432_v52 = vpop.f32.mrf.mxu2 }
 0x123   : > { %v449_v53 = vadd.f32 %v432_v52, %v2993_v59 }
 0x124   : > { %v704_v54 = vpop.f32.mrf.mxu1 }
 0x125   : > { %v543_v23 = vadd.f32 %v526_v14, %v449_v53  ;;  %v951_v14 = vpop.f32.mrf.mxu0 }
 0x127   : > { %v637_v60 = vadd.f32 %v620_v7, %v543_v23  ;;  %2446 = vmatmul.msk.bf16.gmra.mxu1 %vm256_vm0, %v2828_v21  ;;  %v867_v26 = vpop.f32.mrf.mxu3 }
 0x129   : > { %v3118_v1 = vadd.f32 %v704_v54, %v637_v60 }
 0x12a   : > { %2454 = vmatmul.msk.bf16.gmra.mxu3 %vm256_vm0, %v3027_v4  ;;  %v434_v46 = vpop.f32.mrf.mxu2 }
 0x12b   : > { %v450_v61 = vadd.f32 %v434_v46, %v359_v62 }
 0x12c   : > { %v706_v51 = vpop.f32.mrf.mxu1 }
 0x12d   : > { %v544_v59 = vadd.f32 %v528_v58, %v450_v61  ;;  %v953_v23 = vpop.f32.mrf.mxu0 }
 0x12f   : > { %v638_v52 = vadd.f32 %v622_v12, %v544_v59  ;;  %2435 = vmatmul.msk.bf16.gmra.mxu2 %vm256_vm0, %v2793_v16  ;;  %v869_v54 = vpop.f32.mrf.mxu3  ;;  %v364_v12 = vadd.f32 %v3029_v30, %v3015_v0 }
 0x130   : > { %2458 = vmatmul.msk.bf16.gmra.mxu0 %vm256_vm0, %v2925_v42 }
 0x131   : > { %v3124_v7 = vadd.f32 %v706_v51, %v638_v52 }
 0x132   : > { %v437_v53 = vpop.f32.mrf.mxu2 }
 0x133   : > { %v451_v57 = vadd.f32 %v437_v53, %v3017_v3 }
 0x134   : > { %v709_v60 = vpop.f32.mrf.mxu1 }
 0x135   : > { %v545_v63 = vadd.f32 %v531_v5, %v451_v57  ;;  %v956_v5 = vpop.f32.mrf.mxu0 }
 0x137   : > { %v639_v62 = vadd.f32 %v625_v9, %v545_v63  ;;  %2447 = vmatmul.msk.bf16.gmra.mxu1 %vm256_vm0, %v2844_v24  ;;  %v872_v59 = vpop.f32.mrf.mxu3 }
 0x139   : > { %v3133_v58 = vadd.f32 %v709_v60, %v639_v62 }
 0x13a   : > { %2455 = vmatmul.msk.bf16.gmra.mxu3 %vm256_vm0, %v3052_v43  ;;  %v439_v46 = vpop.f32.mrf.mxu2 }
 0x13b   : > { %v452_v61 = vadd.f32 %v439_v46, %v364_v12 }
 0x13c   : > { %v711_v51 = vpop.f32.mrf.mxu1 }
 0x13d   : > { %v546_v3 = vadd.f32 %v533_v44, %v452_v61  ;;  %v958_v63 = vpop.f32.mrf.mxu0  ;;  %v369_v44 = vadd.f32 %v3081_v27, %v3038_v2 }
 0x13f   : > { %v640_v52 = vadd.f32 %v627_v55, %v546_v3  ;;  %2436 = vmatmul.msk.bf16.gmra.mxu2 %vm256_vm0, %v2818_v19  ;;  %v874_v60 = vpop.f32.mrf.mxu3 }
 0x140   : > { %2459 = vmatmul.msk.bf16.gmra.mxu0 %vm256_vm0, %v2959_v50 }
 0x141   : > { %v3139_v9 = vadd.f32 %v711_v51, %v640_v52 }
 0x142   : > { %v442_v53 = vpop.f32.mrf.mxu2 }
 0x143   : > { %v453_v0 = vadd.f32 %v442_v53, %v3040_v40 }
 0x144   : > { %v714_v30 = vpop.f32.mrf.mxu1 }
 0x145   : > { %v547_v57 = vadd.f32 %v536_v18, %v453_v0  ;;  %v961_v18 = vpop.f32.mrf.mxu0 }
 0x147   : > { %v641_v62 = vadd.f32 %v630_v20, %v547_v57  ;;  %2448 = vmatmul.msk.bf16.gmra.mxu1 %vm256_vm0, %v2856_v28  ;;  %v877_v51 = vpop.f32.mrf.mxu3 }
 0x149   : > { %v3148_v55 = vadd.f32 %v714_v30, %v641_v62 }
 0x14a   : > { %2456 = vmatmul.msk.bf16.gmra.mxu3 %vm256_vm0, %v3071_v37  ;;  %v444_v12 = vpop.f32.mrf.mxu2 }
 0x14b   : > { %v454_v46 = vadd.f32 %v444_v12, %v369_v44 }
 0x14c   : > { %v716_v61 = vpop.f32.mrf.mxu1 }
 0x14d   : > { %v548_v40 = vadd.f32 %v538_v17, %v454_v46 }
 0x14f   : > { %v642_v3 = vadd.f32 %v632_v15, %v548_v40  ;;  %2449 = vmatmul.msk.bf16.vlgmr.msrb.gmra.mxu2 %vm256_vm0, %v2880_v34  ;;  %v879_v53 = vpop.f32.mrf.mxu3  ;;  %v963_v15 = vpop.f32.mrf.mxu0 }
 0x150   : > { %2460 = vmatmul.msk.bf16.gmra.mxu0 %vm256_vm0, %v2989_v56  ;;  %1460 = vmatpush.bf16.msrb.mxu2 %v2860_v29 }
 0x151   : > { %v3155_v20 = vadd.f32 %v716_v61, %v642_v3 }
 0x152   : > { %v783_v2 = vpop.f32.mrf.mxu2 }
 0x153   : > { %v803_v27 = vadd.f32 %v783_v2, %v3100_v48 }
 0x154   : > { %1461 = vmatpush.bf16.msrb.mxu2 %v2875_v33  ;;  %v3159_v52 = vpop.f32.mrf.mxu1 }
 0x155   : > { %v887_v17 = vadd.f32 %v867_v26, %v803_v27 }
 0x157   : > { %2461 = vmatmul.msk.bf16.vlgmr.msra.gmra.mxu1 %vm256_vm0, %v2900_v38  ;;  %v3165_v0 = vadd.f32 %v951_v14, %v887_v17  ;;  %v882_v62 = vpop.f32.mrf.mxu3  ;;  %v966_v44 = vpop.f32.mrf.mxu0  ;;  %v3781_v38 = vld [vmem:[#allocation4_spill] sm:$0xff] }
 0x158   : > { %v3190_v17 = vpop.permute.xlu0 %1573 }
 0x159   : > { %1583 = vmatpush.bf16.msra.mxu1 %v3190_v17 }
 0x15a   : > { %2469 = vmatmul.msk.bf16.vlgmr.msra.gmra.mxu3 %vm256_vm0, %v2723_v8  ;;  %v785_v30 = vpop.f32.mrf.mxu2 }
 0x15b   : > { %1671 = vmatpush.bf16.msra.mxu3 %v2836_v22  ;;  %v804_v48 = vadd.f32 %v785_v30, %v3109_v47 }
 0x15c   : > { %v3170_v57 = vpop.f32.mrf.mxu1 }
 0x15d   : > { %v888_v26 = vadd.f32 %v869_v54, %v804_v48 }
 0x15f   : > { %1672 = vmatpush.bf16.msra.mxu3 %v2873_v32  ;;  %2450 = vmatmul.msk.bf16.gmra.mxu2 %vm256_vm0, %v2920_v41  ;;  %v3176_v14 = vadd.f32 %v953_v23, %v888_v26  ;;  %v884_v32 = vpop.f32.mrf.mxu3  ;;  %v968_v61 = vpop.f32.mrf.mxu0 }
 0x160   : > { %2473 = vmatmul.msk.bf16.vlgmr.msrb.gmra.mxu0 %vm256_vm0, %v2865_v31 }
 0x162   : > { %v788_v12 = vpop.f32.mrf.mxu2 }
 0x163   : > { %v805_v22 = vadd.f32 %v788_v12, %v3118_v1 }
 0x164   : > { %v3179_v46 = vpop.f32.mrf.mxu1 }
 0x165   : > { %v889_v47 = vadd.f32 %v872_v59, %v805_v22  ;;  %v1531_v59 = vpop.permute.xlu2 %1530  ;;  %v3202_v22 = vpop.permute.xlu0 %1571 }
 0x166   : > { %1540 = vmatpush.bf16.msra.mxu0 %v1531_v59  ;;  %1584 = vmatpush.bf16.msra.mxu1 %v3202_v22 }
 0x167   : > { %2462 = vmatmul.msk.bf16.gmra.mxu1 %vm256_vm0, %v2941_v45  ;;  %v3185_v54 = vadd.f32 %v956_v5, %v889_v47  ;;  %v1052_v1 = vpop.f32.mrf.mxu3  ;;  %v1089_v27 = vpop.f32.mrf.mxu0  ;;  %v3775_v47 = vld [vmem:[#allocation19_spill] sm:$0xff]  ;;  %v3779_v45 = vld [vmem:[#allocation2_spill] sm:$0xff] }
 0x16a   : > { %2470 = vmatmul.msk.bf16.gmra.mxu3 %vm256_vm0, %v2760_v13  ;;  %v790_v40 = vpop.f32.mrf.mxu2 }
 0x16b   : > { %v806_v23 = vadd.f32 %v790_v40, %v3124_v7 }
 0x16c   : > { %v3188_v3 = vpop.f32.mrf.mxu1 }
 0x16d   : > { %v890_v2 = vadd.f32 %v874_v60, %v806_v23  ;;  %v1529_v40 = vpop.permute.xlu2 %1528 }
 0x16e   : > { %1541 = vmatpush.bf16.msra.mxu0 %v1529_v40 }
 0x16f   : > { %2451 = vmatmul.msk.bf16.gmra.mxu2 %vm256_vm0, %v2954_v49  ;;  %v3196_v30 = vadd.f32 %v958_v63, %v890_v2  ;;  %v1054_v26 = vpop.f32.mrf.mxu3  ;;  %v1091_v12 = vpop.f32.mrf.mxu0 }
 0x170   : > { %2474 = vmatmul.msk.bf16.gmra.mxu0 %vm256_vm0, %v2905_v39 }
 0x172   : > { %v793_v7 = vpop.f32.mrf.mxu2  ;;  %1700 = vmatpush.bf16.msrb.mxu0 %v2731_v10 }
 0x173   : > { %v807_v5 = vadd.f32 %v793_v7, %v3133_v58 }
 0x174   : > { %v3200_v60 = vpop.f32.mrf.mxu1 }
 0x175   : > { %v891_v48 = vadd.f32 %v877_v51, %v807_v5  ;;  %v3776_v5 = vld [vmem:[#allocation20_spill] sm:$0xff] }
 0x176   : > { %1701 = vmatpush.bf16.msrb.mxu0 %v2739_v11 }
 0x177   : > { %2463 = vmatmul.msk.bf16.gmra.mxu1 %vm256_vm0, %v3775_v47  ;;  %v3208_v63 = vadd.f32 %v961_v18, %v891_v48  ;;  %v1057_v59 = vpop.f32.mrf.mxu3  ;;  %v1094_v7 = vpop.f32.mrf.mxu0  ;;  %v3777_v47 = vld [vmem:[#allocation16_spill] sm:$0xff] }
 0x17a   : > { %2471 = vmatmul.msk.bf16.gmra.mxu3 %vm256_vm0, %v2793_v16  ;;  %v795_v23 = vpop.f32.mrf.mxu2 }
 0x17b   : > { %v808_v58 = vadd.f32 %v795_v23, %v3139_v9 }
 0x17c   : > { %v3213_v51 = vpop.f32.mrf.mxu1 }
 0x17d   : > { %v892_v2 = vadd.f32 %v879_v53, %v808_v58  ;;  %v3778_v58 = vld [vmem:[#allocation22_spill] sm:$0xff] }
 0x17f   : > { %2452 = vmatmul.msk.bf16.gmra.mxu2 %vm256_vm0, %v3776_v5  ;;  %v3219_v18 = vadd.f32 %v963_v15, %v892_v2  ;;  %v1059_v23 = vpop.f32.mrf.mxu3  ;;  %v1096_v53 = vpop.f32.mrf.mxu0 }
 0x180   : > { %2475 = vmatmul.msk.bf16.gmra.mxu0 %vm256_vm0, %v3777_v47 }
 0x182   : > { %v798_v48 = vpop.f32.mrf.mxu2 }
 0x183   : > { %v809_v9 = vadd.f32 %v798_v48, %v3148_v55 }
 0x184   : > { %v3223_v40 = vpop.f32.mrf.mxu1 }
 0x185   : > { %v893_v10 = vadd.f32 %v882_v62, %v809_v9  ;;  %v3780_v62 = vld [vmem:[#allocation18_spill] sm:$0xff] }
 0x187   : > { %2464 = vmatmul.msk.bf16.gmra.mxu1 %vm256_vm0, %v3778_v58  ;;  %v3229_v39 = vadd.f32 %v966_v44, %v893_v10  ;;  %v1062_v55 = vpop.f32.mrf.mxu3  ;;  %v1099_v48 = vpop.f32.mrf.mxu0 }
 0x18a   : > { %2472 = vmatmul.msk.bf16.gmra.mxu3 %vm256_vm0, %v2818_v19  ;;  %v800_v15 = vpop.f32.mrf.mxu2 }
 0x18b   : > { %v810_v2 = vadd.f32 %v800_v15, %v3155_v20 }
 0x18c   : > { %v3232_v11 = vpop.f32.mrf.mxu1 }
 0x18d   : > { %v894_v47 = vadd.f32 %v884_v32, %v810_v2  ;;  %v3782_v32 = vld [vmem:[#allocation24_spill] sm:$0xff]  ;;  %v3783_v2 = vld [vmem:[#allocation3_spill] sm:$0xff] }
 0x18f   : > { %2465 = vmatmul.msk.bf16.vlgmr.msra.gmra.mxu2 %vm256_vm0, %v3779_v45  ;;  %v3238_v9 = vadd.f32 %v968_v61, %v894_v47  ;;  %v1064_v19 = vpop.f32.mrf.mxu3  ;;  %v1101_v20 = vpop.f32.mrf.mxu0 }
 0x190   : > { %2476 = vmatmul.msk.bf16.gmra.mxu0 %vm256_vm0, %v3780_v62  ;;  %v3789_v62 = vld [vmem:[#allocation8_spill] sm:$0xff] }
 0x192   : > { %v1017_v58 = vpop.f32.mrf.mxu2 }
 0x193   : > { %v1018_v44 = vadd.f32 %v1017_v58, %v3159_v52 }
 0x194   : > { %v1126_v10 = vpop.f32.mrf.mxu1 }
 0x195   : > { %v1072_v31 = vadd.f32 %v1052_v1, %v1018_v44  ;;  %v3784_v44 = vld [vmem:[#allocation21_spill] sm:$0xff] }
 0x197   : > { %v1109_v15 = vadd.f32 %v1089_v27, %v1072_v31  ;;  %2477 = vmatmul.msk.bf16.vlgmr.msrb.gmra.mxu1 %vm256_vm0, %v3781_v38  ;;  %v1067_v27 = vpop.f32.mrf.mxu3  ;;  %v1104_v38 = vpop.f32.mrf.mxu0 }
 0x198   : > { %1729 = vmatpush.bf16.msrb.mxu1 %v3782_v32 }
 0x199   : > { %v3247_v61 = vadd.f32 %v1126_v10, %v1109_v15  ;;  %v3786_v15 = vld [vmem:[#allocation27_spill] sm:$0xff] }
 0x19a   : > { %2485 = vmatmul.msk.bf16.vlgmr.msrb.gmra.mxu3 %vm256_vm0, %v2880_v34  ;;  %v1019_v47 = vpop.f32.mrf.mxu2 }
 0x19b   : > { %1803 = vmatpush.bf16.msrb.mxu3 %v2848_v25  ;;  %v1020_v52 = vadd.f32 %v1019_v47, %v3170_v57  ;;  %v3785_v25 = vld [vmem:[#allocation26_spill] sm:$0xff] }
 0x19c   : > { %1730 = vmatpush.bf16.msrb.mxu1 %v3087_v6  ;;  %v1128_v31 = vpop.f32.mrf.mxu1 }
 0x19d   : > { %v1073_v1 = vadd.f32 %v1054_v26, %v1020_v52 }
 0x19f   : > { %1804 = vmatpush.bf16.msrb.mxu3 %v2895_v36  ;;  %v1110_v58 = vadd.f32 %v1091_v12, %v1073_v1  ;;  %2466 = vmatmul.msk.bf16.gmra.mxu2 %vm256_vm0, %v3783_v2  ;;  %v1069_v32 = vpop.f32.mrf.mxu3  ;;  %v1106_v47 = vpop.f32.mrf.mxu0  ;;  %v3787_v1 = vld [vmem:[#allocation6_spill] sm:$0xff] }
 0x1a0   : > { %2489 = vmatmul.msk.bf16.vlgmr.msra.gmra.mxu0 %vm256_vm0, %v3784_v44  ;;  %v3261_v12 = vpop.permute.xlu1 %1616 }
 0x1a1   : > { %1840 = vmatpush.bf16.msra.mxu0 %v3785_v25  ;;  %v3257_v10 = vadd.f32 %v1128_v31, %v1110_v58  ;;  %1626 = vmatpush.bf16.msra.mxu2 %v3261_v12 }
 0x1a2   : > { %v1022_v57 = vpop.f32.mrf.mxu2 }
 0x1a3   : > { %v1023_v6 = vadd.f32 %v1022_v57, %v3179_v46 }
 0x1a4   : > { %v1131_v36 = vpop.f32.mrf.mxu1 }
 0x1a5   : > { %1841 = vmatpush.bf16.msra.mxu0 %v3786_v15  ;;  %v1074_v26 = vadd.f32 %v1057_v59, %v1023_v6 }
 0x1a7   : > { %v1111_v52 = vadd.f32 %v1094_v7, %v1074_v26  ;;  %2478 = vmatmul.msk.bf16.gmra.mxu1 %vm256_vm0, %v3787_v1  ;;  %v1206_v57 = vpop.f32.mrf.mxu3  ;;  %v1243_v6 = vpop.f32.mrf.mxu0  ;;  %v3788_v26 = vld [vmem:[#allocation5_spill] sm:$0xff] }
 0x1a8   : > { %v3271_v15 = vpop.permute.xlu1 %1614 }
 0x1a9   : > { %v3268_v31 = vadd.f32 %v1131_v36, %v1111_v52  ;;  %1627 = vmatpush.bf16.msra.mxu2 %v3271_v15 }
 0x1aa   : > { %2486 = vmatmul.msk.bf16.gmra.mxu3 %vm256_vm0, %v2920_v41  ;;  %v1024_v46 = vpop.f32.mrf.mxu2 }
 0x1ab   : > { %v1025_v58 = vadd.f32 %v1024_v46, %v3188_v3 }
 0x1ac   : > { %v1133_v25 = vpop.f32.mrf.mxu1 }
 0x1ad   : > { %v1075_v59 = vadd.f32 %v1059_v23, %v1025_v58 }
 0x1af   : > { %v1112_v7 = vadd.f32 %v1096_v53, %v1075_v59  ;;  %2467 = vmatmul.msk.bf16.gmra.mxu2 %vm256_vm0, %v3788_v26  ;;  %v1208_v46 = vpop.f32.mrf.mxu3  ;;  %v1245_v58 = vpop.f32.mrf.mxu0 }
 0x1b0   : > { %2490 = vmatmul.msk.bf16.gmra.mxu0 %vm256_vm0, %v3027_v4 }
 0x1b1   : > { %v3278_v36 = vadd.f32 %v1133_v25, %v1112_v7 }
 0x1b2   : > { %v1027_v52 = vpop.f32.mrf.mxu2 }
 0x1b3   : > { %v1028_v3 = vadd.f32 %v1027_v52, %v3200_v60 }
 0x1b4   : > { %v1136_v1 = vpop.f32.mrf.mxu1 }
 0x1b5   : > { %v1076_v23 = vadd.f32 %v1062_v55, %v1028_v3  ;;  %v3790_v55 = vld [vmem:[#allocation7_spill] sm:$0xff] }
 0x1b7   : > { %v1113_v44 = vadd.f32 %v1099_v48, %v1076_v23  ;;  %2479 = vmatmul.msk.bf16.gmra.mxu1 %vm256_vm0, %v3789_v62  ;;  %v1211_v41 = vpop.f32.mrf.mxu3  ;;  %v1248_v60 = vpop.f32.mrf.mxu0 }
 0x1b9   : > { %v3285_v53 = vadd.f32 %v1136_v1, %v1113_v44 }
 0x1ba   : > { %2487 = vmatmul.msk.bf16.gmra.mxu3 %vm256_vm0, %v2954_v49  ;;  %v1029_v59 = vpop.f32.mrf.mxu2 }
 0x1bb   : > { %v1030_v25 = vadd.f32 %v1029_v59, %v3213_v51 }
 0x1bc   : > { %v1138_v7 = vpop.f32.mrf.mxu1 }
 0x1bd   : > { %v1077_v4 = vadd.f32 %v1064_v19, %v1030_v25  ;;  %v3791_v19 = vld [vmem:[#allocation11_spill] sm:$0xff] }
 0x1bf   : > { %v1114_v52 = vadd.f32 %v1101_v20, %v1077_v4  ;;  %2468 = vmatmul.msk.bf16.gmra.mxu2 %vm256_vm0, %v3790_v55  ;;  %v1213_v23 = vpop.f32.mrf.mxu3  ;;  %v1250_v51 = vpop.f32.mrf.mxu0 }
 0x1c0   : > { %2491 = vmatmul.msk.bf16.gmra.mxu0 %vm256_vm0, %v3052_v43 }
 0x1c1   : > { %v3292_v48 = vadd.f32 %v1138_v7, %v1114_v52 }
 0x1c2   : > { %v1032_v62 = vpop.f32.mrf.mxu2 }
 0x1c3   : > { %v1033_v44 = vadd.f32 %v1032_v62, %v3223_v40  ;;  %v3792_v62 = vld [vmem:[#allocation9_spill] sm:$0xff] }
 0x1c4   : > { %v1141_v3 = vpop.f32.mrf.mxu1 }
 0x1c5   : > { %v1078_v1 = vadd.f32 %v1067_v27, %v1033_v44 }
 0x1c7   : > { %v1115_v59 = vadd.f32 %v1104_v38, %v1078_v1  ;;  %2480 = vmatmul.msk.bf16.gmra.mxu1 %vm256_vm0, %v3791_v19  ;;  %v1216_v43 = vpop.f32.mrf.mxu3  ;;  %v1253_v27 = vpop.f32.mrf.mxu0 }
 0x1c9   : > { %v3299_v4 = vadd.f32 %v1141_v3, %v1115_v59 }
 0x1ca   : > { %2488 = vmatmul.msk.bf16.gmra.mxu3 %vm256_vm0, %v3776_v5  ;;  %v1034_v20 = vpop.f32.mrf.mxu2 }
 0x1cb   : > { %v1035_v25 = vadd.f32 %v1034_v20, %v3232_v11 }
 0x1cc   : > { %v1143_v7 = vpop.f32.mrf.mxu1 }
 0x1cd   : > { %v1079_v52 = vadd.f32 %v1069_v32, %v1035_v25 }
 0x1cf   : > { %v1116_v40 = vadd.f32 %v1106_v47, %v1079_v52  ;;  %2481 = vmatmul.msk.bf16.vlgmr.msrb.gmra.mxu2 %vm256_vm0, %v3792_v62  ;;  %v1218_v1 = vpop.f32.mrf.mxu3  ;;  %v1255_v59 = vpop.f32.mrf.mxu0 }
 0x1d0   : > { %2492 = vmatmul.msk.bf16.gmra.mxu0 %vm256_vm0, %v3071_v37  ;;  %1766 = vmatpush.bf16.msrb.mxu2 %v2860_v29 }
 0x1d1   : > { %v3307_v38 = vadd.f32 %v1143_v7, %v1116_v40 }
 0x1d2   : > { %v1169_v44 = vpop.f32.mrf.mxu2 }
 0x1d3   : > { %v1189_v3 = vadd.f32 %v1169_v44, %v3247_v61 }
 0x1d4   : > { %1767 = vmatpush.bf16.msrb.mxu2 %v2875_v33  ;;  %v1286_v11 = vpop.f32.mrf.mxu1 }
 0x1d5   : > { %v1226_v32 = vadd.f32 %v1206_v57, %v1189_v3 }
 0x1d7   : > { %v1263_v47 = vadd.f32 %v1243_v6, %v1226_v32  ;;  %2493 = vmatmul.msk.bf16.vlgmr.msra.gmra.mxu1 %vm256_vm0, %v2885_v35  ;;  %v1221_v19 = vpop.f32.mrf.mxu3  ;;  %v1258_v7 = vpop.f32.mrf.mxu0 }
 0x1d8   : > { %1877 = vmatpush.bf16.msra.mxu1 %v3190_v17 }
 0x1d9   : > { %v3316_v29 = vadd.f32 %v1286_v11, %v1263_v47 }
 0x1da   : > { %2501 = vmatmul.msk.bf16.vlgmr.msra.gmra.mxu3 %vm256_vm0, %v3779_v45  ;;  %v1171_v37 = vpop.f32.mrf.mxu2 }
 0x1db   : > { %v1314_v61 = vmax.f32 %v3165_v0, %v3316_v29  ;;  %v1190_v33 = vadd.f32 %v1171_v37, %v3257_v10  ;;  %v2614_v0 = vld [vmem:[%s3708_s1 + $0xe8] sm:$0xff] }
 0x1dc   : > { %v1288_v57 = vpop.f32.mrf.mxu1  ;;  %1878 = vmatpush.bf16.msra.mxu1 %v3202_v22 }
 0x1dd   : > { %v1227_v6 = vadd.f32 %v1208_v46, %v1190_v33 }
 0x1df   : > { %v1264_v35 = vadd.f32 %v1245_v58, %v1227_v6  ;;  %2482 = vmatmul.msk.bf16.gmra.mxu2 %vm256_vm0, %v2828_v21  ;;  %v1223_v46 = vpop.f32.mrf.mxu3 }
 0x1e0   : > { %2505 = vmatmul.msk.bf16.vlgmr.msrb.gmra.mxu0 %vm256_vm0, %v2723_v8 }
 0x1e1   : > { %v3326_v45 = vadd.f32 %v1288_v57, %v1264_v35 }
 0x1e2   : > { %v1174_v17 = vpop.f32.mrf.mxu2 }
 0x1e3   : > { %v1315_v20 = vmax.f32 %v3176_v14, %v3326_v45  ;;  %v1191_v10 = vadd.f32 %v1174_v17, %v3268_v31 }
 0x1e4   : > { %v1291_v25 = vpop.f32.mrf.mxu1 }
 0x1e5   : > { %v1228_v22 = vadd.f32 %v1211_v41, %v1191_v10  ;;  %v1260_v41 = vpop.f32.mrf.mxu0 }
 0x1e7   : > { %v1265_v52 = vadd.f32 %v1248_v60, %v1228_v22  ;;  %2494 = vmatmul.msk.bf16.gmra.mxu1 %vm256_vm0, %v2925_v42  ;;  %v1360_v3 = vpop.f32.mrf.mxu3 }
 0x1e9   : > { %v3335_v8 = vadd.f32 %v1291_v25, %v1265_v52 }
 0x1ea   : > { %2502 = vmatmul.msk.bf16.gmra.mxu3 %vm256_vm0, %v3783_v2  ;;  %v1176_v21 = vpop.f32.mrf.mxu2 }
 0x1eb   : > { %v1316_v58 = vmax.f32 %v3185_v54, %v3335_v8  ;;  %v1192_v40 = vadd.f32 %v1176_v21, %v3278_v36  ;;  %v1998_v54 = vld [vmem:[%s3709_s2 + $0x10] sm:$0xff]  ;;  %v2001_v8 = vld [vmem:[%s3709_s2 + $0x28] sm:$0xff] }
 0x1ec   : > { %v1293_v31 = vpop.f32.mrf.mxu1 }
 0x1ed   : > { %v1229_v44 = vadd.f32 %v1213_v23, %v1192_v40 }
 0x1ef   : > { %v1266_v11 = vadd.f32 %v1250_v51, %v1229_v44  ;;  %2483 = vmatmul.msk.bf16.gmra.mxu2 %vm256_vm0, %v2844_v24  ;;  %v1362_v23 = vpop.f32.mrf.mxu3  ;;  %v1389_v51 = vpop.f32.mrf.mxu0 }
 0x1f0   : > { %2506 = vmatmul.msk.bf16.gmra.mxu0 %vm256_vm0, %v2760_v13 }
 0x1f1   : > { %v3344_v42 = vadd.f32 %v1293_v31, %v1266_v11 }
 0x1f2   : > { %v1179_v2 = vpop.f32.mrf.mxu2 }
 0x1f3   : > { %v1317_v60 = vmax.f32 %v3196_v30, %v3344_v42  ;;  %v1193_v32 = vadd.f32 %v1179_v2, %v3285_v53  ;;  %v2615_v30 = vld [vmem:[%s3708_s1 + $0xf0] sm:$0xff] }
 0x1f4   : > { %v1296_v36 = vpop.f32.mrf.mxu1 }
 0x1f5   : > { %v1230_v47 = vadd.f32 %v1216_v43, %v1193_v32 }
 0x1f7   : > { %v1267_v37 = vadd.f32 %v1253_v27, %v1230_v47  ;;  %2495 = vmatmul.msk.bf16.gmra.mxu1 %vm256_vm0, %v2959_v50  ;;  %v1365_v43 = vpop.f32.mrf.mxu3  ;;  %v1391_v27 = vpop.f32.mrf.mxu0  ;;  %v3795_v47 = vld [vmem:[#allocation12_spill] sm:$0xff] }
 0x1f9   : > { %v3353_v13 = vadd.f32 %v1296_v36, %v1267_v37 }
 0x1fa   : > { %2503 = vmatmul.msk.bf16.gmra.mxu3 %vm256_vm0, %v3788_v26  ;;  %v1181_v24 = vpop.f32.mrf.mxu2 }
 0x1fb   : > { %v1318_v33 = vmax.f32 %v3208_v63, %v3353_v13  ;;  %v1194_v57 = vadd.f32 %v1181_v24, %v3292_v48  ;;  %v2616_v63 = vld [vmem:[%s3708_s1 + $0xf8] sm:$0xff] }
 0x1fc   : > { %v1298_v53 = vpop.f32.mrf.mxu1 }
 0x1fd   : > { %v1231_v6 = vadd.f32 %v1218_v1, %v1194_v57 }
 0x1ff   : > { %v1268_v35 = vadd.f32 %v1255_v59, %v1231_v6  ;;  %2484 = vmatmul.msk.bf16.gmra.mxu2 %vm256_vm0, %v2856_v28  ;;  %v1367_v1 = vpop.f32.mrf.mxu3 }
 0x200   : > { %2507 = vmatmul.msk.bf16.gmra.mxu0 %vm256_vm0, %v2793_v16 }
 0x201   : > { %v3362_v50 = vadd.f32 %v1298_v53, %v1268_v35 }
 0x202   : > { %v1184_v26 = vpop.f32.mrf.mxu2 }
 0x203   : > { %v1319_v17 = vmax.f32 %v3219_v18, %v3362_v50  ;;  %v1195_v10 = vadd.f32 %v1184_v26, %v3299_v4  ;;  %v1394_v4 = vpop.f32.mrf.mxu0 }
 0x204   : > { %v1301_v48 = vpop.f32.mrf.mxu1 }
 0x205   : > { %v1232_v25 = vadd.f32 %v1221_v19, %v1195_v10 }
 0x207   : > { %v1269_v22 = vadd.f32 %v1258_v7, %v1232_v25  ;;  %2496 = vmatmul.msk.bf16.gmra.mxu1 %vm256_vm0, %v2989_v56  ;;  %v1370_v19 = vpop.f32.mrf.mxu3  ;;  %v3793_v7 = vld [vmem:[#allocation13_spill] sm:$0xff]  ;;  %v3794_v56 = vld [vmem:[#allocation10_spill] sm:$0xff] }
 0x209   : > { %v3371_v16 = vadd.f32 %v1301_v48, %v1269_v22 }
 0x20a   : > { %2504 = vmatmul.msk.bf16.gmra.mxu3 %vm256_vm0, %v3790_v55  ;;  %v1186_v28 = vpop.f32.mrf.mxu2 }
 0x20b   : > { %v1320_v59 = vmax.f32 %v3229_v39, %v3371_v16  ;;  %v1196_v52 = vadd.f32 %v1186_v28, %v3307_v38  ;;  %v1396_v32 = vpop.f32.mrf.mxu0 }
 0x20c   : > { %v1303_v21 = vpop.f32.mrf.mxu1 }
 0x20d   : > { %v1233_v40 = vadd.f32 %v1223_v46, %v1196_v52 }
 0x20f   : > { %v1270_v31 = vadd.f32 %v1260_v41, %v1233_v40  ;;  %2497 = vmatmul.msk.bf16.vlgmr.msra.gmra.mxu2 %vm256_vm0, %v3793_v7  ;;  %v1372_v41 = vpop.f32.mrf.mxu3  ;;  %v1948_v40 = vpop.permute.xlu1 %1947 }
 0x210   : > { %2508 = vmatmul.msk.bf16.gmra.mxu0 %vm256_vm0, %v3794_v56  ;;  %1914 = vmatpush.bf16.msra.mxu2 %v3261_v12 }
 0x211   : > { %v3381_v55 = vadd.f32 %v1303_v21, %v1270_v31  ;;  %v3799_v31 = vld [vmem:[#allocation15_spill] sm:$0xff]  ;;  %1957 = vmatpush.bf16.msra.mxu3 %v1948_v40 }
 0x212   : > { %v1331_v44 = vpop.f32.mrf.mxu2 }
 0x213   : > { %v1321_v11 = vmax.f32 %v3238_v9, %v3381_v55  ;;  %v1361_v38 = vadd.f32 %v1360_v3, %v1331_v44 }
 0x214   : > { %1915 = vmatpush.bf16.msra.mxu2 %v3271_v15  ;;  %v1426_v46 = vpop.f32.mrf.mxu1  ;;  %v3796_v15 = vld [vmem:[#allocation17_spill] sm:$0xff] }
 0x215   : > { %v1409_v2 = vadd.f32 %v1389_v51, %v1361_v38  ;;  %v1399_v51 = vpop.f32.mrf.mxu0 }
 0x217   : > { %v3386_v36 = vadd.f32 %v1426_v46, %v1409_v2  ;;  %2509 = vmatmul.msk.bf16.vlgmr.msrb.gmra.mxu1 %vm256_vm0, %v3795_v47  ;;  %v1375_v53 = vpop.f32.mrf.mxu3  ;;  %v2602_v47 = vld [vmem:[%s3708_s1 + $0x90] sm:$0xff] }
 0x21a   : > { %2517 = vmatmul.msk.bf16.vlgmr.msrb.gmra.mxu3 %vm256_vm0, %v3792_v62  ;;  %v1333_v12 = vpop.f32.mrf.mxu2 }
 0x21b   : > { %v1363_v37 = vadd.f32 %v1362_v23, %v1333_v12  ;;  %v3797_v23 = vld [vmem:[#allocation14_spill] sm:$0xff] }
 0x21c   : > { %v1428_v24 = vpop.f32.mrf.mxu1 }
 0x21d   : > { %v1410_v57 = vadd.f32 %v1391_v27, %v1363_v37  ;;  %v2601_v27 = vld [vmem:[%s3708_s1 + $0x88] sm:$0xff]  ;;  %v1401_v22 = vpop.f32.mrf.mxu0 }
 0x21f   : > { %v3392_v3 = vadd.f32 %v1428_v24, %v1410_v57  ;;  %2498 = vmatmul.msk.bf16.gmra.mxu2 %vm256_vm0, %v3796_v15  ;;  %v1377_v48 = vpop.f32.mrf.mxu3 }
 0x220   : > { %2521 = vmatmul.msk.bf16.vlgmr.msra.gmra.mxu0 %vm256_vm0, %v2880_v34 }
 0x222   : > { %v1336_v6 = vpop.f32.mrf.mxu2 }
 0x223   : > { %v1366_v35 = vadd.f32 %v1365_v43, %v1336_v6 }
 0x224   : > { %v1431_v26 = vpop.f32.mrf.mxu1 }
 0x225   : > { %v1411_v10 = vadd.f32 %v1394_v4, %v1366_v35  ;;  %v3798_v4 = vld [vmem:[#allocation19_spill] sm:$0xff]  ;;  %v1404_v38 = vpop.f32.mrf.mxu0 }
 0x227   : > { %v3398_v62 = vadd.f32 %v1431_v26, %v1411_v10  ;;  %2510 = vmatmul.msk.bf16.gmra.mxu1 %vm256_vm0, %v3797_v23  ;;  %v1500_v43 = vpop.f32.mrf.mxu3 }
 0x22a   : > { %2518 = vmatmul.msk.bf16.gmra.mxu3 %vm256_vm0, %v2601_v27  ;;  %v1338_v25 = vpop.f32.mrf.mxu2 }
 0x22b   : > { %v1368_v34 = vadd.f32 %v1367_v1, %v1338_v25 }
 0x22c   : > { %v1433_v28 = vpop.f32.mrf.mxu1 }
 0x22d   : > { %v1412_v52 = vadd.f32 %v1396_v32, %v1368_v34  ;;  %v3800_v32 = vld [vmem:[#allocation16_spill] sm:$0xff]  ;;  %v1406_v15 = vpop.f32.mrf.mxu0  ;;  %v2603_v34 = vld [vmem:[%s3708_s1 + $0x98] sm:$0xff] }
 0x22f   : > { %v3406_v21 = vadd.f32 %v1433_v28, %v1412_v52  ;;  %2499 = vmatmul.msk.bf16.gmra.mxu2 %vm256_vm0, %v3798_v4  ;;  %v1502_v2 = vpop.f32.mrf.mxu3 }
 0x230   : > { %2522 = vmatmul.msk.bf16.gmra.mxu0 %vm256_vm0, %v3799_v31  ;;  %v2604_v31 = vld [vmem:[%s3708_s1 + $0x60] sm:$0xff] }
 0x232   : > { %v1341_v7 = vpop.f32.mrf.mxu2 }
 0x233   : > { %v1371_v56 = vadd.f32 %v1370_v19, %v1341_v7  ;;  %v1946_v7 = vpop.permute.xlu2 %1945 }
 0x234   : > { %v1436_v44 = vpop.f32.mrf.mxu1  ;;  %1958 = vmatpush.bf16.msra.mxu3 %v1946_v7 }
 0x235   : > { %v1413_v46 = vadd.f32 %v1399_v51, %v1371_v56  ;;  %v3801_v51 = vld [vmem:[#allocation22_spill] sm:$0xff] }
 0x237   : > { %v3412_v1 = vadd.f32 %v1436_v44, %v1413_v46  ;;  %2511 = vmatmul.msk.bf16.gmra.mxu1 %vm256_vm0, %v3800_v32  ;;  %v1505_v19 = vpop.f32.mrf.mxu3 }
 0x23a   : > { %2519 = vmatmul.msk.bf16.gmra.mxu3 %vm256_vm0, %v2602_v47  ;;  %v1343_v12 = vpop.f32.mrf.mxu2 }
 0x23b   : > { %v1373_v37 = vadd.f32 %v1372_v41, %v1343_v12  ;;  %v3802_v41 = vld [vmem:[#allocation18_spill] sm:$0xff]  ;;  %v3803_v12 = vld [vmem:[#allocation21_spill] sm:$0xff] }
 0x23c   : > { %v1438_v24 = vpop.f32.mrf.mxu1 }
 0x23d   : > { %v1414_v57 = vadd.f32 %v1401_v22, %v1373_v37  ;;  %v1543_v22 = vpop.f32.mrf.mxu0  ;;  %v2605_v37 = vld [vmem:[%s3708_s1 + $0x100] sm:$0xff] }
 0x23f   : > { %v3420_v6 = vadd.f32 %v1438_v24, %v1414_v57  ;;  %2500 = vmatmul.msk.bf16.gmra.mxu2 %vm256_vm0, %v3801_v51  ;;  %v1507_v27 = vpop.f32.mrf.mxu3 }
 0x240   : > { %2523 = vmatmul.msk.bf16.gmra.mxu0 %vm256_vm0, %v2954_v49 }
 0x242   : > { %v1346_v35 = vpop.f32.mrf.mxu2 }
 0x243   : > { %v1376_v26 = vadd.f32 %v1375_v53, %v1346_v35 }
 0x244   : > { %v1441_v10 = vpop.f32.mrf.mxu1 }
 0x245   : > { %v1415_v23 = vadd.f32 %v1404_v38, %v1376_v26  ;;  %v1545_v44 = vpop.f32.mrf.mxu0  ;;  %v2606_v26 = vld [vmem:[%s3708_s1 + $0x68] sm:$0xff] }
 0x247   : > { %v3426_v25 = vadd.f32 %v1441_v10, %v1415_v23  ;;  %2512 = vmatmul.msk.bf16.gmra.mxu1 %vm256_vm0, %v3802_v41  ;;  %v1510_v53 = vpop.f32.mrf.mxu3 }
 0x24a   : > { %2520 = vmatmul.msk.bf16.gmra.mxu3 %vm256_vm0, %v2603_v34  ;;  %v1348_v28 = vpop.f32.mrf.mxu2 }
 0x24b   : > { %v1378_v52 = vadd.f32 %v1377_v48, %v1348_v28 }
 0x24c   : > { %v1443_v49 = vpop.f32.mrf.mxu1 }
 0x24d   : > { %v1416_v4 = vadd.f32 %v1406_v15, %v1378_v52  ;;  %v1548_v15 = vpop.f32.mrf.mxu0 }
 0x24f   : > { %v3434_v40 = vadd.f32 %v1443_v49, %v1416_v4  ;;  %2513 = vmatmul.msk.bf16.vlgmr.msrb.gmra.mxu2 %vm256_vm0, %v2604_v31  ;;  %v1512_v32 = vpop.f32.mrf.mxu3  ;;  %v3804_v49 = vld [vmem:[#allocation23_spill] sm:$0xff] }
 0x250   : > { %2524 = vmatmul.msk.bf16.gmra.mxu0 %vm256_vm0, %v3776_v5 }
 0x252   : > { %v1463_v56 = vpop.f32.mrf.mxu2 }
 0x253   : > { %v1483_v48 = vadd.f32 %v1463_v56, %v3386_v36 }
 0x254   : > { %v1586_v38 = vpop.f32.mrf.mxu1 }
 0x255   : > { %v1520_v46 = vadd.f32 %v1500_v43, %v1483_v48  ;;  %v2608_v48 = vld [vmem:[%s3708_s1 + $0x70] sm:$0xff] }
 0x257   : > { %v1563_v47 = vadd.f32 %v1543_v22, %v1520_v46  ;;  %2525 = vmatmul.msk.bf16.vlgmr.msra.gmra.mxu1 %vm256_vm0, %v3803_v12  ;;  %v1515_v43 = vpop.f32.mrf.mxu3 }
 0x259   : > { %v3449_v5 = vadd.f32 %v1586_v38, %v1563_v47 }
 0x25a   : > { %2533 = vmatmul.msk.bf16.vlgmr.msra.gmra.mxu3 %vm256_vm0, %v2605_v37  ;;  %v1465_v24 = vpop.f32.mrf.mxu2 }
 0x25b   : > { %v1484_v57 = vadd.f32 %v1465_v24, %v3392_v3  ;;  %v1550_v3 = vpop.f32.mrf.mxu0 }
 0x25c   : > { %v1588_v36 = vpop.f32.mrf.mxu1 }
 0x25d   : > { %v1521_v51 = vadd.f32 %v1502_v2, %v1484_v57  ;;  %v2607_v2 = vld [vmem:[%s3708_s1 + $0x108] sm:$0xff]  ;;  %v3805_v57 = vld [vmem:[#allocation25_spill] sm:$0xff] }
 0x25f   : > { %v1564_v35 = vadd.f32 %v1545_v44, %v1521_v51  ;;  %2514 = vmatmul.msk.bf16.gmra.mxu2 %vm256_vm0, %v2606_v26  ;;  %v1517_v28 = vpop.f32.mrf.mxu3 }
 0x261   : > { %v3456_v10 = vadd.f32 %v1588_v36, %v1564_v35 }
 0x262   : > { %v1468_v23 = vpop.f32.mrf.mxu2 }
 0x263   : > { %v1485_v41 = vadd.f32 %v1468_v23, %v3398_v62  ;;  %v1553_v38 = vpop.f32.mrf.mxu0 }
 0x264   : > { %v1591_v22 = vpop.f32.mrf.mxu1 }
 0x265   : > { %v1522_v34 = vadd.f32 %v1505_v19, %v1485_v41 }
 0x267   : > { %v1565_v52 = vadd.f32 %v1548_v15, %v1522_v34  ;;  %2526 = vmatmul.msk.bf16.gmra.mxu1 %vm256_vm0, %v3804_v49  ;;  %v3468_v19 = vpop.f32.mrf.mxu3  ;;  %v2609_v15 = vld [vmem:[%s3708_s1 + $0x110] sm:$0xff] }
 0x269   : > { %v3465_v4 = vadd.f32 %v1591_v22, %v1565_v52  ;;  %v2610_v22 = vld [vmem:[%s3708_s1 + $0x78] sm:$0xff] }
 0x26a   : > { %2534 = vmatmul.msk.bf16.gmra.mxu3 %vm256_vm0, %v2607_v2  ;;  %v1470_v31 = vpop.f32.mrf.mxu2 }
 0x26b   : > { %v1486_v7 = vadd.f32 %v1470_v31, %v3406_v21  ;;  %v1555_v51 = vpop.f32.mrf.mxu0 }
 0x26c   : > { %v1593_v62 = vpop.f32.mrf.mxu1 }
 0x26d   : > { %v1523_v56 = vadd.f32 %v1507_v27, %v1486_v7  ;;  %v2628_v7 = vmov 0  }
 0x26e   : > { %2597 = vset.pattern.permute.xlu0 %v2628_v7  ;;  %2598 = vset.pattern.permute.xlu1 %v2628_v7 }
 0x26f   : > { %v1566_v44 = vadd.f32 %v1550_v3, %v1523_v56  ;;  %2515 = vmatmul.msk.bf16.gmra.mxu2 %vm256_vm0, %v2608_v48  ;;  %v3477_v21 = vpop.f32.mrf.mxu3  ;;  %v2611_v56 = vld [vmem:[%s3708_s1 + $0xd8] sm:$0xff]  ;;  %2599 = vset.pattern.permute.xlu2 %v2628_v7 }
 0x270   : > { %2016 = vperm.xlu2 %2599, %v1998_v54  }
 0x271   : > { %v3474_v46 = vadd.f32 %v1593_v62, %v1566_v44 }
 0x272   : > { %v1473_v47 = vpop.f32.mrf.mxu2 }
 0x273   : > { %v1487_v12 = vadd.f32 %v1473_v47, %v3412_v1  ;;  %v1558_v49 = vpop.f32.mrf.mxu0  ;;  %v1997_v47 = vld [vmem:[%s3709_s2 + $0x8] sm:$0xff] }
 0x274   : > { %v1596_v37 = vpop.f32.mrf.mxu1  ;;  %2011 = vperm.xlu1 %2598, %v1997_v47  }
 0x275   : > { %v1524_v24 = vadd.f32 %v1510_v53, %v1487_v12 }
 0x277   : > { %v1567_v27 = vadd.f32 %v1553_v38, %v1524_v24  ;;  %2527 = vmatmul.msk.bf16.gmra.mxu1 %vm256_vm0, %v3805_v57  ;;  %v3488_v23 = vpop.f32.mrf.mxu3 }
 0x279   : > { %v3485_v36 = vadd.f32 %v1596_v37, %v1567_v27  ;;  %v2613_v27 = vld [vmem:[%s3708_s1 + $0xe0] sm:$0xff] }
 0x27a   : > { %2535 = vmatmul.msk.bf16.gmra.mxu3 %vm256_vm0, %v2609_v15  ;;  %v1475_v35 = vpop.f32.mrf.mxu2 }
 0x27b   : > { %v1488_v1 = vadd.f32 %v1475_v35, %v3420_v6  ;;  %v1996_v6 = vld [vmem:[%s3709_s2] sm:$0xff]  ;;  %v1560_v12 = vpop.f32.mrf.mxu0 }
 0x27c   : > { %v1598_v26 = vpop.f32.mrf.mxu1  ;;  %2006 = vperm.xlu0 %2597, %v1996_v6  }
 0x27d   : > { %v1525_v53 = vadd.f32 %v1512_v32, %v1488_v1 }
 0x27f   : > { %v1568_v41 = vadd.f32 %v1555_v51, %v1525_v53  ;;  %2516 = vmatmul.msk.bf16.gmra.mxu2 %vm256_vm0, %v2610_v22  ;;  %v3497_v31 = vpop.f32.mrf.mxu3 }
 0x281   : > { %v3494_v34 = vadd.f32 %v1598_v26, %v1568_v41  ;;  %v1999_v41 = vld [vmem:[%s3709_s2 + $0x18] sm:$0xff] }
 0x282   : > { %v1478_v3 = vpop.f32.mrf.mxu2  ;;  %2021 = vperm.xlu1 %2598, %v1999_v41  }
 0x283   : > { %v1489_v52 = vadd.f32 %v1478_v3, %v3426_v25  ;;  %v2612_v25 = vld [vmem:[%s3708_s1 + $0x118] sm:$0xff]  ;;  %v1703_v22 = vpop.f32.mrf.mxu0 }
 0x284   : > { %v1601_v32 = vpop.f32.mrf.mxu1  ;;  %2031 = vperm.xlu0 %2597, %v2001_v8  }
 0x285   : > { %v1526_v2 = vadd.f32 %v1515_v43, %v1489_v52 }
 0x287   : > { %v1569_v62 = vadd.f32 %v1558_v49, %v1526_v2  ;;  %2528 = vmatmul.msk.bf16.gmra.mxu1 %vm256_vm0, %v2611_v56  ;;  %v3514_v37 = vpop.f32.mrf.mxu3  ;;  %v2003_v56 = vld [vmem:[%s3709_s2 + $0x38] sm:$0xff] }
 0x289   : > { %v1612_v43 = vadd.f32 %v1601_v32, %v1569_v62  ;;  %v2000_v32 = vld [vmem:[%s3709_s2 + $0x20] sm:$0xff] }
 0x28a   : > { %2536 = vmatmul.msk.bf16.gmra.mxu3 %vm256_vm0, %v2612_v25  ;;  %v1480_v44 = vpop.f32.mrf.mxu2  ;;  %2026 = vperm.xlu2 %2599, %v2000_v32  }
 0x28b   : > { %v1490_v48 = vadd.f32 %v1480_v44, %v3434_v40  ;;  %v1705_v49 = vpop.f32.mrf.mxu0 }
 0x28c   : > { %v1603_v57 = vpop.f32.mrf.mxu1 }
 0x28d   : > { %v1527_v38 = vadd.f32 %v1517_v28, %v1490_v48 }
 0x28f   : > { %v1570_v24 = vadd.f32 %v1560_v12, %v1527_v38  ;;  %2529 = vmatmul.msk.bf16.vlgmr.msra.gmra.mxu2 %vm256_vm0, %v2613_v27  ;;  %v3526_v35 = vpop.f32.mrf.mxu3 }
 0x291   : > { %v1613_v15 = vadd.f32 %v1603_v57, %v1570_v24 }
 0x292   : > { %v1629_v51 = vpop.f32.mrf.mxu2  ;;  %2041 = vperm.xlu2 %2599, %v2003_v56  }
 0x293   : > { %v1649_v40 = vadd.f32 %v1629_v51, %v3449_v5 }
 0x295   : > { %v3524_v28 = vmax.f32 %v1314_v61, %v1649_v40 }
 0x297   : > { %v3541_v61 = vpop.f32.mrf.mxu3 }
 0x29a   : > { %v1631_v1 = vpop.f32.mrf.mxu2 }
 0x29b   : > { %v1650_v26 = vadd.f32 %v1631_v1, %v3456_v10 }
 0x29d   : > { %v3532_v53 = vmax.f32 %v1315_v20, %v1650_v26 }
 0x29f   : > { %2530 = vmatmul.msk.bf16.gmra.mxu2 %vm256_vm0, %v2614_v0  ;;  %v3550_v10 = vpop.f32.mrf.mxu3 }
 0x2a2   : > { %v1634_v29 = vpop.f32.mrf.mxu2 }
 0x2a3   : > { %v1651_v5 = vadd.f32 %v1634_v29, %v3465_v4  ;;  %v2002_v4 = vld [vmem:[%s3709_s2 + $0x30] sm:$0xff] }
 0x2a4   : > { %2036 = vperm.xlu1 %2598, %v2002_v4  }
 0x2a5   : > { %v3547_v14 = vmax.f32 %v1316_v58, %v1651_v5  ;;  %v1732_v58 = vpop.f32.mrf.mxu1 }
 0x2a7   : > { %v1806_v52 = vpop.f32.mrf.mxu3 }
 0x2aa   : > { %v1636_v45 = vpop.f32.mrf.mxu2 }
 0x2ab   : > { %v1652_v20 = vadd.f32 %v1636_v45, %v3474_v46  ;;  %v1704_v45 = vadd.f32 %v1703_v22, %v3468_v19 }
 0x2ad   : > { %v3555_v3 = vmax.f32 %v1317_v60, %v1652_v20  ;;  %v1734_v7 = vpop.f32.mrf.mxu1  ;;  %v1752_v54 = vadd.f32 %v1732_v58, %v1704_v45 }
 0x2af   : > { %2531 = vmatmul.msk.bf16.gmra.mxu2 %vm256_vm0, %v2615_v30  ;;  %v1808_v13 = vpop.f32.mrf.mxu3 }
 0x2b2   : > { %v1639_v42 = vpop.f32.mrf.mxu2 }
 0x2b3   : > { %v1653_v60 = vadd.f32 %v1639_v42, %v3485_v36 }
 0x2b5   : > { %v3574_v46 = vmax.f32 %v1318_v33, %v1653_v60  ;;  %v1708_v33 = vpop.f32.mrf.mxu0  ;;  %v1737_v50 = vpop.f32.mrf.mxu1  ;;  %v1706_v60 = vadd.f32 %v1705_v49, %v3477_v21 }
 0x2b6   : > { %v1709_v56 = vadd.f32 %v1708_v33, %v3488_v23 }
 0x2b7   : > { %v1811_v25 = vpop.f32.mrf.mxu3 }
 0x2b8   : > { %v1754_v58 = vadd.f32 %v1737_v50, %v1709_v56 }
 0x2ba   : > { %v1641_v2 = vpop.f32.mrf.mxu2 }
 0x2bb   : > { %v1654_v6 = vadd.f32 %v1641_v2, %v3494_v34 }
 0x2bd   : > { %v3583_v36 = vmax.f32 %v1319_v17, %v1654_v6  ;;  %v1710_v44 = vpop.f32.mrf.mxu0 }
 0x2bf   : > { %2532 = vmatmul.msk.bf16.gmra.mxu2 %vm256_vm0, %v2616_v63  ;;  %v3602_v12 = vpop.f32.mrf.mxu3  ;;  %v1753_v63 = vadd.f32 %v1734_v7, %v1706_v60  ;;  %v1711_v7 = vadd.f32 %v1710_v44, %v3497_v31 }
 0x2c2   : > { %v1644_v34 = vpop.f32.mrf.mxu2 }
 0x2c3   : > { %v1655_v62 = vadd.f32 %v1644_v34, %v1612_v43  ;;  %v1739_v43 = vpop.f32.mrf.mxu1 }
 0x2c5   : > { %v3595_v18 = vmax.f32 %v1320_v59, %v1655_v62  ;;  %v3604_v24 = vpop.f32.mrf.mxu0 }
 0x2c7   : > { %v3608_v16 = vpop.f32.mrf.mxu3 }
 0x2ca   : > { %v1646_v17 = vpop.f32.mrf.mxu2 }
 0x2cb   : > { %v1656_v48 = vadd.f32 %v1646_v17, %v1613_v15  ;;  %v3606_v27 = vpop.f32.mrf.mxu1 }
 0x2cd   : > { %v3600_v38 = vmax.f32 %v1321_v11, %v1656_v48  ;;  %v3610_v59 = vpop.f32.mrf.mxu0 }
 0x2cf   : > { %3806 = vst [vmem:[#allocation20_spill] sm:$0xff] %v3600_v38  ;;  %v3614_v51 = vpop.f32.mrf.mxu3 }
 0x2d2   : > { %v1769_v47 = vpop.f32.mrf.mxu2 }
 0x2d3   : > { %v3612_v15 = vpop.f32.mrf.mxu1  ;;  %v1789_v8 = vadd.f32 %v1769_v47, %v1752_v54 }
 0x2d5   : > { %v3616_v9 = vpop.f32.mrf.mxu0  ;;  %v1826_v2 = vadd.f32 %v1806_v52, %v1789_v8 }
 0x2d7   : > { %v3622_v1 = vpop.f32.mrf.mxu3 }
 0x2da   : > { %v1771_v39 = vpop.f32.mrf.mxu2 }
 0x2db   : > { %v3618_v11 = vpop.f32.mrf.mxu1  ;;  %v1790_v62 = vadd.f32 %v1771_v39, %v1753_v63 }
 0x2dd   : > { %v3624_v26 = vpop.f32.mrf.mxu0  ;;  %v1827_v48 = vadd.f32 %v1808_v13, %v1790_v62  ;;  %v3644_v13 = vld [vmem:[%s3710_s3] ss:$0 sm:$0xff] }
 0x2df   : > { %v3630_v5 = vpop.f32.mrf.mxu3 }
 0x2e2   : > { %v1774_v57 = vpop.f32.mrf.mxu2 }
 0x2e3   : > { %v3626_v41 = vpop.f32.mrf.mxu1  ;;  %v1791_v21 = vadd.f32 %v1774_v57, %v1754_v58 }
 0x2e5   : > { %v1843_v29 = vpop.f32.mrf.mxu0 }
 0x2e6   : > { %v1863_v34 = vadd.f32 %v1843_v29, %v1826_v2  ;;  %v1828_v29 = vadd.f32 %v1811_v25, %v1791_v21  ;;  %v2012_v25 = vpop.permute.xlu1 %2011  ;;  %v1716_v21 = vadd.f32 %v3610_v59, %v3526_v35 }
 0x2e7   : > { %v1960_v42 = vpop.f32.mrf.mxu3 }
 0x2ea   : > { %v1776_v55 = vpop.f32.mrf.mxu2 }
 0x2eb   : > { %v1880_v20 = vpop.f32.mrf.mxu1 }
 0x2ec   : > { %v1900_v22 = vadd.f32 %v1880_v20, %v1863_v34  ;;  %v1755_v20 = vadd.f32 %v1739_v43, %v1711_v7  ;;  %v1714_v43 = vadd.f32 %v3604_v24, %v3514_v37 }
 0x2ed   : > { %v1845_v30 = vpop.f32.mrf.mxu0 }
 0x2ee   : > { %v1864_v54 = vadd.f32 %v1845_v30, %v1827_v48  ;;  %v2007_v49 = vpop.permute.xlu0 %2006  ;;  %v1792_v60 = vadd.f32 %v1776_v55, %v1755_v20  ;;  %v1756_v56 = vadd.f32 %v3606_v27, %v1714_v43 }
 0x2ef   : > { %v1962_v19 = vpop.f32.mrf.mxu3 }
 0x2f0   : > { %v1829_v55 = vadd.f32 %v3602_v12, %v1792_v60 }
 0x2f2   : > { %v3620_v40 = vpop.f32.mrf.mxu2 }
 0x2f3   : > { %v1882_v6 = vpop.f32.mrf.mxu1  ;;  %v1793_v37 = vadd.f32 %v3620_v40, %v1756_v56  ;;  %v1757_v40 = vadd.f32 %v3612_v15, %v1716_v21 }
 0x2f4   : > { %v1901_v39 = vadd.f32 %v1882_v6, %v1864_v54  ;;  %v2022_v59 = vpop.permute.xlu1 %2021 }
 0x2f5   : > { %v1848_v17 = vpop.f32.mrf.mxu0 }
 0x2fa   : > { %v3628_v0 = vpop.f32.mrf.mxu2 }
 0x2fb   : > { %v1885_v45 = vpop.f32.mrf.mxu1 }
 0x2fd   : > { %v1850_v23 = vpop.f32.mrf.mxu0 }
 0x2fe   : > { %v1866_v58 = vadd.f32 %v1850_v23, %v1829_v55  ;;  %v1794_v23 = vadd.f32 %v3628_v0, %v1757_v40 }
 0x300   : > { %v1831_v15 = vadd.f32 %v3614_v51, %v1794_v23 }
 0x302   : > { %v3633_v4 = vpop.f32.mrf.mxu2 }
 0x303   : > { %v1887_v44 = vpop.f32.mrf.mxu1 }
 0x304   : > { %v1903_v27 = vadd.f32 %v1887_v44, %v1866_v58 }
 0x30a   : > { %v3636_v32 = vpop.f32.mrf.mxu2 }
 0x30b   : > { %v1890_v54 = vpop.f32.mrf.mxu1 }
 0x312   : > { %v1917_v38 = vpop.f32.mrf.mxu2 }
 0x313   : > { %v1937_v47 = vadd.f32 %v1917_v38, %v1900_v22  ;;  %v1965_v38 = vpop.f32.mrf.mxu3 }
 0x315   : > { %v1980_v52 = vadd.f32 %v1960_v42, %v1937_v47  ;;  %v1865_v42 = vadd.f32 %v1848_v17, %v1828_v29  ;;  %v1853_v17 = vpop.f32.mrf.mxu0  ;;  %v2017_v47 = vpop.permute.xlu2 %2016 }
 0x317   : > { %v1988_v8 = vmax.f32 %v3524_v28, %v1980_v52  ;;  %v1902_v63 = vadd.f32 %v1885_v45, %v1865_v42  ;;  %v1830_v52 = vadd.f32 %v3608_v16, %v1793_v37  ;;  %v1719_v16 = vadd.f32 %v3616_v9, %v3541_v61  ;;  %v1892_v42 = vpop.f32.mrf.mxu1 }
 0x319   : > { %v2044_v33 = vadd.f32 %v2007_v49, %v1988_v8  ;;  %v1867_v29 = vadd.f32 %v1853_v17, %v1830_v52  ;;  %v1758_v60 = vadd.f32 %v3618_v11, %v1719_v16 }
 0x31a   : > { %v1919_v50 = vpop.f32.mrf.mxu2 }
 0x31b   : > { %v2052_v57 = vmax.f32 %v2044_v33, 0.0  ;;  %v1938_v30 = vadd.f32 %v1919_v50, %v1901_v39  ;;  %v1967_v48 = vpop.f32.mrf.mxu3 }
 0x31d   : > { %v2064_v28 = vmul.f32 %v3644_v13, %v2052_v57  ;;  %v1981_v31 = vadd.f32 %v1962_v19, %v1938_v30  ;;  %v1904_v57 = vadd.f32 %v1890_v54, %v1867_v29 }
 0x31f   : > { %v2072_v2 = vpack.c.bf16 %v2064_v28, %v2064_v28  ;;  %v1989_v6 = vmax.f32 %v3532_v53, %v1981_v31 }
 0x321   : > { %2081 = vst.msk [vmem:[%s3651_s29] sm:$0xf] %vm2080_vm1, %v2072_v2  ;;  %v2045_v34 = vadd.f32 %v2012_v25, %v1989_v6  ;;  %v1795_v25 = vadd.f32 %v3633_v4, %v1758_v60 }
 0x322   : > { %v1922_v62 = vpop.f32.mrf.mxu2 }
 0x323   : > { %v2053_v19 = vmax.f32 %v2045_v34, 0.0  ;;  %v1939_v22 = vadd.f32 %v1922_v62, %v1902_v63  ;;  %v1970_v35 = vpop.f32.mrf.mxu3  ;;  %v1721_v63 = vadd.f32 %v3624_v26, %v3550_v10  ;;  %v1832_v11 = vadd.f32 %v3622_v1, %v1795_v25  ;;  %v2032_v10 = vpop.permute.xlu0 %2031 }
 0x325   : > { %v2065_v24 = vmul.f32 %v3644_v13, %v2053_v19  ;;  %v1982_v53 = vadd.f32 %v1965_v38, %v1939_v22  ;;  %v1759_v62 = vadd.f32 %v3626_v41, %v1721_v63  ;;  %v1895_v19 = vpop.f32.mrf.mxu1 }
 0x327   : > { %v2073_v45 = vpack.c.bf16 %v2065_v24, %v2065_v24  ;;  %v1990_v12 = vmax.f32 %v3547_v14, %v1982_v53  ;;  %v1855_v14 = vpop.f32.mrf.mxu0 }
 0x328   : > { %v1868_v44 = vadd.f32 %v1855_v14, %v1831_v15 }
 0x329   : > { %2082 = vst.msk [vmem:[%s3651_s29 + $0x4] sm:$0xf] %vm2080_vm1, %v2073_v45  ;;  %v2046_v49 = vadd.f32 %v2017_v47, %v1990_v12 }
 0x32a   : > { %v1924_v8 = vpop.f32.mrf.mxu2  ;;  %v1905_v55 = vadd.f32 %v1892_v42, %v1868_v44 }
 0x32b   : > { %v2054_v7 = vmax.f32 %v2046_v49, 0.0  ;;  %v1940_v39 = vadd.f32 %v1924_v8, %v1903_v27  ;;  %v1972_v6 = vpop.f32.mrf.mxu3  ;;  %v2037_v8 = vpop.permute.xlu1 %2036 }
 0x32d   : > { %v2066_v33 = vmul.f32 %v3644_v13, %v2054_v7  ;;  %v1983_v50 = vadd.f32 %v1967_v48, %v1940_v39  ;;  %v1897_v52 = vpop.f32.mrf.mxu1 }
 0x32f   : > { %v2074_v38 = vpack.c.bf16 %v2066_v33, %v2066_v33  ;;  %v1991_v20 = vmax.f32 %v3555_v3, %v1983_v50  ;;  %v2027_v3 = vpop.permute.xlu2 %2026  ;;  %v1858_v43 = vpop.f32.mrf.mxu0 }
 0x330   : > { %v1869_v22 = vadd.f32 %v1858_v43, %v1832_v11 }
 0x331   : > { %2083 = vst.msk [vmem:[%s3651_s29 + $0x8] sm:$0xf] %vm2080_vm1, %v2074_v38  ;;  %v2047_v30 = vadd.f32 %v2022_v59, %v1991_v20 }
 0x332   : > { %v1927_v0 = vpop.f32.mrf.mxu2  ;;  %v1906_v37 = vadd.f32 %v1895_v19, %v1869_v22 }
 0x333   : > { %v2055_v28 = vmax.f32 %v2047_v30, 0.0  ;;  %v1941_v31 = vadd.f32 %v1927_v0, %v1904_v57  ;;  %v1975_v47 = vpop.f32.mrf.mxu3 }
 0x335   : > { %v2067_v61 = vmul.f32 %v3644_v13, %v2055_v28  ;;  %v1984_v9 = vadd.f32 %v1970_v35, %v1941_v31  ;;  %v3807_v35 = vld [vmem:[#allocation20_spill] sm:$0xff] }
 0x337   : > { %v2075_v2 = vpack.c.bf16 %v2067_v61, %v2067_v61  ;;  %v1992_v51 = vmax.f32 %v3574_v46, %v1984_v9  ;;  %v1796_v46 = vadd.f32 %v3636_v32, %v1759_v62  ;;  %v1860_v53 = vpop.f32.mrf.mxu0  ;;  %v2042_v16 = vpop.permute.xlu2 %2041 }
 0x339   : > { %2084 = vst.msk [vmem:[%s3651_s29 + $0xc] sm:$0xf] %vm2080_vm1, %v2075_v2  ;;  %v2048_v34 = vadd.f32 %v2027_v3, %v1992_v51  ;;  %v1833_v24 = vadd.f32 %v3630_v5, %v1796_v46 }
 0x33a   : > { %v1929_v4 = vpop.f32.mrf.mxu2 }
 0x33b   : > { %v2056_v56 = vmax.f32 %v2048_v34, 0.0  ;;  %v1942_v17 = vadd.f32 %v1929_v4, %v1905_v55  ;;  %v1870_v32 = vadd.f32 %v1860_v53, %v1833_v24  ;;  %v1977_v23 = vpop.f32.mrf.mxu3 }
 0x33d   : > { %v2068_v48 = vmul.f32 %v3644_v13, %v2056_v56  ;;  %v1985_v58 = vadd.f32 %v1972_v6, %v1942_v17  ;;  %v1907_v5 = vadd.f32 %v1897_v52, %v1870_v32 }
 0x33f   : > { %v2076_v26 = vpack.c.bf16 %v2068_v48, %v2068_v48  ;;  %v1993_v1 = vmax.f32 %v3583_v36, %v1985_v58 }
 0x341   : > { %2085 = vst.msk [vmem:[%s3651_s29 + $0x10] sm:$0xf] %vm2080_vm1, %v2076_v26  ;;  %v2049_v41 = vadd.f32 %v2032_v10, %v1993_v1 }
 0x342   : > { %v1932_v45 = vpop.f32.mrf.mxu2 }
 0x343   : > { %v2057_v12 = vmax.f32 %v2049_v41, 0.0  ;;  %v1943_v54 = vadd.f32 %v1932_v45, %v1906_v37 }
 0x345   : > { %v2069_v21 = vmul.f32 %v3644_v13, %v2057_v12  ;;  %v1986_v27 = vadd.f32 %v1975_v47, %v1943_v54 }
 0x347   : > { %v2077_v49 = vpack.c.bf16 %v2069_v21, %v2069_v21  ;;  %v1994_v36 = vmax.f32 %v3595_v18, %v1986_v27 }
 0x349   : > { %2086 = vst.msk [vmem:[%s3651_s29 + $0x14] sm:$0xf] %vm2080_vm1, %v2077_v49  ;;  %v2050_v40 = vadd.f32 %v2037_v8, %v1994_v36 }
 0x34a   : > { %v1934_v7 = vpop.f32.mrf.mxu2 }
 0x34b   : > { %v2058_v39 = vmax.f32 %v2050_v40, 0.0  ;;  %v1944_v29 = vadd.f32 %v1934_v7, %v1907_v5 }
 0x34d   : > { %v2070_v14 = vmul.f32 %v3644_v13, %v2058_v39  ;;  %v1987_v33 = vadd.f32 %v1977_v23, %v1944_v29 }
 0x34f   : > { %v2078_v50 = vpack.c.bf16 %v2070_v14, %v2070_v14  ;;  %v1995_v59 = vmax.f32 %v3807_v35, %v1987_v33 }
 0x351   : > { %2087 = vst.msk [vmem:[%s3651_s29 + $0x18] sm:$0xf] %vm2080_vm1, %v2078_v50  ;;  %v2051_v18 = vadd.f32 %v2042_v16, %v1995_v59 }
 0x353   : > { %v2059_v38 = vmax.f32 %v2051_v18, 0.0 }
 0x355   : > { %v2071_v20 = vmul.f32 %v3644_v13, %v2059_v38 }
 0x357   : > { %v2079_v57 = vpack.c.bf16 %v2071_v20, %v2071_v20 }
 0x359   : > { %2088 = vst.msk [vmem:[%s3651_s29 + $0x1c] sm:$0xf] %vm2080_vm1, %v2079_v57 }
 0x35a PF: > { %s14_s15 = sadd.s32 1, %s2623_s15  }
 0x35b   : > { %p11_p4 = scmp.ge.s32.totalorder %s14_s15, 6  }
 0x35d   :  { %13 = sbr.rel (!%p11_p4) target bundleno = 1 (0x1), region = 74 }

// kernel: simple_cnn_forward.5
= control target key start
LH: loop header
LB: loop body
LE: loop exit
PB: predicated region body
PF: predicated region fallthrough
CT: control target
= control target key end

     0   :  { %10 = vsyncpa [#allocation4], 0  ;;  %s2974_s18 = smov 0   ;;  %s3463_s0 = inlined_call_operand.vmem [shape: bf16[4,1280], index: 0, kind: input, shape index: {}]   ;;  %s3464_s1 = inlined_call_operand.vmem [shape: bf16[1280,512], index: 1, kind: input, shape index: {}]   ;;  %s3465_s2 = inlined_call_operand.vmem [shape: f32[1,512], index: 2, kind: input, shape index: {}]   ;;  %s3466_s3 = inlined_call_operand.vmem [shape: bf16[512,5], index: 3, kind: input, shape index: {}]   ;;  %s3467_s4 = inlined_call_operand.vmem [shape: f32[1,5], index: 4, kind: input, shape index: {}]   ;;  %s3468_s5 = inlined_call_operand.hbm [shape: f32[4,5], index: 5, kind: output, shape index: {}]  }
   0x1 LB: > { %s2980_s19 = sadd.s32 4294967295, %s2940_s18   ;;  %p1914_p0 = scmp.ge.s32.totalorder %s2940_s18, 1  ;;  %s2940_s18 = sphi %s2974_s18, %s16_s18  }
   0x2   : > { %p196_p1 = scmp.lt.s32.totalorder %s2940_s18, 3 }
   0x4   : > { %p197_p2 = pnand %p1914_p0, %p196_p1 }
   0x5   : > { %s225_s20 = smul.u32 (!%p197_p2), 5, %s2980_s19  ;;  %p1918_p5 = scmp.ne.s32.totalorder (!%p197_p2), %s2980_s19, 0 }
   0x6   : > { %200 = sbr.rel (%p197_p2) target bundleno = 508 (0x1fc), region = 40 }
   0x7   : > { %s231_s21 = smul.u32 (!%p197_p2), 80, %s2980_s19  ;;  %p226_p3 = scmp.lt.s32.totalorder (!%p197_p2), %s225_s20, 9 }
   0x9   : > { %p232_p4 = scmp.lt.s32.totalorder (!%p197_p2), %s231_s21, 159 }
   0xb   : > { %s3470_s20 = smov (!%p226_p3, %s225_s20), 9  ;;  %s3472_s21 = smov (!%p232_p4, %s231_s21), 159 }
   0xc   : > { %s1915_s22 = sshll.u32 %s3470_s20, 1  ;;  %s2692_s26 = sshll.u32 %s3472_s21, 4 }
   0xd   : > { %s2989_s25 = scalar_lea.vmem %s3463_s0, %s1915_s22  ;;  %s2994_s29 = scalar_lea.vmem %s3464_s1, %s2692_s26 }
   0xe   : > { %241 = sbr.rel (%p1918_p5) target bundleno = 22 (0x16), region = 44 }
  0x13   : > { %v2942_v0 = vmov 0.0  }
  0x14   : > { %242 = vst [vmem:[#allocation2] sm:$0xff] %v2942_v0 }
  0x15   : > { %243 = vst [vmem:[#allocation2 + $0x8] sm:$0xff] %v2942_v0 }
  0x16 PF: > { %v2033_v1 = vld [vmem:[%s2994_s29 + $0xe0] sm:$0xf]  ;;  %v2723_v2 = vld [vmem:[%s2994_s29 + $0xec] sm:$0xf0]  ;;  %vm1489_vm0 = vcmask 1043456   ;;  %p2559_p6 = scmp.ne.s32.totalorder %s2980_s19, 1 }
  0x17   : > { %v2161_v3 = vld [vmem:[%s2994_s29 + $0x1e0] sm:$0xf]  ;;  %v2034_v4 = vor.u32 %v2723_v2, %v2033_v1  ;;  %v2755_v5 = vld [vmem:[%s2994_s29 + $0x1ec] sm:$0xf0] }
  0x18   : > { %v2289_v6 = vld [vmem:[%s2994_s29 + $0x2e0] sm:$0xf]  ;;  %v2787_v7 = vld [vmem:[%s2994_s29 + $0x2ec] sm:$0xf0]  ;;  %v2162_v8 = vor.u32 %v2755_v5, %v2161_v3 }
  0x19   : > { %v2290_v9 = vor.u32 %v2787_v7, %v2289_v6  ;;  %v2417_v10 = vld [vmem:[%s2994_s29 + $0x3e0] sm:$0xf]  ;;  %v2819_v11 = vld [vmem:[%s2994_s29 + $0x3ec] sm:$0xf0]  ;;  %1223 = vmatpush.bf16.msra.mxu0 %v2034_v4 }
  0x1a   : > { %v2017_v12 = vld [vmem:[%s2994_s29 + $0xc0] sm:$0xf]  ;;  %v2418_v13 = vor.u32 %v2819_v11, %v2417_v10  ;;  %v2719_v14 = vld [vmem:[%s2994_s29 + $0xcc] sm:$0xf0]  ;;  %1236 = vmatpush.bf16.msra.mxu1 %v2162_v8 }
  0x1b   : > { %v2145_v15 = vld [vmem:[%s2994_s29 + $0x1c0] sm:$0xf]  ;;  %v2751_v16 = vld [vmem:[%s2994_s29 + $0x1cc] sm:$0xf0]  ;;  %1249 = vmatpush.bf16.msra.mxu2 %v2290_v9  ;;  %v2018_v17 = vor.u32 %v2719_v14, %v2017_v12 }
  0x1c   : > { %v2146_v18 = vor.u32 %v2751_v16, %v2145_v15  ;;  %v2273_v19 = vld [vmem:[%s2994_s29 + $0x2c0] sm:$0xf]  ;;  %v2783_v20 = vld [vmem:[%s2994_s29 + $0x2cc] sm:$0xf0]  ;;  %1262 = vmatpush.bf16.msra.mxu3 %v2418_v13 }
  0x1d   : > { %v2401_v21 = vld [vmem:[%s2994_s29 + $0x3c0] sm:$0xf]  ;;  %v2274_v22 = vor.u32 %v2783_v20, %v2273_v19  ;;  %v2815_v23 = vld [vmem:[%s2994_s29 + $0x3cc] sm:$0xf0]  ;;  %1224 = vmatpush.bf16.msra.mxu0 %v2018_v17 }
  0x1e   : > { %v2001_v24 = vld [vmem:[%s2994_s29 + $0xa0] sm:$0xf]  ;;  %v2715_v25 = vld [vmem:[%s2994_s29 + $0xac] sm:$0xf0]  ;;  %v2402_v26 = vor.u32 %v2815_v23, %v2401_v21  ;;  %1237 = vmatpush.bf16.msra.mxu1 %v2146_v18 }
  0x1f   : > { %v2129_v27 = vld [vmem:[%s2994_s29 + $0x1a0] sm:$0xf]  ;;  %v2747_v28 = vld [vmem:[%s2994_s29 + $0x1ac] sm:$0xf0]  ;;  %v2002_v30 = vor.u32 %v2715_v25, %v2001_v24  ;;  %1250 = vmatpush.bf16.msra.mxu2 %v2274_v22 }
  0x20   : > { %v2257_v29 = vld [vmem:[%s2994_s29 + $0x2a0] sm:$0xf]  ;;  %v2779_v31 = vld [vmem:[%s2994_s29 + $0x2ac] sm:$0xf0]  ;;  %v2130_v34 = vor.u32 %v2747_v28, %v2129_v27  ;;  %1263 = vmatpush.bf16.msra.mxu3 %v2402_v26 }
  0x21   : > { %v2385_v32 = vld [vmem:[%s2994_s29 + $0x3a0] sm:$0xf]  ;;  %v2811_v33 = vld [vmem:[%s2994_s29 + $0x3ac] sm:$0xf0]  ;;  %v2258_v35 = vor.u32 %v2779_v31, %v2257_v29  ;;  %1225 = vmatpush.bf16.msra.mxu0 %v2002_v30  ;;  %v2721_v31 = vld [vmem:[%s2994_s29 + $0xe4] sm:$0xf] }
  0x22   : > { %v1985_v36 = vld [vmem:[%s2994_s29 + $0x80] sm:$0xf]  ;;  %v2711_v37 = vld [vmem:[%s2994_s29 + $0x8c] sm:$0xf0]  ;;  %v2386_v39 = vor.u32 %v2811_v33, %v2385_v32  ;;  %1238 = vmatpush.bf16.msra.mxu1 %v2130_v34  ;;  %v2035_v33 = vld [vmem:[%s2994_s29 + $0xf0] sm:$0xf0] }
  0x23   : > { %v2113_v38 = vld [vmem:[%s2994_s29 + $0x180] sm:$0xf]  ;;  %v2743_v40 = vld [vmem:[%s2994_s29 + $0x18c] sm:$0xf0]  ;;  %v1986_v45 = vor.u32 %v2711_v37, %v1985_v36  ;;  %1251 = vmatpush.bf16.msra.mxu2 %v2258_v35  ;;  %v2753_v34 = vld [vmem:[%s2994_s29 + $0x1e4] sm:$0xf] }
  0x24   : > { %v2241_v41 = vld [vmem:[%s2994_s29 + $0x280] sm:$0xf]  ;;  %v2775_v42 = vld [vmem:[%s2994_s29 + $0x28c] sm:$0xf0]  ;;  %v2114_v46 = vor.u32 %v2743_v40, %v2113_v38  ;;  %1264 = vmatpush.bf16.msra.mxu3 %v2386_v39  ;;  %v2163_v35 = vld [vmem:[%s2994_s29 + $0x1f0] sm:$0xf0] }
  0x25   : > { %v2369_v43 = vld [vmem:[%s2994_s29 + $0x380] sm:$0xf]  ;;  %v2807_v44 = vld [vmem:[%s2994_s29 + $0x38c] sm:$0xf0]  ;;  %v2242_v47 = vor.u32 %v2775_v42, %v2241_v41  ;;  %1226 = vmatpush.bf16.msra.mxu0 %v1986_v45  ;;  %v2785_v38 = vld [vmem:[%s2994_s29 + $0x2e4] sm:$0xf]  ;;  %v2038_v42 = vor.u32 %v2721_v31, %v2035_v33 }
  0x26   : > { %v1969_v48 = vld [vmem:[%s2994_s29 + $0x60] sm:$0xf]  ;;  %v2707_v49 = vld [vmem:[%s2994_s29 + $0x6c] sm:$0xf0]  ;;  %v2370_v51 = vor.u32 %v2807_v44, %v2369_v43  ;;  %1239 = vmatpush.bf16.msra.mxu1 %v2114_v46  ;;  %v2291_v39 = vld [vmem:[%s2994_s29 + $0x2f0] sm:$0xf0]  ;;  %v2166_v43 = vor.u32 %v2753_v34, %v2163_v35 }
  0x27   : > { %v2097_v50 = vld [vmem:[%s2994_s29 + $0x160] sm:$0xf]  ;;  %v2739_v52 = vld [vmem:[%s2994_s29 + $0x16c] sm:$0xf0]  ;;  %v1970_v57 = vor.u32 %v2707_v49, %v1969_v48  ;;  %1252 = vmatpush.bf16.msra.mxu2 %v2242_v47  ;;  %v2717_v46 = vld [vmem:[%s2994_s29 + $0xc4] sm:$0xf]  ;;  %v2294_v47 = vor.u32 %v2785_v38, %v2291_v39 }
  0x28   : > { %v2225_v53 = vld [vmem:[%s2994_s29 + $0x260] sm:$0xf]  ;;  %v2771_v54 = vld [vmem:[%s2994_s29 + $0x26c] sm:$0xf0]  ;;  %v2098_v58 = vor.u32 %v2739_v52, %v2097_v50  ;;  %1265 = vmatpush.bf16.msra.mxu3 %v2370_v51  ;;  %v2019_v48 = vld [vmem:[%s2994_s29 + $0xd0] sm:$0xf0] }
  0x29   : > { %v2353_v55 = vld [vmem:[%s2994_s29 + $0x360] sm:$0xf]  ;;  %v2803_v56 = vld [vmem:[%s2994_s29 + $0x36c] sm:$0xf0]  ;;  %v2226_v59 = vor.u32 %v2771_v54, %v2225_v53  ;;  %1227 = vmatpush.bf16.msra.mxu0 %v1970_v57  ;;  %v2749_v49 = vld [vmem:[%s2994_s29 + $0x1c4] sm:$0xf]  ;;  %v2022_v54 = vor.u32 %v2717_v46, %v2019_v48 }
  0x2a   : > { %v1953_v60 = vld [vmem:[%s2994_s29 + $0x40] sm:$0xf]  ;;  %v2703_v61 = vld [vmem:[%s2994_s29 + $0x4c] sm:$0xf0]  ;;  %v2354_v63 = vor.u32 %v2803_v56, %v2353_v55  ;;  %1240 = vmatpush.bf16.msra.mxu1 %v2098_v58  ;;  %v2147_v50 = vld [vmem:[%s2994_s29 + $0x1d0] sm:$0xf0] }
  0x2b   : > { %v2081_v62 = vld [vmem:[%s2994_s29 + $0x140] sm:$0xf]  ;;  %v2735_v0 = vld [vmem:[%s2994_s29 + $0x14c] sm:$0xf0]  ;;  %v1954_v5 = vor.u32 %v2703_v61, %v1953_v60  ;;  %1253 = vmatpush.bf16.msra.mxu2 %v2226_v59  ;;  %v2781_v51 = vld [vmem:[%s2994_s29 + $0x2c4] sm:$0xf]  ;;  %v2150_v55 = vor.u32 %v2749_v49, %v2147_v50 }
  0x2c   : > { %v2209_v1 = vld [vmem:[%s2994_s29 + $0x240] sm:$0xf]  ;;  %v2767_v2 = vld [vmem:[%s2994_s29 + $0x24c] sm:$0xf0]  ;;  %v2082_v6 = vor.u32 %v2735_v0, %v2081_v62  ;;  %1266 = vmatpush.bf16.msra.mxu3 %v2354_v63  ;;  %v2275_v52 = vld [vmem:[%s2994_s29 + $0x2d0] sm:$0xf0] }
  0x2d   : > { %v2337_v3 = vld [vmem:[%s2994_s29 + $0x340] sm:$0xf]  ;;  %v2799_v4 = vld [vmem:[%s2994_s29 + $0x34c] sm:$0xf0]  ;;  %v2210_v7 = vor.u32 %v2767_v2, %v2209_v1  ;;  %1228 = vmatpush.bf16.msra.mxu0 %v1954_v5  ;;  %v2713_v58 = vld [vmem:[%s2994_s29 + $0xa4] sm:$0xf]  ;;  %v2278_v59 = vor.u32 %v2781_v51, %v2275_v52 }
  0x2e   : > { %v1937_v8 = vld [vmem:[%s2994_s29 + $0x20] sm:$0xf]  ;;  %v2699_v9 = vld [vmem:[%s2994_s29 + $0x2c] sm:$0xf0]  ;;  %v2338_v11 = vor.u32 %v2799_v4, %v2337_v3  ;;  %1241 = vmatpush.bf16.msra.mxu1 %v2082_v6  ;;  %v2003_v60 = vld [vmem:[%s2994_s29 + $0xb0] sm:$0xf0] }
  0x2f   : > { %v2065_v10 = vld [vmem:[%s2994_s29 + $0x120] sm:$0xf]  ;;  %v2731_v12 = vld [vmem:[%s2994_s29 + $0x12c] sm:$0xf0]  ;;  %v1938_v17 = vor.u32 %v2699_v9, %v1937_v8  ;;  %1254 = vmatpush.bf16.msra.mxu2 %v2210_v7  ;;  %v2745_v61 = vld [vmem:[%s2994_s29 + $0x1a4] sm:$0xf]  ;;  %v2006_v4 = vor.u32 %v2713_v58, %v2003_v60 }
  0x30   : > { %v2193_v13 = vld [vmem:[%s2994_s29 + $0x220] sm:$0xf]  ;;  %v2763_v14 = vld [vmem:[%s2994_s29 + $0x22c] sm:$0xf0]  ;;  %v2066_v20 = vor.u32 %v2731_v12, %v2065_v10  ;;  %1267 = vmatpush.bf16.msra.mxu3 %v2338_v11  ;;  %v2131_v62 = vld [vmem:[%s2994_s29 + $0x1b0] sm:$0xf0] }
  0x31   : > { %v2321_v15 = vld [vmem:[%s2994_s29 + $0x320] sm:$0xf]  ;;  %v2795_v16 = vld [vmem:[%s2994_s29 + $0x32c] sm:$0xf0]  ;;  %v2194_v21 = vor.u32 %v2763_v14, %v2193_v13  ;;  %1229 = vmatpush.bf16.msra.mxu0 %v1938_v17  ;;  %v2777_v63 = vld [vmem:[%s2994_s29 + $0x2a4] sm:$0xf]  ;;  %v2134_v5 = vor.u32 %v2745_v61, %v2131_v62 }
  0x32   : > { %v1921_v18 = vld [vmem:[%s2994_s29] sm:$0xf]  ;;  %v2695_v19 = vld [vmem:[%s2994_s29 + $0xc] sm:$0xf0]  ;;  %v2322_v25 = vor.u32 %v2795_v16, %v2321_v15  ;;  %1242 = vmatpush.bf16.msra.mxu1 %v2066_v20  ;;  %v2259_v0 = vld [vmem:[%s2994_s29 + $0x2b0] sm:$0xf0] }
  0x33   : > { %v2049_v22 = vld [vmem:[%s2994_s29 + $0x100] sm:$0xf]  ;;  %v2727_v23 = vld [vmem:[%s2994_s29 + $0x10c] sm:$0xf0]  ;;  %v1922_v32 = vor.u32 %v2695_v19, %v1921_v18  ;;  %1255 = vmatpush.bf16.msra.mxu2 %v2194_v21  ;;  %v2709_v7 = vld [vmem:[%s2994_s29 + $0x84] sm:$0xf]  ;;  %v2262_v8 = vor.u32 %v2777_v63, %v2259_v0 }
  0x34   : > { %v2177_v24 = vld [vmem:[%s2994_s29 + $0x200] sm:$0xf]  ;;  %v2759_v26 = vld [vmem:[%s2994_s29 + $0x20c] sm:$0xf0]  ;;  %v2050_v36 = vor.u32 %v2727_v23, %v2049_v22  ;;  %1268 = vmatpush.bf16.msra.mxu3 %v2322_v25  ;;  %v1987_v9 = vld [vmem:[%s2994_s29 + $0x90] sm:$0xf0] }
  0x35   : > { %v2305_v27 = vld [vmem:[%s2994_s29 + $0x300] sm:$0xf]  ;;  %v2791_v28 = vld [vmem:[%s2994_s29 + $0x30c] sm:$0xf0]  ;;  %v2178_v37 = vor.u32 %v2759_v26, %v2177_v24  ;;  %1230 = vmatpush.bf16.msra.mxu0 %v1922_v32  ;;  %v2741_v10 = vld [vmem:[%s2994_s29 + $0x184] sm:$0xf]  ;;  %v1990_v16 = vor.u32 %v2709_v7, %v1987_v9 }
  0x36   : > { %v2545_v29 = vld [vmem:[%s2994_s29 + $0x4e0] sm:$0xf]  ;;  %v2851_v30 = vld [vmem:[%s2994_s29 + $0x4ec] sm:$0xf0]  ;;  %v2306_v40 = vor.u32 %v2791_v28, %v2305_v27  ;;  %1243 = vmatpush.bf16.msra.mxu1 %v2050_v36  ;;  %v2115_v11 = vld [vmem:[%s2994_s29 + $0x190] sm:$0xf0] }
  0x37   : > { %v2546_v41 = vor.u32 %v2851_v30, %v2545_v29  ;;  %v2529_v44 = vld [vmem:[%s2994_s29 + $0x4c0] sm:$0xf]  ;;  %v2847_v45 = vld [vmem:[%s2994_s29 + $0x4cc] sm:$0xf0]  ;;  %1256 = vmatpush.bf16.msra.mxu2 %v2178_v37  ;;  %v2773_v12 = vld [vmem:[%s2994_s29 + $0x284] sm:$0xf]  ;;  %v2118_v17 = vor.u32 %v2741_v10, %v2115_v11 }
  0x38   : > { %1269 = vmatpush.bf16.msra.mxu3 %v2306_v40  ;;  %v2530_v53 = vor.u32 %v2847_v45, %v2529_v44  ;;  %v2513_v56 = vld [vmem:[%s2994_s29 + $0x4a0] sm:$0xf]  ;;  %v2843_v57 = vld [vmem:[%s2994_s29 + $0x4ac] sm:$0xf0]  ;;  %v2243_v13 = vld [vmem:[%s2994_s29 + $0x290] sm:$0xf0] }
  0x39   : > { %1275 = vmatpush.bf16.msrb.mxu0 %v2546_v41  ;;  %v2514_v1 = vor.u32 %v2843_v57, %v2513_v56  ;;  %v2497_v2 = vld [vmem:[%s2994_s29 + $0x480] sm:$0xf]  ;;  %v2839_v6 = vld [vmem:[%s2994_s29 + $0x48c] sm:$0xf0]  ;;  %v2705_v19 = vld [vmem:[%s2994_s29 + $0x64] sm:$0xf]  ;;  %v2246_v21 = vor.u32 %v2773_v12, %v2243_v13 }
  0x3a   : > { %1288 = vmatpush.bf16.msrb.mxu1 %v2038_v42  ;;  %v246_v3 = vld [vmem:[%s2989_s25] sm:$0xff]  ;;  %v2498_v14 = vor.u32 %v2839_v6, %v2497_v2  ;;  %v2835_v18 = vld [vmem:[%s2994_s29 + $0x46c] sm:$0xf0]  ;;  %v1971_v20 = vld [vmem:[%s2994_s29 + $0x70] sm:$0xf0] }
  0x3b   : > { %1301 = vmatpush.bf16.msrb.mxu2 %v2166_v43  ;;  %409 = vst [vmem:[#allocation1] ss:$4 sm:$0xff] %v246_v3  ;;  %v2481_v15 = vld [vmem:[%s2994_s29 + $0x460] sm:$0xf]  ;;  %v2737_v22 = vld [vmem:[%s2994_s29 + $0x164] sm:$0xf]  ;;  %v1974_v32 = vor.u32 %v2705_v19, %v1971_v20 }
  0x3c   : > { %1314 = vmatpush.bf16.msrb.mxu3 %v2294_v47  ;;  %v2099_v23 = vld [vmem:[%s2994_s29 + $0x170] sm:$0xf0]  ;;  %v2769_v24 = vld [vmem:[%s2994_s29 + $0x264] sm:$0xf]  ;;  %v2465_v26 = vld [vmem:[%s2994_s29 + $0x440] sm:$0xf]  ;;  %v2482_v28 = vor.u32 %v2835_v18, %v2481_v15 }
  0x3d   : > { %1276 = vmatpush.bf16.msrb.mxu0 %v2530_v53  ;;  %v2227_v25 = vld [vmem:[%s2994_s29 + $0x270] sm:$0xf0]  ;;  %v2831_v27 = vld [vmem:[%s2994_s29 + $0x44c] sm:$0xf0]  ;;  %v2701_v29 = vld [vmem:[%s2994_s29 + $0x44] sm:$0xf]  ;;  %v2102_v33 = vor.u32 %v2737_v22, %v2099_v23 }
  0x3e   : > { %1289 = vmatpush.bf16.msrb.mxu1 %v2022_v54  ;;  %v2230_v36 = vor.u32 %v2769_v24, %v2227_v25  ;;  %v1955_v37 = vld [vmem:[%s2994_s29 + $0x50] sm:$0xf0]  ;;  %v2733_v38 = vld [vmem:[%s2994_s29 + $0x144] sm:$0xf]  ;;  %v2466_v42 = vor.u32 %v2831_v27, %v2465_v26  ;;  %v2449_v43 = vld [vmem:[%s2994_s29 + $0x420] sm:$0xf] }
  0x3f   : > { %1302 = vmatpush.bf16.msrb.mxu2 %v2150_v55  ;;  %v2083_v39 = vld [vmem:[%s2994_s29 + $0x150] sm:$0xf0]  ;;  %v2765_v40 = vld [vmem:[%s2994_s29 + $0x244] sm:$0xf]  ;;  %v2827_v44 = vld [vmem:[%s2994_s29 + $0x42c] sm:$0xf0]  ;;  %v1958_v45 = vor.u32 %v2701_v29, %v1955_v37 }
  0x40   : > { %1315 = vmatpush.bf16.msrb.mxu3 %v2278_v59  ;;  %v2211_v41 = vld [vmem:[%s2994_s29 + $0x250] sm:$0xf0]  ;;  %v2086_v46 = vor.u32 %v2733_v38, %v2083_v39  ;;  %v2697_v47 = vld [vmem:[%s2994_s29 + $0x24] sm:$0xf]  ;;  %v247_v49 = vld [vmem:[%s2989_s25 + $0x8] sm:$0x3]  ;;  %v2450_v55 = vor.u32 %v2827_v44, %v2449_v43 }
  0x41   : > { %1277 = vmatpush.bf16.msrb.mxu0 %v2514_v1  ;;  %v1939_v48 = vld [vmem:[%s2994_s29 + $0x30] sm:$0xf0]  ;;  %v2214_v50 = vor.u32 %v2765_v40, %v2211_v41  ;;  %v2729_v51 = vld [vmem:[%s2994_s29 + $0x124] sm:$0xf]  ;;  %412 = vst [vmem:[#allocation1 + $0x20] ss:$4 sm:$0xff] %v247_v49 }
  0x42   : > { %1290 = vmatpush.bf16.msrb.mxu1 %v2006_v4  ;;  %v3105_v30 = vld.sshfl [vmem:[#allocation1] sm:$0xff pattern:$0x73625140]  ;;  %v3107_v31 = vld.sshfl [vmem:[#allocation1 + $0x10] sm:$0xff pattern:$0x73625140]  ;;  %v1942_v58 = vor.u32 %v2697_v47, %v1939_v48 }
  0x43   : > { %1303 = vmatpush.bf16.msrb.mxu2 %v2134_v5  ;;  %v3109_v34 = vld.sshfl [vmem:[#allocation1 + $0x18] sm:$0xff pattern:$0x73625140]  ;;  %v3111_v35 = vld.sshfl [vmem:[#allocation1 + $0x8] sm:$0xff pattern:$0x73625140]  ;;  %1231 = vmatmul.bf16.vlgmr.msra.gmra.mxu0 %v3105_v30 }
  0x44   : > { %1316 = vmatpush.bf16.msrb.mxu3 %v2262_v8  ;;  %1257 = vmatmul.bf16.vlgmr.msra.gmra.mxu2 %v3107_v31  ;;  %v2067_v52 = vld [vmem:[%s2994_s29 + $0x130] sm:$0xf0]  ;;  %v2761_v53 = vld [vmem:[%s2994_s29 + $0x224] sm:$0xf]  ;;  %v2433_v56 = vld [vmem:[%s2994_s29 + $0x400] sm:$0xf] }
  0x45   : > { %1278 = vmatpush.bf16.msrb.mxu0 %v2498_v14  ;;  %1270 = vmatmul.bf16.vlgmr.msra.gmra.mxu3 %v3109_v34  ;;  %v2195_v54 = vld [vmem:[%s2994_s29 + $0x230] sm:$0xf0]  ;;  %v2823_v57 = vld [vmem:[%s2994_s29 + $0x40c] sm:$0xf0]  ;;  %v2070_v59 = vor.u32 %v2729_v51, %v2067_v52  ;;  %v2693_v60 = vld [vmem:[%s2994_s29 + $0x4] sm:$0xf] }
  0x46   : > { %1291 = vmatpush.bf16.msrb.mxu1 %v1990_v16  ;;  %v1923_v61 = vld [vmem:[%s2994_s29 + $0x10] sm:$0xf0]  ;;  %v2725_v62 = vld [vmem:[%s2994_s29 + $0x104] sm:$0xf]  ;;  %v2198_v63 = vor.u32 %v2761_v53, %v2195_v54  ;;  %v2434_v6 = vor.u32 %v2823_v57, %v2433_v56  ;;  %v2041_v8 = vld [vmem:[%s2994_s29 + $0xe8] sm:$0xf] }
  0x47   : > { %1304 = vmatpush.bf16.msrb.mxu2 %v2118_v17  ;;  %1244 = vmatmul.bf16.vlgmr.msra.gmra.mxu1 %v3111_v35  ;;  %v2051_v0 = vld [vmem:[%s2994_s29 + $0x110] sm:$0xf0]  ;;  %v2757_v1 = vld [vmem:[%s2994_s29 + $0x204] sm:$0xf]  ;;  %v2724_v9 = vld [vmem:[%s2994_s29 + $0xf4] sm:$0xf0]  ;;  %v1926_v10 = vor.u32 %v2693_v60, %v1923_v61 }
  0x48   : > { %1317 = vmatpush.bf16.msrb.mxu3 %v2246_v21  ;;  %v2179_v2 = vld [vmem:[%s2994_s29 + $0x210] sm:$0xf0]  ;;  %v2817_v3 = vld [vmem:[%s2994_s29 + $0x3e4] sm:$0xf]  ;;  %v2054_v11 = vor.u32 %v2725_v62, %v2051_v0  ;;  %v2169_v12 = vld [vmem:[%s2994_s29 + $0x1e8] sm:$0xf]  ;;  %v2042_v18 = vor.u32 %v2724_v9, %v2041_v8 }
  0x49   : > { %1279 = vmatpush.bf16.msrb.mxu0 %v2482_v28  ;;  %v2419_v4 = vld [vmem:[%s2994_s29 + $0x3f0] sm:$0xf0]  ;;  %v2849_v5 = vld [vmem:[%s2994_s29 + $0x4e4] sm:$0xf]  ;;  %v2756_v13 = vld [vmem:[%s2994_s29 + $0x1f4] sm:$0xf0]  ;;  %v2182_v14 = vor.u32 %v2757_v1, %v2179_v2 }
  0x4a   : > { %1292 = vmatpush.bf16.msrb.mxu1 %v1974_v32  ;;  %v2547_v7 = vld [vmem:[%s2994_s29 + $0x4f0] sm:$0xf0]  ;;  %v2422_v15 = vor.u32 %v2817_v3, %v2419_v4  ;;  %v2813_v16 = vld [vmem:[%s2994_s29 + $0x3c4] sm:$0xf]  ;;  %v2170_v22 = vor.u32 %v2756_v13, %v2169_v12  ;;  %v2025_v23 = vld [vmem:[%s2994_s29 + $0xc8] sm:$0xf] }
  0x4b   : > { %1305 = vmatpush.bf16.msrb.mxu2 %v2102_v33  ;;  %v2550_v17 = vor.u32 %v2849_v5, %v2547_v7  ;;  %v2403_v19 = vld [vmem:[%s2994_s29 + $0x3d0] sm:$0xf0]  ;;  %v2845_v20 = vld [vmem:[%s2994_s29 + $0x4c4] sm:$0xf]  ;;  %v2720_v24 = vld [vmem:[%s2994_s29 + $0xd4] sm:$0xf0] }
  0x4c   : > { %1318 = vmatpush.bf16.msrb.mxu3 %v2230_v36  ;;  %v2531_v21 = vld [vmem:[%s2994_s29 + $0x4d0] sm:$0xf0]  ;;  %v2153_v25 = vld [vmem:[%s2994_s29 + $0x1c8] sm:$0xf]  ;;  %v2752_v26 = vld [vmem:[%s2994_s29 + $0x1d4] sm:$0xf0]  ;;  %v2406_v28 = vor.u32 %v2813_v16, %v2403_v19  ;;  %v2026_v32 = vor.u32 %v2720_v24, %v2025_v23 }
  0x4d   : > { %1280 = vmatpush.bf16.msrb.mxu0 %v2466_v42  ;;  %v3155_v27 = vld.sshfl [vmem:[#allocation1 + $0x20] sm:$0xff pattern:$0x73625140]  ;;  %v2534_v29 = vor.u32 %v2845_v20, %v2531_v21  ;;  %v2387_v36 = vld [vmem:[%s2994_s29 + $0x3b0] sm:$0xf0]  ;;  %v2154_v38 = vor.u32 %v2752_v26, %v2153_v25 }
  0x4e   : > { %1293 = vmatpush.bf16.msrb.mxu1 %v1958_v45  ;;  %v2809_v33 = vld [vmem:[%s2994_s29 + $0x3a4] sm:$0xf]  ;;  %v2515_v39 = vld [vmem:[%s2994_s29 + $0x4b0] sm:$0xf0]  ;;  %v2009_v40 = vld [vmem:[%s2994_s29 + $0xa8] sm:$0xf] }
  0x4f   : > { %1306 = vmatpush.bf16.msrb.mxu2 %v2086_v46  ;;  %v2841_v37 = vld [vmem:[%s2994_s29 + $0x4a4] sm:$0xf]  ;;  %v2716_v41 = vld [vmem:[%s2994_s29 + $0xb4] sm:$0xf0]  ;;  %v2137_v42 = vld [vmem:[%s2994_s29 + $0x1a8] sm:$0xf]  ;;  %v2390_v44 = vor.u32 %v2809_v33, %v2387_v36 }
  0x50   : > { %1319 = vmatpush.bf16.msrb.mxu3 %v2214_v50  ;;  %v2748_v43 = vld [vmem:[%s2994_s29 + $0x1b4] sm:$0xf0]  ;;  %v2518_v45 = vor.u32 %v2841_v37, %v2515_v39  ;;  %v2010_v46 = vor.u32 %v2716_v41, %v2009_v40  ;;  %v2805_v47 = vld [vmem:[%s2994_s29 + $0x384] sm:$0xf]  ;;  %v2371_v48 = vld [vmem:[%s2994_s29 + $0x390] sm:$0xf0] }
  0x51   : > { %1281 = vmatpush.bf16.msrb.mxu0 %v2450_v55  ;;  %v2837_v49 = vld [vmem:[%s2994_s29 + $0x484] sm:$0xf]  ;;  %v2138_v50 = vor.u32 %v2748_v43, %v2137_v42  ;;  %v2499_v51 = vld [vmem:[%s2994_s29 + $0x490] sm:$0xf0]  ;;  %v1993_v52 = vld [vmem:[%s2994_s29 + $0x88] sm:$0xf]  ;;  %v2374_v56 = vor.u32 %v2805_v47, %v2371_v48 }
  0x52   : > { %1294 = vmatpush.bf16.msrb.mxu1 %v1942_v58  ;;  %v2712_v53 = vld [vmem:[%s2994_s29 + $0x94] sm:$0xf0]  ;;  %v2121_v54 = vld [vmem:[%s2994_s29 + $0x188] sm:$0xf]  ;;  %v2502_v57 = vor.u32 %v2837_v49, %v2499_v51  ;;  %v2355_v60 = vld [vmem:[%s2994_s29 + $0x370] sm:$0xf0] }
  0x53   : > { %1307 = vmatpush.bf16.msrb.mxu2 %v2070_v59  ;;  %v2744_v55 = vld [vmem:[%s2994_s29 + $0x194] sm:$0xf0]  ;;  %v1994_v58 = vor.u32 %v2712_v53, %v1993_v52  ;;  %v2801_v59 = vld [vmem:[%s2994_s29 + $0x364] sm:$0xf]  ;;  %v1977_v0 = vld [vmem:[%s2994_s29 + $0x68] sm:$0xf] }
  0x54   : > { %1320 = vmatpush.bf16.msrb.mxu3 %v2198_v63  ;;  %v2833_v61 = vld [vmem:[%s2994_s29 + $0x464] sm:$0xf]  ;;  %v2122_v62 = vor.u32 %v2744_v55, %v2121_v54  ;;  %v2483_v63 = vld [vmem:[%s2994_s29 + $0x470] sm:$0xf0]  ;;  %v2708_v1 = vld [vmem:[%s2994_s29 + $0x74] sm:$0xf0]  ;;  %v2358_v4 = vor.u32 %v2801_v59, %v2355_v60 }
  0x55   : > { %1282 = vmatpush.bf16.msrb.mxu0 %v2434_v6  ;;  %v2105_v2 = vld [vmem:[%s2994_s29 + $0x168] sm:$0xf]  ;;  %v2740_v3 = vld [vmem:[%s2994_s29 + $0x174] sm:$0xf0]  ;;  %v2486_v5 = vor.u32 %v2833_v61, %v2483_v63  ;;  %v1978_v6 = vor.u32 %v2708_v1, %v1977_v0  ;;  %v2797_v7 = vld [vmem:[%s2994_s29 + $0x344] sm:$0xf] }
  0x56   : > { %1295 = vmatpush.bf16.msrb.mxu1 %v1926_v10  ;;  %v2339_v8 = vld [vmem:[%s2994_s29 + $0x350] sm:$0xf0]  ;;  %v2829_v9 = vld [vmem:[%s2994_s29 + $0x444] sm:$0xf]  ;;  %v2106_v10 = vor.u32 %v2740_v3, %v2105_v2  ;;  %v1961_v12 = vld [vmem:[%s2994_s29 + $0x48] sm:$0xf] }
  0x57   : > { %1308 = vmatpush.bf16.msrb.mxu2 %v2054_v11  ;;  %v2467_v11 = vld [vmem:[%s2994_s29 + $0x450] sm:$0xf0]  ;;  %v2704_v13 = vld [vmem:[%s2994_s29 + $0x54] sm:$0xf0]  ;;  %v2342_v16 = vor.u32 %v2797_v7, %v2339_v8  ;;  %v2793_v19 = vld [vmem:[%s2994_s29 + $0x324] sm:$0xf] }
  0x58   : > { %1321 = vmatpush.bf16.msrb.mxu3 %v2182_v14  ;;  %1283 = vmatmul.bf16.vlgmr.msrb.gmra.mxu0 %v3155_v27  ;;  %v2089_v14 = vld [vmem:[%s2994_s29 + $0x148] sm:$0xf]  ;;  %v2323_v20 = vld [vmem:[%s2994_s29 + $0x330] sm:$0xf0]  ;;  %v2825_v21 = vld [vmem:[%s2994_s29 + $0x424] sm:$0xf] }
  0x59   : > { %1327 = vmatpush.bf16.msra.mxu0 %v2422_v15  ;;  %1296 = vmatmul.bf16.vlgmr.msrb.gmra.mxu1 %v3105_v30  ;;  %v2736_v15 = vld [vmem:[%s2994_s29 + $0x154] sm:$0xf0]  ;;  %v2451_v23 = vld [vmem:[%s2994_s29 + $0x430] sm:$0xf0]  ;;  %v1945_v24 = vld [vmem:[%s2994_s29 + $0x28] sm:$0xf] }
  0x5a   : > { %1340 = vmatpush.bf16.msra.mxu1 %v2550_v17  ;;  %1309 = vmatmul.bf16.vlgmr.msrb.gmra.mxu2 %v3111_v35  ;;  %v2470_v17 = vor.u32 %v2829_v9, %v2467_v11  ;;  %v2700_v25 = vld [vmem:[%s2994_s29 + $0x34] sm:$0xf0]  ;;  %v2073_v26 = vld [vmem:[%s2994_s29 + $0x128] sm:$0xf]  ;;  %v2307_v33 = vld [vmem:[%s2994_s29 + $0x310] sm:$0xf0]  ;;  %v2454_v36 = vor.u32 %v2825_v21, %v2451_v23 }
  0x5b   : > { %1353 = vmatpush.bf16.msra.mxu2 %v2042_v18  ;;  %1322 = vmatmul.bf16.vlgmr.msrb.gmra.mxu3 %v3107_v31  ;;  %v1962_v18 = vor.u32 %v2704_v13, %v1961_v12  ;;  %v1946_v37 = vor.u32 %v2700_v25, %v1945_v24  ;;  %v2435_v39 = vld [vmem:[%s2994_s29 + $0x410] sm:$0xf0]  ;;  %v1929_v40 = vld [vmem:[%s2994_s29 + $0x8] sm:$0xf]  ;;  %v2696_v42 = vld [vmem:[%s2994_s29 + $0x14] sm:$0xf0] }
  0x5c   : > { %1366 = vmatpush.bf16.msra.mxu3 %v2170_v22  ;;  %v2090_v22 = vor.u32 %v2736_v15, %v2089_v14  ;;  %v2057_v43 = vld [vmem:[%s2994_s29 + $0x108] sm:$0xf]  ;;  %v2820_v49 = vld [vmem:[%s2994_s29 + $0x3f4] sm:$0xf0]  ;;  %v1930_v53 = vor.u32 %v2696_v42, %v1929_v40  ;;  %v2722_v54 = vld [vmem:[%s2994_s29 + $0xec] sm:$0xf] }
  0x5d   : > { %1328 = vmatpush.bf16.msra.mxu0 %v2406_v28  ;;  %v2732_v28 = vld [vmem:[%s2994_s29 + $0x134] sm:$0xf0]  ;;  %v2425_v47 = vld [vmem:[%s2994_s29 + $0x3e8] sm:$0xf]  ;;  %v2043_v55 = vld [vmem:[%s2994_s29 + $0xf8] sm:$0xf0] }
  0x5e   : > { %1341 = vmatpush.bf16.msra.mxu1 %v2534_v29  ;;  %v2326_v29 = vor.u32 %v2793_v19, %v2323_v20  ;;  %v2074_v41 = vor.u32 %v2732_v28, %v2073_v26  ;;  %v2852_v51 = vld [vmem:[%s2994_s29 + $0x4f4] sm:$0xf0]  ;;  %v2281_v60 = vld [vmem:[%s2994_s29 + $0x2c8] sm:$0xf]  ;;  %v2046_v63 = vor.u32 %v2722_v54, %v2043_v55  ;;  %v2718_v3 = vld [vmem:[%s2994_s29 + $0xcc] sm:$0xf] }
  0x5f   : > { %1354 = vmatpush.bf16.msra.mxu2 %v2026_v32  ;;  %v2789_v32 = vld [vmem:[%s2994_s29 + $0x304] sm:$0xf]  ;;  %v2784_v61 = vld [vmem:[%s2994_s29 + $0x2d4] sm:$0xf0]  ;;  %v2537_v1 = vld [vmem:[%s2994_s29 + $0x4c8] sm:$0xf] }
  0x60   : > { %1367 = vmatpush.bf16.msra.mxu3 %v2154_v38  ;;  %v2821_v38 = vld [vmem:[%s2994_s29 + $0x404] sm:$0xf]  ;;  %v2310_v48 = vor.u32 %v2789_v32, %v2307_v33  ;;  %v2816_v0 = vld [vmem:[%s2994_s29 + $0x3d4] sm:$0xf0]  ;;  %v2265_v8 = vld [vmem:[%s2994_s29 + $0x2a8] sm:$0xf] }
  0x61   : > { %1329 = vmatpush.bf16.msra.mxu0 %v2390_v44  ;;  %v2728_v44 = vld [vmem:[%s2994_s29 + $0x114] sm:$0xf0]  ;;  %v2438_v52 = vor.u32 %v2821_v38, %v2435_v39  ;;  %v2521_v13 = vld [vmem:[%s2994_s29 + $0x4a8] sm:$0xf]  ;;  %v2714_v15 = vld [vmem:[%s2994_s29 + $0xac] sm:$0xf] }
  0x62   : > { %1342 = vmatpush.bf16.msra.mxu1 %v2518_v45  ;;  %v2297_v45 = vld [vmem:[%s2994_s29 + $0x2e8] sm:$0xf]  ;;  %v2848_v2 = vld [vmem:[%s2994_s29 + $0x4d4] sm:$0xf0]  ;;  %v2710_v28 = vld [vmem:[%s2994_s29 + $0x8c] sm:$0xf] }
  0x63   : > { %1355 = vmatpush.bf16.msra.mxu2 %v2010_v46  ;;  %v2788_v46 = vld [vmem:[%s2994_s29 + $0x2f4] sm:$0xf0]  ;;  %v2538_v7 = vor.u32 %v2848_v2, %v2537_v1  ;;  %v2249_v20 = vld [vmem:[%s2994_s29 + $0x288] sm:$0xf] }
  0x64   : > { %1368 = vmatpush.bf16.msra.mxu3 %v2138_v50  ;;  %v2553_v50 = vld [vmem:[%s2994_s29 + $0x4e8] sm:$0xf]  ;;  %v2780_v9 = vld [vmem:[%s2994_s29 + $0x2b4] sm:$0xf0] }
  0x65   : > { %1330 = vmatpush.bf16.msra.mxu0 %v2374_v56  ;;  %v2058_v56 = vor.u32 %v2728_v44, %v2057_v43  ;;  %v2554_v59 = vor.u32 %v2852_v51, %v2553_v50  ;;  %v2812_v12 = vld [vmem:[%s2994_s29 + $0x3b4] sm:$0xf0]  ;;  %v2505_v25 = vld [vmem:[%s2994_s29 + $0x488] sm:$0xf]  ;;  %v2706_v44 = vld [vmem:[%s2994_s29 + $0x6c] sm:$0xf] }
  0x66   : > { %1343 = vmatpush.bf16.msra.mxu1 %v2502_v57  ;;  %v2298_v57 = vor.u32 %v2788_v46, %v2297_v45  ;;  %v2844_v14 = vld [vmem:[%s2994_s29 + $0x4b4] sm:$0xf0]  ;;  %v2361_v39 = vld [vmem:[%s2994_s29 + $0x368] sm:$0xf]  ;;  %v1979_v45 = vld [vmem:[%s2994_s29 + $0x78] sm:$0xf0] }
  0x67   : > { %1356 = vmatpush.bf16.msra.mxu2 %v1994_v58  ;;  %v2426_v58 = vor.u32 %v2820_v49, %v2425_v47  ;;  %v2522_v19 = vor.u32 %v2844_v14, %v2521_v13  ;;  %v2776_v21 = vld [vmem:[%s2994_s29 + $0x294] sm:$0xf0]  ;;  %v2489_v42 = vld [vmem:[%s2994_s29 + $0x468] sm:$0xf] }
  0x68   : > { %1369 = vmatpush.bf16.msra.mxu3 %v2122_v62  ;;  %v2409_v62 = vld [vmem:[%s2994_s29 + $0x3c8] sm:$0xf]  ;;  %v2808_v24 = vld [vmem:[%s2994_s29 + $0x394] sm:$0xf0]  ;;  %v2250_v32 = vor.u32 %v2776_v21, %v2249_v20  ;;  %v2786_v20 = vld [vmem:[%s2994_s29 + $0x2ec] sm:$0xf] }
  0x69   : > { %1331 = vmatpush.bf16.msra.mxu0 %v2358_v4  ;;  %v2027_v4 = vld [vmem:[%s2994_s29 + $0xd8] sm:$0xf0]  ;;  %v2840_v26 = vld [vmem:[%s2994_s29 + $0x494] sm:$0xf0]  ;;  %v2217_v49 = vld [vmem:[%s2994_s29 + $0x248] sm:$0xf] }
  0x6a   : > { %1344 = vmatpush.bf16.msra.mxu1 %v2486_v5  ;;  %v2282_v5 = vor.u32 %v2784_v61, %v2281_v60  ;;  %v2030_v11 = vor.u32 %v2718_v3, %v2027_v4  ;;  %v2772_v38 = vld [vmem:[%s2994_s29 + $0x274] sm:$0xf0]  ;;  %v2345_v51 = vld [vmem:[%s2994_s29 + $0x348] sm:$0xf]  ;;  %v2698_v4 = vld [vmem:[%s2994_s29 + $0x2c] sm:$0xf] }
  0x6b   : > { %1357 = vmatpush.bf16.msra.mxu2 %v1978_v6  ;;  %v2410_v6 = vor.u32 %v2816_v0, %v2409_v62  ;;  %v2836_v43 = vld [vmem:[%s2994_s29 + $0x474] sm:$0xf0]  ;;  %v2473_v54 = vld [vmem:[%s2994_s29 + $0x448] sm:$0xf] }
  0x6c   : > { %1370 = vmatpush.bf16.msra.mxu3 %v2106_v10  ;;  %v2393_v10 = vld [vmem:[%s2994_s29 + $0x3a8] sm:$0xf]  ;;  %v2768_v50 = vld [vmem:[%s2994_s29 + $0x254] sm:$0xf0] }
  0x6d   : > { %1332 = vmatpush.bf16.msra.mxu0 %v2342_v16  ;;  %v2011_v16 = vld [vmem:[%s2994_s29 + $0xb8] sm:$0xf0]  ;;  %v2832_v55 = vld [vmem:[%s2994_s29 + $0x454] sm:$0xf0]  ;;  %v2201_v61 = vld [vmem:[%s2994_s29 + $0x228] sm:$0xf] }
  0x6e   : > { %1345 = vmatpush.bf16.msra.mxu1 %v2470_v17  ;;  %v2266_v17 = vor.u32 %v2780_v9, %v2265_v8  ;;  %v2014_v23 = vor.u32 %v2714_v15, %v2011_v16  ;;  %v2474_v60 = vor.u32 %v2832_v55, %v2473_v54  ;;  %v2764_v62 = vld [vmem:[%s2994_s29 + $0x234] sm:$0xf0]  ;;  %v2457_v2 = vld [vmem:[%s2994_s29 + $0x428] sm:$0xf]  ;;  %v2694_v16 = vld [vmem:[%s2994_s29 + $0xc] sm:$0xf] }
  0x6f   : > { %1358 = vmatpush.bf16.msra.mxu2 %v1962_v18  ;;  %v2394_v18 = vor.u32 %v2812_v12, %v2393_v10  ;;  %v2796_v1 = vld [vmem:[%s2994_s29 + $0x334] sm:$0xf0]  ;;  %v2441_v13 = vld [vmem:[%s2994_s29 + $0x408] sm:$0xf]  ;;  %v2267_v54 = vld [vmem:[%s2994_s29 + $0x2b8] sm:$0xf0] }
  0x70   : > { %1371 = vmatpush.bf16.msra.mxu3 %v2090_v22  ;;  %v2377_v22 = vld [vmem:[%s2994_s29 + $0x388] sm:$0xf]  ;;  %v2828_v3 = vld [vmem:[%s2994_s29 + $0x434] sm:$0xf0]  ;;  %v2810_v55 = vld [vmem:[%s2994_s29 + $0x3ac] sm:$0xf] }
  0x71   : > { %1333 = vmatpush.bf16.msra.mxu0 %v2326_v29  ;;  %v1995_v29 = vld [vmem:[%s2994_s29 + $0x98] sm:$0xf0]  ;;  %v2378_v33 = vor.u32 %v2808_v24, %v2377_v22  ;;  %v2760_v8 = vld [vmem:[%s2994_s29 + $0x214] sm:$0xf0]  ;;  %v2458_v10 = vor.u32 %v2828_v3, %v2457_v2  ;;  %v2806_v3 = vld [vmem:[%s2994_s29 + $0x38c] sm:$0xf] }
  0x72   : > { %1346 = vmatpush.bf16.msra.mxu1 %v2454_v36  ;;  %v2506_v36 = vor.u32 %v2840_v26, %v2505_v25  ;;  %v1998_v40 = vor.u32 %v2710_v28, %v1995_v29  ;;  %v2792_v12 = vld [vmem:[%s2994_s29 + $0x314] sm:$0xf0]  ;;  %v2299_v22 = vld [vmem:[%s2994_s29 + $0x2f8] sm:$0xf0]  ;;  %v2850_v28 = vld [vmem:[%s2994_s29 + $0x4ec] sm:$0xf] }
  0x73   : > { %1359 = vmatpush.bf16.msra.mxu2 %v1946_v37  ;;  %v2233_v37 = vld [vmem:[%s2994_s29 + $0x268] sm:$0xf]  ;;  %v2824_v15 = vld [vmem:[%s2994_s29 + $0x414] sm:$0xf0]  ;;  %v2427_v24 = vld [vmem:[%s2994_s29 + $0x3f8] sm:$0xf0] }
  0x74   : > { %1372 = vmatpush.bf16.msra.mxu3 %v2074_v41  ;;  %v2804_v41 = vld [vmem:[%s2994_s29 + $0x374] sm:$0xf0]  ;;  %v2234_v46 = vor.u32 %v2772_v38, %v2233_v37  ;;  %v2442_v26 = vor.u32 %v2824_v15, %v2441_v13  ;;  %v2555_v29 = vld [vmem:[%s2994_s29 + $0x4f8] sm:$0xf0]  ;;  %v2750_v38 = vld [vmem:[%s2994_s29 + $0x1cc] sm:$0xf] }
  0x75   : > { %1334 = vmatpush.bf16.msra.mxu0 %v2310_v48  ;;  %v2362_v47 = vor.u32 %v2804_v41, %v2361_v39  ;;  %v2490_v48 = vor.u32 %v2836_v43, %v2489_v42  ;;  %v2155_v39 = vld [vmem:[%s2994_s29 + $0x1d8] sm:$0xf0]  ;;  %v2558_v41 = vor.u32 %v2850_v28, %v2555_v29  ;;  %v2814_v43 = vld [vmem:[%s2994_s29 + $0x3cc] sm:$0xf] }
  0x76   : > { %1347 = vmatpush.bf16.msra.mxu1 %v2438_v52  ;;  %v1982_v52 = vor.u32 %v2706_v44, %v1979_v45  ;;  %v2283_v42 = vld [vmem:[%s2994_s29 + $0x2d8] sm:$0xf0]  ;;  %v2846_v45 = vld [vmem:[%s2994_s29 + $0x4cc] sm:$0xf] }
  0x77   : > { %1360 = vmatpush.bf16.msra.mxu2 %v1930_v53  ;;  %v2800_v53 = vld [vmem:[%s2994_s29 + $0x354] sm:$0xf0]  ;;  %v2411_v44 = vld [vmem:[%s2994_s29 + $0x3d8] sm:$0xf0]  ;;  %v2830_v29 = vld [vmem:[%s2994_s29 + $0x44c] sm:$0xf] }
  0x78   : > { %1373 = vmatpush.bf16.msra.mxu3 %v2058_v56  ;;  %1335 = vmatmul.bf16.vlgmr.msra.gmra.mxu0 %v3109_v34  ;;  %v2702_v56 = vld [vmem:[%s2994_s29 + $0x4c] sm:$0xf]  ;;  %v2251_v2 = vld [vmem:[%s2994_s29 + $0x298] sm:$0xf0] }
  0x79   : > { %1379 = vmatpush.bf16.msrb.mxu0 %v2298_v57  ;;  %1348 = vmatmul.bf16.vlgmr.msra.gmra.mxu1 %v3155_v27  ;;  %v1963_v57 = vld [vmem:[%s2994_s29 + $0x58] sm:$0xf0] }
  0x7a   : > { %1392 = vmatpush.bf16.msrb.mxu1 %v2426_v58  ;;  %1361 = vmatmul.bf16.vlgmr.msra.gmra.mxu2 %v3105_v30  ;;  %v2218_v58 = vor.u32 %v2768_v50, %v2217_v49  ;;  %v1966_v0 = vor.u32 %v2702_v56, %v1963_v57  ;;  %v2414_v49 = vor.u32 %v2814_v43, %v2411_v44  ;;  %v2746_v50 = vld [vmem:[%s2994_s29 + $0x1ac] sm:$0xf]  ;;  %v2395_v56 = vld [vmem:[%s2994_s29 + $0x3b8] sm:$0xf0] }
  0x7b   : > { %1405 = vmatpush.bf16.msrb.mxu2 %v2554_v59  ;;  %1374 = vmatmul.bf16.vlgmr.msra.gmra.mxu3 %v3111_v35  ;;  %v2346_v59 = vor.u32 %v2800_v53, %v2345_v51  ;;  %v2139_v51 = vld [vmem:[%s2994_s29 + $0x1b8] sm:$0xf0]  ;;  %v2842_v57 = vld [vmem:[%s2994_s29 + $0x4ac] sm:$0xf] }
  0x7c   : > { %1418 = vmatpush.bf16.msrb.mxu3 %v2046_v63  ;;  %v2329_v63 = vld [vmem:[%s2994_s29 + $0x328] sm:$0xf]  ;;  %v2235_v13 = vld [vmem:[%s2994_s29 + $0x278] sm:$0xf0]  ;;  %v2794_v43 = vld [vmem:[%s2994_s29 + $0x32c] sm:$0xf] }
  0x7d   : > { %1380 = vmatpush.bf16.msrb.mxu0 %v2282_v5  ;;  %v1947_v5 = vld [vmem:[%s2994_s29 + $0x38] sm:$0xf0]  ;;  %v2330_v9 = vor.u32 %v2796_v1, %v2329_v63 }
  0x7e   : > { %1393 = vmatpush.bf16.msrb.mxu1 %v2410_v6  ;;  %v2202_v6 = vor.u32 %v2764_v62, %v2201_v61  ;;  %v1950_v14 = vor.u32 %v2698_v4, %v1947_v5  ;;  %v2398_v61 = vor.u32 %v2810_v55, %v2395_v56  ;;  %v2742_v62 = vld [vmem:[%s2994_s29 + $0x18c] sm:$0xf]  ;;  %v2123_v63 = vld [vmem:[%s2994_s29 + $0x198] sm:$0xf0] }
  0x7f   : > { %1406 = vmatpush.bf16.msrb.mxu2 %v2538_v7  ;;  %v2185_v7 = vld [vmem:[%s2994_s29 + $0x208] sm:$0xf]  ;;  %v2379_v4 = vld [vmem:[%s2994_s29 + $0x398] sm:$0xf0]  ;;  %v2838_v5 = vld [vmem:[%s2994_s29 + $0x48c] sm:$0xf] }
  0x80   : > { %1419 = vmatpush.bf16.msrb.mxu3 %v2030_v11  ;;  %v2313_v11 = vld [vmem:[%s2994_s29 + $0x308] sm:$0xf]  ;;  %v2186_v21 = vor.u32 %v2760_v8, %v2185_v7  ;;  %v2382_v8 = vor.u32 %v2806_v3, %v2379_v4  ;;  %v2363_v15 = vld [vmem:[%s2994_s29 + $0x378] sm:$0xf0]  ;;  %v2790_v55 = vld [vmem:[%s2994_s29 + $0x30c] sm:$0xf] }
  0x81   : > { %1381 = vmatpush.bf16.msrb.mxu0 %v2266_v17  ;;  %v1931_v17 = vld [vmem:[%s2994_s29 + $0x18] sm:$0xf0]  ;;  %v2314_v25 = vor.u32 %v2792_v12, %v2313_v11  ;;  %v2770_v11 = vld [vmem:[%s2994_s29 + $0x26c] sm:$0xf] }
  0x82   : > { %1394 = vmatpush.bf16.msrb.mxu1 %v2394_v18  ;;  %v2754_v18 = vld [vmem:[%s2994_s29 + $0x1ec] sm:$0xf]  ;;  %v2347_v28 = vld [vmem:[%s2994_s29 + $0x358] sm:$0xf0] }
  0x83   : > { %1407 = vmatpush.bf16.msrb.mxu2 %v2522_v19  ;;  %v2171_v19 = vld [vmem:[%s2994_s29 + $0x1f8] sm:$0xf0] }
  0x84   : > { %1420 = vmatpush.bf16.msrb.mxu3 %v2014_v23  ;;  %v2818_v23 = vld [vmem:[%s2994_s29 + $0x3ec] sm:$0xf]  ;;  %v2331_v44 = vld [vmem:[%s2994_s29 + $0x338] sm:$0xf0] }
  0x85   : > { %1382 = vmatpush.bf16.msrb.mxu0 %v2250_v32  ;;  %v1934_v32 = vor.u32 %v2694_v16, %v1931_v17  ;;  %v2430_v37 = vor.u32 %v2818_v23, %v2427_v24  ;;  %v2834_v16 = vld [vmem:[%s2994_s29 + $0x46c] sm:$0xf]  ;;  %v2491_v17 = vld [vmem:[%s2994_s29 + $0x478] sm:$0xf0] }
  0x86   : > { %1395 = vmatpush.bf16.msrb.mxu1 %v2378_v33  ;;  %v2174_v33 = vor.u32 %v2754_v18, %v2171_v19  ;;  %v2238_v19 = vor.u32 %v2770_v11, %v2235_v13  ;;  %v2766_v23 = vld [vmem:[%s2994_s29 + $0x24c] sm:$0xf]  ;;  %v2494_v24 = vor.u32 %v2834_v16, %v2491_v17  ;;  %v2315_v56 = vld [vmem:[%s2994_s29 + $0x318] sm:$0xf0] }
  0x87   : > { %1408 = vmatpush.bf16.msrb.mxu2 %v2506_v36  ;;  %v2302_v36 = vor.u32 %v2786_v20, %v2299_v22  ;;  %v2091_v22 = vld [vmem:[%s2994_s29 + $0x158] sm:$0xf0] }
  0x88   : > { %1421 = vmatpush.bf16.msrb.mxu3 %v1998_v40  ;;  %v2782_v40 = vld [vmem:[%s2994_s29 + $0x2cc] sm:$0xf] }
  0x89   : > { %1383 = vmatpush.bf16.msrb.mxu0 %v2234_v46  ;;  %v2539_v46 = vld [vmem:[%s2994_s29 + $0x4d8] sm:$0xf0] }
  0x8a   : > { %1396 = vmatpush.bf16.msrb.mxu1 %v2362_v47  ;;  %v2158_v47 = vor.u32 %v2750_v38, %v2155_v39  ;;  %v2542_v53 = vor.u32 %v2846_v45, %v2539_v46  ;;  %v2730_v38 = vld [vmem:[%s2994_s29 + $0x12c] sm:$0xf]  ;;  %v2075_v39 = vld [vmem:[%s2994_s29 + $0x138] sm:$0xf0] }
  0x8b   : > { %1409 = vmatpush.bf16.msrb.mxu2 %v2490_v48  ;;  %v2286_v48 = vor.u32 %v2782_v40, %v2283_v42  ;;  %v2762_v40 = vld [vmem:[%s2994_s29 + $0x22c] sm:$0xf]  ;;  %v2203_v42 = vld [vmem:[%s2994_s29 + $0x238] sm:$0xf0] }
  0x8c   : > { %1422 = vmatpush.bf16.msrb.mxu3 %v1982_v52  ;;  %v2778_v52 = vld [vmem:[%s2994_s29 + $0x2ac] sm:$0xf]  ;;  %v2459_v46 = vld [vmem:[%s2994_s29 + $0x438] sm:$0xf0] }
  0x8d   : > { %1384 = vmatpush.bf16.msrb.mxu0 %v2218_v58  ;;  %v2523_v58 = vld [vmem:[%s2994_s29 + $0x4b8] sm:$0xf0]  ;;  %v2826_v45 = vld [vmem:[%s2994_s29 + $0x42c] sm:$0xf] }
  0x8e   : > { %1397 = vmatpush.bf16.msrb.mxu1 %v2346_v59  ;;  %v2142_v59 = vor.u32 %v2746_v50, %v2139_v51  ;;  %v2526_v1 = vor.u32 %v2842_v57, %v2523_v58  ;;  %v2726_v50 = vld [vmem:[%s2994_s29 + $0x10c] sm:$0xf]  ;;  %v2059_v51 = vld [vmem:[%s2994_s29 + $0x118] sm:$0xf0] }
  0x8f   : > { %1410 = vmatpush.bf16.msrb.mxu2 %v2474_v60  ;;  %v2270_v60 = vor.u32 %v2778_v52, %v2267_v54  ;;  %v2758_v52 = vld [vmem:[%s2994_s29 + $0x20c] sm:$0xf]  ;;  %v2187_v54 = vld [vmem:[%s2994_s29 + $0x218] sm:$0xf0] }
  0x90   : > { %1423 = vmatpush.bf16.msrb.mxu3 %v1966_v0  ;;  %v2774_v0 = vld [vmem:[%s2994_s29 + $0x28c] sm:$0xf]  ;;  %v2443_v58 = vld [vmem:[%s2994_s29 + $0x418] sm:$0xf0] }
  0x91   : > { %1385 = vmatpush.bf16.msrb.mxu0 %v2202_v6  ;;  %v2126_v6 = vor.u32 %v2742_v62, %v2123_v63  ;;  %v2254_v7 = vor.u32 %v2774_v0, %v2251_v2  ;;  %v2822_v57 = vld [vmem:[%s2994_s29 + $0x40c] sm:$0xf] }
  0x92   : > { %1398 = vmatpush.bf16.msrb.mxu1 %v2330_v9  ;;  %v2738_v9 = vld [vmem:[%s2994_s29 + $0x16c] sm:$0xf]  ;;  %v2446_v62 = vor.u32 %v2822_v57, %v2443_v58  ;;  %v245_v57 = vld [vmem:[#allocation2 + $0x8] sm:$0xff] }
  0x93   : > { %1411 = vmatpush.bf16.msrb.mxu2 %v2458_v10  ;;  %v2107_v10 = vld [vmem:[%s2994_s29 + $0x178] sm:$0xf0] }
  0x94   : > { %1424 = vmatpush.bf16.msrb.mxu3 %v1950_v14  ;;  %v2802_v14 = vld [vmem:[%s2994_s29 + $0x36c] sm:$0xf]  ;;  %v2110_v18 = vor.u32 %v2738_v9, %v2107_v10 }
  0x95   : > { %1386 = vmatpush.bf16.msrb.mxu0 %v2186_v21  ;;  %v2366_v20 = vor.u32 %v2802_v14, %v2363_v15  ;;  %v2734_v21 = vld [vmem:[%s2994_s29 + $0x14c] sm:$0xf] }
  0x96   : > { %1399 = vmatpush.bf16.msrb.mxu1 %v2314_v25  ;;  %v2219_v25 = vld [vmem:[%s2994_s29 + $0x258] sm:$0xf0] }
  0x97   : > { %1412 = vmatpush.bf16.msrb.mxu2 %v2442_v26  ;;  %v2798_v26 = vld [vmem:[%s2994_s29 + $0x34c] sm:$0xf] }
  0x98   : > { %1425 = vmatpush.bf16.msrb.mxu3 %v1934_v32  ;;  %1387 = vmatmul.bf16.vlgmr.msrb.gmra.mxu0 %v3107_v31  ;;  %v2475_v32 = vld [vmem:[%s2994_s29 + $0x458] sm:$0xf0] }
  0x99   : > { %1431 = vmatpush.bf16.msra.mxu0 %v2174_v33  ;;  %1400 = vmatmul.bf16.vlgmr.msrb.gmra.mxu1 %v3109_v34  ;;  %v2094_v33 = vor.u32 %v2734_v21, %v2091_v22 }
  0x9a   : > { %1444 = vmatpush.bf16.msra.mxu1 %v2302_v36  ;;  %1413 = vmatmul.bf16.vlgmr.msrb.gmra.mxu2 %v3155_v27  ;;  %v2222_v36 = vor.u32 %v2766_v23, %v2219_v25 }
  0x9b   : > { %1457 = vmatpush.bf16.msra.mxu2 %v2430_v37  ;;  %1426 = vmatmul.bf16.vlgmr.msrb.gmra.mxu3 %v3105_v30  ;;  %v2507_v30 = vld [vmem:[%s2994_s29 + $0x498] sm:$0xf0]  ;;  %v2350_v37 = vor.u32 %v2798_v26, %v2347_v28 }
  0x9c   : > { %1470 = vmatpush.bf16.msra.mxu3 %v2558_v41  ;;  %v2510_v12 = vor.u32 %v2838_v5, %v2507_v30  ;;  %v2478_v41 = vor.u32 %v2830_v29, %v2475_v32 }
  0x9d   : > { %1432 = vmatpush.bf16.msra.mxu0 %v2158_v47  ;;  %v2078_v47 = vor.u32 %v2730_v38, %v2075_v39 }
  0x9e   : > { %1445 = vmatpush.bf16.msra.mxu1 %v2286_v48  ;;  %v2206_v48 = vor.u32 %v2762_v40, %v2203_v42 }
  0x9f   : > { %1458 = vmatpush.bf16.msra.mxu2 %v2414_v49  ;;  %v2334_v49 = vor.u32 %v2794_v43, %v2331_v44 }
  0xa0   : > { %1471 = vmatpush.bf16.msra.mxu3 %v2542_v53  ;;  %v2462_v53 = vor.u32 %v2826_v45, %v2459_v46 }
  0xa1   : > { %1433 = vmatpush.bf16.msra.mxu0 %v2142_v59  ;;  %v2062_v59 = vor.u32 %v2726_v50, %v2059_v51 }
  0xa2   : > { %1446 = vmatpush.bf16.msra.mxu1 %v2270_v60  ;;  %v2190_v60 = vor.u32 %v2758_v52, %v2187_v54 }
  0xa3   : > { %1459 = vmatpush.bf16.msra.mxu2 %v2398_v61  ;;  %v2318_v61 = vor.u32 %v2790_v55, %v2315_v56 }
  0xa4   : > { %1472 = vmatpush.bf16.msra.mxu3 %v2526_v1 }
  0xa5   : > { %1434 = vmatpush.bf16.msra.mxu0 %v2126_v6 }
  0xa6   : > { %1447 = vmatpush.bf16.msra.mxu1 %v2254_v7 }
  0xa7   : > { %1460 = vmatpush.bf16.msra.mxu2 %v2382_v8 }
  0xa8   : > { %1473 = vmatpush.bf16.msra.mxu3 %v2510_v12 }
  0xa9   : > { %1435 = vmatpush.bf16.msra.mxu0 %v2110_v18 }
  0xaa   : > { %1448 = vmatpush.bf16.msra.mxu1 %v2238_v19 }
  0xab   : > { %1461 = vmatpush.bf16.msra.mxu2 %v2366_v20  ;;  %v244_v20 = vld [vmem:[#allocation2] sm:$0xff] }
  0xac   : > { %1474 = vmatpush.bf16.msra.mxu3 %v2494_v24 }
  0xad   : > { %1436 = vmatpush.bf16.msra.mxu0 %v2094_v33 }
  0xae   : > { %1449 = vmatpush.bf16.msra.mxu1 %v2222_v36 }
  0xaf   : > { %1462 = vmatpush.bf16.msra.mxu2 %v2350_v37 }
  0xb0   : > { %1475 = vmatpush.bf16.msra.mxu3 %v2478_v41 }
  0xb1   : > { %1437 = vmatpush.bf16.msra.mxu0 %v2078_v47 }
  0xb2   : > { %1450 = vmatpush.bf16.msra.mxu1 %v2206_v48 }
  0xb3   : > { %1463 = vmatpush.bf16.msra.mxu2 %v2334_v49 }
  0xb4   : > { %1476 = vmatpush.bf16.msra.mxu3 %v2462_v53 }
  0xb5   : > { %1438 = vmatpush.bf16.msra.mxu0 %v2062_v59 }
  0xb6   : > { %1451 = vmatpush.bf16.msra.mxu1 %v2190_v60 }
  0xb7   : > { %1464 = vmatpush.bf16.msra.mxu2 %v2318_v61 }
  0xb8   : > { %1477 = vmatpush.bf16.msra.mxu3 %v2446_v62  ;;  %1439 = vmatmul.bf16.vlgmr.msra.gmra.mxu0 %v3111_v35 }
  0xb9   : > { %1452 = vmatmul.bf16.vlgmr.msra.gmra.mxu1 %v3107_v31 }
  0xba   : > { %1465 = vmatmul.bf16.vlgmr.msra.gmra.mxu2 %v3109_v34 }
  0xbb   : > { %1478 = vmatmul.bf16.vlgmr.msra.gmra.mxu3 %v3155_v27 }
  0xc0   : > { %v1232_v63 = vpop.f32.mrf.mxu0 }
  0xc4   : > { %v1245_v0 = vpop.f32.mrf.mxu1 }
  0xc5   : > { %v1246_v12 = vadd.f32 %v1245_v0, %v1232_v63 }
  0xc7   : > { %v1258_v1 = vpop.f32.mrf.mxu2 }
  0xc8   : > { %v1271_v2 = vpop.f32.mrf.mxu3  ;;  %v1234_v3 = vpop.f32.mrf.mxu0  ;;  %v1259_v13 = vadd.f32 %v1258_v1, %v1246_v12 }
  0xca   : > { %v1272_v15 = vadd.f32 %v1271_v2, %v1259_v13 }
  0xcc   : > { %v1247_v4 = vpop.f32.mrf.mxu1 }
  0xcf   : > { %v1260_v5 = vpop.f32.mrf.mxu2 }
  0xd0   : > { %v1273_v30 = vpop.f32.mrf.mxu3 }
  0xd5   : > { %v1284_v6 = vpop.f32.mrf.mxu0 }
  0xd6   : > { %v1297_v7 = vpop.f32.mrf.mxu1  ;;  %v1285_v19 = vadd.f32 %v1284_v6, %v1272_v15 }
  0xdd   : > { %v1310_v8 = vpop.f32.mrf.mxu2  ;;  %v1286_v9 = vpop.f32.mrf.mxu0 }
  0xde   : > { %v1323_v10 = vpop.f32.mrf.mxu3  ;;  %v1299_v35 = vpop.f32.mrf.mxu1  ;;  %v1311_v34 = vadd.f32 %v1310_v8, %v1297_v7 }
  0xe0   : > { %v1324_v27 = vadd.f32 %v1323_v10, %v1311_v34 }
  0xe5   : > { %v1312_v11 = vpop.f32.mrf.mxu2 }
  0xe6   : > { %v1325_v31 = vpop.f32.mrf.mxu3 }
  0xf5   : > { %v1336_v14 = vpop.f32.mrf.mxu0 }
  0xf6   : > { %v1337_v16 = vadd.f32 %v1336_v14, %v1324_v27  ;;  %v1349_v17 = vpop.f32.mrf.mxu1 }
  0xf8   : > { %v1350_v18 = vadd.f32 %v1349_v17, %v1337_v16 }
  0xfa   : > { %v1487_v21 = vrot.slane %v1350_v18, 4 }
  0xfc   : > { %v1490_v22 = vsel %vm1489_vm0, %v1285_v19, %v1487_v21 }
  0xfd   : > { %v1362_v23 = vpop.f32.mrf.mxu2  ;;  %v1494_v24 = vadd.f32 %v1490_v22, %v244_v20  ;;  %v1338_v25 = vpop.f32.mrf.mxu0 }
  0xfe   : > { %v1375_v26 = vpop.f32.mrf.mxu3  ;;  %v1351_v28 = vpop.f32.mrf.mxu1 }
  0xff   : > { %1496 = vst [vmem:[#allocation2] sm:$0xff] %v1494_v24  ;;  %v1376_v43 = vadd.f32 %v1375_v26, %v1362_v23 }
 0x105   : > { %v1364_v29 = vpop.f32.mrf.mxu2 }
 0x106   : > { %v1377_v32 = vpop.f32.mrf.mxu3 }
 0x115   : > { %v1388_v33 = vpop.f32.mrf.mxu0 }
 0x116   : > { %v1401_v36 = vpop.f32.mrf.mxu1  ;;  %v1389_v47 = vadd.f32 %v1388_v33, %v1376_v43 }
 0x118   : > { %v1402_v50 = vadd.f32 %v1401_v36, %v1389_v47 }
 0x11d   : > { %v1414_v37 = vpop.f32.mrf.mxu2  ;;  %v1390_v39 = vpop.f32.mrf.mxu0 }
 0x11e   : > { %v1427_v38 = vpop.f32.mrf.mxu3  ;;  %v1403_v40 = vpop.f32.mrf.mxu1  ;;  %v1415_v56 = vadd.f32 %v1414_v37, %v1402_v50 }
 0x125   : > { %v1416_v41 = vpop.f32.mrf.mxu2 }
 0x126   : > { %v1429_v42 = vpop.f32.mrf.mxu3 }
 0x135   : > { %v1440_v44 = vpop.f32.mrf.mxu0 }
 0x136   : > { %v1453_v45 = vpop.f32.mrf.mxu1  ;;  %v1441_v46 = vadd.f32 %v1440_v44, %v1427_v38 }
 0x138   : > { %v1454_v48 = vadd.f32 %v1453_v45, %v1441_v46 }
 0x13d   : > { %v1466_v49 = vpop.f32.mrf.mxu2  ;;  %v1442_v53 = vpop.f32.mrf.mxu0 }
 0x13e   : > { %v1467_v51 = vadd.f32 %v1466_v49, %v1454_v48  ;;  %v1479_v52 = vpop.f32.mrf.mxu3  ;;  %v1455_v54 = vpop.f32.mrf.mxu1 }
 0x140   : > { %v1480_v55 = vadd.f32 %v1479_v52, %v1467_v51 }
 0x142   : > { %v1488_v58 = vrot.slane %v1480_v55, 4 }
 0x143   : > { %1501 = sbr.rel (%p2559_p6) target bundleno = 503 (0x1f7), region = 48 }
 0x144   : > { %v1491_v59 = vsel %vm1489_vm0, %v1415_v56, %v1488_v58 }
 0x145   : > { %v1495_v60 = vadd.f32 %v1491_v59, %v245_v57  ;;  %v1468_v61 = vpop.f32.mrf.mxu2 }
 0x146   : > { %v1481_v62 = vpop.f32.mrf.mxu3 }
 0x147   : > { %1497 = vst [vmem:[#allocation2 + $0x8] sm:$0xff] %v1495_v60 }
 0x148   : > { %v2860_v63 = vld [vmem:[%s3466_s3 + $0x38] sm:$0xff]  ;;  %v2859_v3 = vld [vmem:[%s3466_s3 + $0x30] sm:$0xff]  ;;  %v2858_v6 = vld [vmem:[%s3466_s3 + $0x28] sm:$0xff]  ;;  %vm1849_vm1 = vcmask 35840  }
 0x149   : > { %v2868_v0 = vld [vmem:[%s3466_s3 + $0x78] sm:$0xff]  ;;  %1797 = vmatpush.bf16.msra.mxu0 %v2860_v63  ;;  %v2867_v4 = vld [vmem:[%s3466_s3 + $0x70] sm:$0xff]  ;;  %v2866_v7 = vld [vmem:[%s3466_s3 + $0x68] sm:$0xff] }
 0x14a   : > { %v2876_v1 = vld [vmem:[%s3466_s3 + $0xb8] sm:$0xff]  ;;  %1810 = vmatpush.bf16.msra.mxu1 %v2868_v0  ;;  %v2875_v5 = vld [vmem:[%s3466_s3 + $0xb0] sm:$0xff]  ;;  %v2874_v8 = vld [vmem:[%s3466_s3 + $0xa8] sm:$0xff] }
 0x14b   : > { %v2884_v2 = vld [vmem:[%s3466_s3 + $0xf8] sm:$0xff]  ;;  %1823 = vmatpush.bf16.msra.mxu2 %v2876_v1  ;;  %v2883_v30 = vld [vmem:[%s3466_s3 + $0xf0] sm:$0xff]  ;;  %v2882_v9 = vld [vmem:[%s3466_s3 + $0xe8] sm:$0xff] }
 0x14c   : > { %1836 = vmatpush.bf16.msra.mxu3 %v2884_v2  ;;  %v2857_v10 = vld [vmem:[%s3466_s3 + $0x20] sm:$0xff]  ;;  %v2856_v15 = vld [vmem:[%s3466_s3 + $0x18] sm:$0xff]  ;;  %v1502_v17 = vld [vmem:[#allocation2] sm:$0xff] }
 0x14d   : > { %1798 = vmatpush.bf16.msra.mxu0 %v2859_v3  ;;  %v2865_v35 = vld [vmem:[%s3466_s3 + $0x60] sm:$0xff]  ;;  %v2864_v16 = vld [vmem:[%s3466_s3 + $0x58] sm:$0xff]  ;;  %v2855_v28 = vld [vmem:[%s3466_s3 + $0x10] sm:$0xff] }
 0x14e   : > { %1811 = vmatpush.bf16.msra.mxu1 %v2867_v4  ;;  %v2873_v11 = vld [vmem:[%s3466_s3 + $0xa0] sm:$0xff]  ;;  %v1503_v19 = vld [vmem:[#allocation2 + $0x8] sm:$0xff]  ;;  %v2872_v21 = vld [vmem:[%s3466_s3 + $0x98] sm:$0xff] }
 0x14f   : > { %1824 = vmatpush.bf16.msra.mxu2 %v2875_v5  ;;  %v2881_v31 = vld [vmem:[%s3466_s3 + $0xe0] sm:$0xff]  ;;  %v2880_v22 = vld [vmem:[%s3466_s3 + $0xd8] sm:$0xff]  ;;  %v2863_v29 = vld [vmem:[%s3466_s3 + $0x50] sm:$0xff] }
 0x150   : > { %1837 = vmatpush.bf16.msra.mxu3 %v2883_v30  ;;  %v1504_v12 = vld [vmem:[%s3465_s2] sm:$0xf]  ;;  %v2871_v32 = vld [vmem:[%s3466_s3 + $0x90] sm:$0xff]  ;;  %v2854_v38 = vld [vmem:[%s3466_s3 + $0x8] sm:$0xff] }
 0x151   : > { %1799 = vmatpush.bf16.msra.mxu0 %v2858_v6  ;;  %v1506_v34 = vperm.slane %v1504_v12, 0  ;;  %v1507_v13 = vperm.slane %v1504_v12, 1  ;;  %v1508_v27 = vperm.slane %v1504_v12, 2  ;;  %v1509_v14 = vperm.slane %v1504_v12, 3  ;;  %v2879_v33 = vld [vmem:[%s3466_s3 + $0xd0] sm:$0xff]  ;;  %v2862_v39 = vld [vmem:[%s3466_s3 + $0x48] sm:$0xff] }
 0x152   : > { %1812 = vmatpush.bf16.msra.mxu1 %v2866_v7  ;;  %v2870_v40 = vld [vmem:[%s3466_s3 + $0x88] sm:$0xff]  ;;  %v2853_v42 = vld [vmem:[%s3466_s3] sm:$0xff] }
 0x153   : > { %1825 = vmatpush.bf16.msra.mxu2 %v2874_v8  ;;  %v1510_v18 = vrot.slane %v1507_v13, 4  ;;  %v1511_v20 = vrot.slane %v1509_v14, 4  ;;  %v2878_v41 = vld [vmem:[%s3466_s3 + $0xc8] sm:$0xff]  ;;  %v2861_v43 = vld [vmem:[%s3466_s3 + $0x40] sm:$0xff] }
 0x154   : > { %1838 = vmatpush.bf16.msra.mxu3 %v2882_v9  ;;  %v2869_v44 = vld [vmem:[%s3466_s3 + $0x80] sm:$0xff] }
 0x155   : > { %1800 = vmatpush.bf16.msra.mxu0 %v2857_v10  ;;  %v1512_v23 = vsel %vm1489_vm0, %v1506_v34, %v1510_v18  ;;  %v1513_v24 = vsel %vm1489_vm0, %v1508_v27, %v1511_v20  ;;  %v2877_v45 = vld [vmem:[%s3466_s3 + $0xc0] sm:$0xff] }
 0x156   : > { %1813 = vmatpush.bf16.msra.mxu1 %v2865_v35  ;;  %v1516_v25 = vadd.f32 %v1512_v23, %v1502_v17  ;;  %v1517_v26 = vadd.f32 %v1513_v24, %v1503_v19  ;;  %v2901_v54 = vld [vmem:[%s3467_s4] ss:$0 sm:$0xff] }
 0x157   : > { %1826 = vmatpush.bf16.msra.mxu2 %v2873_v11 }
 0x158   : > { %1839 = vmatpush.bf16.msra.mxu3 %v2881_v31  ;;  %v1518_v36 = vmax.f32 %v1516_v25, 0.0  ;;  %v1519_v37 = vmax.f32 %v1517_v26, 0.0 }
 0x159   : > { %1801 = vmatpush.bf16.msra.mxu0 %v2856_v15 }
 0x15a   : > { %1814 = vmatpush.bf16.msra.mxu1 %v2864_v16  ;;  %1522 = vst [vmem:[#allocation1] ss:$2 sm:$0xff] %v1518_v36 }
 0x15b   : > { %1827 = vmatpush.bf16.msra.mxu2 %v2872_v21  ;;  %1524 = vst [vmem:[#allocation1 + $0x10] ss:$2 sm:$0xff] %v1519_v37 }
 0x15c   : > { %1840 = vmatpush.bf16.msra.mxu3 %v2880_v22 }
 0x15d   : > { %1802 = vmatpush.bf16.msra.mxu0 %v2855_v28 }
 0x15e   : > { %1815 = vmatpush.bf16.msra.mxu1 %v2863_v29 }
 0x15f   : > { %1828 = vmatpush.bf16.msra.mxu2 %v2871_v32 }
 0x160   : > { %1841 = vmatpush.bf16.msra.mxu3 %v2879_v33 }
 0x161   : > { %1803 = vmatpush.bf16.msra.mxu0 %v2854_v38  ;;  %v1525_v46 = vld.sshfl [vmem:[#allocation1] sm:$0xff pattern:$0x75316420]  ;;  %v1526_v47 = vld.sshfl [vmem:[#allocation1 + $0x8] sm:$0xff pattern:$0x75316420] }
 0x162   : > { %1816 = vmatpush.bf16.msra.mxu1 %v2862_v39  ;;  %v1533_v48 = vpack.c.bf16 %v1525_v46, %v1525_v46  ;;  %v1534_v49 = vpack.c.bf16 %v1526_v47, %v1526_v47  ;;  %v1527_v50 = vld.sshfl [vmem:[#allocation1 + $0x10] sm:$0xff pattern:$0x75316420]  ;;  %v1528_v51 = vld.sshfl [vmem:[#allocation1 + $0x18] sm:$0xff pattern:$0x75316420] }
 0x163   : > { %1829 = vmatpush.bf16.msra.mxu2 %v2870_v40  ;;  %v1535_v52 = vpack.c.bf16 %v1527_v50, %v1527_v50  ;;  %v1536_v53 = vpack.c.bf16 %v1528_v51, %v1528_v51 }
 0x164   : > { %1842 = vmatpush.bf16.msra.mxu3 %v2878_v41 }
 0x165   : > { %1804 = vmatpush.bf16.msra.mxu0 %v2853_v42 }
 0x166   : > { %1817 = vmatpush.bf16.msra.mxu1 %v2861_v43 }
 0x167   : > { %1830 = vmatpush.bf16.msra.mxu2 %v2869_v44 }
 0x168   : > { %1843 = vmatpush.bf16.msra.mxu3 %v2877_v45  ;;  %1805 = vmatmul.bf16.vlgmr.msra.gmra.mxu0 %v1533_v48 }
 0x169   : > { %1818 = vmatmul.bf16.vlgmr.msra.gmra.mxu1 %v1534_v49 }
 0x16a   : > { %1831 = vmatmul.bf16.vlgmr.msra.gmra.mxu2 %v1535_v52 }
 0x16b   : > { %1844 = vmatmul.bf16.vlgmr.msra.gmra.mxu3 %v1536_v53 }
 0x1e5   : > { %v1806_v55 = vpop.f32.mrf.mxu0 }
 0x1e6   : > { %v1819_v56 = vpop.f32.mrf.mxu1  ;;  %v1807_v57 = vadd.f32 %v2901_v54, %v1806_v55 }
 0x1e8   : > { %v1820_v58 = vadd.f32 %v1819_v56, %v1807_v57 }
 0x1ed   : > { %v1832_v59 = vpop.f32.mrf.mxu2  ;;  %v1808_v62 = vpop.f32.mrf.mxu0 }
 0x1ee   : > { %v1845_v60 = vpop.f32.mrf.mxu3  ;;  %v1833_v61 = vadd.f32 %v1832_v59, %v1820_v58  ;;  %v1821_v63 = vpop.f32.mrf.mxu1 }
 0x1f0   : > { %v1846_v0 = vadd.f32 %v1845_v60, %v1833_v61 }
 0x1f2   : > { %1850 = vst.msk [vmem:[#allocation3] sm:$0xf] %vm1849_vm1, %v1846_v0 }
 0x1f5   : > { %v1834_v1 = vpop.f32.mrf.mxu2 }
 0x1f6   : > { %v1847_v2 = vpop.f32.mrf.mxu3 }
 0x1f7 PF: > { %p2889_p7 = scmp.eq.s32.totalorder %s2980_s19, 1  ;;  %s2943_s29 = smov [#allocation3]  }
 0x1f8   : > { %s1857_s30 = sshll.u32 %s2943_s29, 4  ;;  %s1859_s8 = sshll.u32 %s3468_s5, 4  ;;  %s1858_s30 = int_to_ptr.vmem [resolvable:$true] %s1857_s30  ;;  %s1860_s8 = int_to_ptr.hbm [resolvable:$true] %s1859_s8 }
 0x1f9   : > { %2886 = dma.vmem_to_hbm [thread:$0]  (%p2889_p7), %s1858_s30, 64, %s1860_s8, [#allocation4]  }
 0x1fa   : > { %2935 = dma.done.wait (%p2889_p7), [#allocation4], 64  }
 0x1fb   : > { %2937 = vsyncadd (%p2889_p7), [#allocation4], 4294967232 }
 0x1fc PF: > { %s16_s18 = sadd.s32 1, %s2940_s18  }
 0x1fd   : > { %p13_p8 = scmp.ge.s32.totalorder %s16_s18, 4  }
 0x1ff   :  { %15 = sbr.rel (!%p13_p8) target bundleno = 1 (0x1), region = 80 }
 0x204   :  { %1873 = vsyncpa [#allocation4], 1 }
 0x205   :  { %1875 = vsyncpa [#allocation4 + $0x1], 1 }

</bundles_post_ra>
